<compile_context>
chip_gen: v6e
topology: v6e:2x2x1
jax: 0.10.0
libtpu: 0.0.40
codegen_flags: <defaults>
</compile_context>

<pallas_src>
import numpy as np
import jax
import jax.numpy as jnp
from jax import lax
from jax.experimental import pallas as pl
from jax.experimental.pallas import tpu as pltpu


# ----------------------------------------------------------------------------
# Host-side helper (also used by the pure-JAX reference)
# ----------------------------------------------------------------------------
def bilinear_axis_matrix(out_size, in_size):
    """PyTorch F.interpolate(mode='bilinear', align_corners=False) weights."""
    scale = in_size / out_size
    dst = np.arange(out_size, dtype=np.float64)
    src = np.maximum((dst + 0.5) * scale - 0.5, 0.0)
    i0 = np.minimum(np.floor(src).astype(np.int64), in_size - 1)
    i1 = np.minimum(i0 + 1, in_size - 1)
    lam1 = src - i0
    lam0 = 1.0 - lam1
    W = np.zeros((out_size, in_size), dtype=np.float64)
    W[np.arange(out_size), i0] += lam0
    W[np.arange(out_size), i1] += lam1
    return W


# ----------------------------------------------------------------------------
# Wrapper + kernel
# ----------------------------------------------------------------------------
def lpa_forward(x_nchw, w_collapse, b_collapse, w_redis, b_redis,
                w_restore, b_restore):
    N, C, H, W = x_nchw.shape
    assert C % 4 == 0 and H % 4 == 0 and W % 4 == 0
    f = C // 4
    Hp, Wp = H // 4, W // 4
    HW, HpWp = H * W, Hp * Wp
    P = Wp + 1                      # pad rows on each side of the pooled grid
    pad_rows = HpWp + 2 * Wp + 2

    # ---- wrapper-side layout plumbing (one fused transpose+bf16-cast pass) --
    # row p = (a*4+b)*HpWp + i*Wp + j  <->  pixel (4i+a, 4j+b), channels last.
    xb = x_nchw.reshape(N, C, Hp, 4, Wp, 4)
    xb = jnp.transpose(xb, (0, 3, 5, 2, 4, 1))            # (n, a, b, i, j, c)
    x_flat = xb.reshape(N, HW, C).astype(jnp.bfloat16)

    # ---- reformat PyTorch-layout parameters (bf16 matmul operands) ----
    wc = jnp.asarray(jnp.reshape(w_collapse, (f, C)).T, jnp.bfloat16)     # (C, f)
    bc = jnp.asarray(jnp.reshape(b_collapse, (1, f)), jnp.float32)
    wr9 = jnp.asarray(jnp.transpose(w_redis, (2, 3, 1, 0)).reshape(9 * f, f),
                      jnp.bfloat16)                                        # (9f, f)
    br = jnp.asarray(jnp.reshape(b_redis, (1, f)), jnp.float32)
    wrest = jnp.asarray(jnp.reshape(w_restore, (C, f)).T, jnp.bfloat16)    # (f, C)
    brest = jnp.asarray(jnp.reshape(b_restore, (1, C)), jnp.float32)

    # W-direction boundary masks for the +-1 column shifts (tiny operand)
    jj = np.arange(HpWp) % Wp
    maskw = jnp.asarray(
        np.stack([(jj >= 1), (jj <= Wp - 2)], axis=1).astype(np.float32))  # (HpWp,2)

    # per-axis bilinear tap weights for an exact x4 upsample (align_corners=False)
    tap_sign, tap_wn = [], []
    for a in range(4):
        src = (a + 0.5) * 0.25 - 0.5          # in {-0.375, -0.125, 0.125, 0.375}
        tap_sign.append(-1 if src < 0 else 1)
        tap_wn.append(abs(src))               # weight on the (clamped) neighbour

    def kernel(x_ref, wc_ref, bc_ref, maskw_ref, wr9_ref, br_ref,
               wrest_ref, brest_ref, o_ref,
               y_scr, pad_scr, col_scr):
        # ---- collapse: 1x1 conv as a channel matmul (bf16 MXU, f32 acc) ----
        y = jnp.dot(x_ref[...], wc_ref[...],
                    preferred_element_type=jnp.float32) + bc_ref[...]
        y_scr[...] = y.astype(jnp.bfloat16)              # residual, blocked order

        # ---- squeeze: 4x4 max-pool = pairwise max tree over 16 slabs (VPU) --
        s = [y_scr[t * HpWp:(t + 1) * HpWp, :] for t in range(16)]
        while len(s) > 1:
            s = [jnp.maximum(s[2 * k], s[2 * k + 1]) for k in range(len(s) // 2)]
        pooled = s[0]                                    # (HpWp, f) bf16

        mask_m1 = maskw_ref[:, 0:1]                      # valid for dw = -1
        mask_p1 = maskw_ref[:, 1:2]                      # valid for dw = +1

        # ---- redistribution: 3x3 SAME conv via padded shifts + im2col,
        #      then ONE fused (HpWp, 9f) @ (9f, f) matmul.
        #      Only the pad rows are zeroed (interior is overwritten). ----
        pad_scr[0:P, :] = jnp.zeros((P, f), jnp.float32)
        pad_scr[P + HpWp:pad_rows, :] = jnp.zeros((P, f), jnp.float32)
        pad_scr[P:P + HpWp, :] = pooled.astype(jnp.float32)
        for dh in (-1, 0, 1):
            for dw in (-1, 0, 1):
                t = (dh + 1) * 3 + (dw + 1)
                srow = P + dh * Wp + dw
                colv = pad_scr[srow:srow + HpWp, :]
                if dw == -1:
                    colv = colv * mask_m1
                elif dw == 1:
                    colv = colv * mask_p1
                col_scr[:, t * f:(t + 1) * f] = colv.astype(jnp.bfloat16)
        conv_out = jnp.dot(col_scr[...], wr9_ref[...],
                           preferred_element_type=jnp.float32) + br_ref[...]

        # ---- reuse pad_scr as the edge-clamp-padded conv output.
        #      Rows 0 and pad_rows-1 stay zero (read only under a 0 mask). ----
        pad_scr[1:1 + Wp, :] = conv_out[0:Wp, :]                      # top clamp
        pad_scr[P:P + HpWp, :] = conv_out
        pad_scr[P + HpWp:P + HpWp + Wp, :] = conv_out[HpWp - Wp:HpWp, :]  # bottom

        inv_m1 = 1.0 - mask_m1                          # hoisted (no re-broadcast)
        inv_p1 = 1.0 - mask_p1
        g = {}
        for dh in (-1, 0, 1):
            base = P + dh * Wp
            g0 = pad_scr[base:base + HpWp, :]
            g[(dh, 0)] = g0
            g[(dh, -1)] = (mask_m1 * pad_scr[base - 1:base - 1 + HpWp, :]
                           + inv_m1 * g0)
            g[(dh, 1)] = (mask_p1 * pad_scr[base + 1:base + 1 + HpWp, :]
                          + inv_p1 * g0)

        # ---- per-(a,b) bilinear x4 upsample + residual, fused with the
        #      restore 1x1 conv and the sigmoid gate (no upres scratch) ----
        for a in range(4):
            sa, wna = tap_sign[a], tap_wn[a]
            wsa = 1.0 - wna
            for b in range(4):
                sb, wnb = tap_sign[b], tap_wn[b]
                wsb = 1.0 - wnb
                t = a * 4 + b
                up_t = ((wsa * wsb) * g[(0, 0)] + (wsa * wnb) * g[(0, sb)]
                        + (wna * wsb) * g[(sa, 0)] + (wna * wnb) * g[(sa, sb)])
                res_t = y_scr[t * HpWp:(t + 1) * HpWp, :].astype(jnp.float32)
                pre_t = (up_t + res_t).astype(jnp.bfloat16)
                z_t = jnp.dot(pre_t, wrest_ref[...],
                              preferred_element_type=jnp.float32) + brest_ref[...]
                x_t = x_ref[t * HpWp:(t + 1) * HpWp, :]
                o_ref[t * HpWp:(t + 1) * HpWp, :] = (
                    x_t * jax.nn.sigmoid(z_t)).astype(jnp.bfloat16)

    cost = pl.CostEstimate(
        flops=N * (2 * HW * C * f + 2 * HpWp * (9 * f) * f + 2 * HW * f * C),
        transcendentals=N * HW * C,
        bytes_accessed=N * HW * C * 2 * 2
        + 2 * (C * f + 9 * f * f + f * C) + 4 * (2 * f + C) + 4 * 2 * HpWp)

    # explicit VMEM budget (double-buffered bf16 blocks + scratches + temps)
    vmem_need = (4 * HW * C * 2          # in + out blocks, double-buffered, bf16
                 + HW * f * 2            # y_scr (bf16)
                 + pad_rows * f * 4      # pad_scr (f32)
                 + HpWp * 9 * f * 2      # col_scr (bf16)
                 + 12 * HpWp * f * 4     # pooled-grid temporaries (g slabs etc.)
                 + 2 * (C * f + 9 * f * f + f * C)
                 + 4 * (2 * f + C) + 4 * 2 * HpWp)
    vmem_limit = int(min(max(vmem_need * 5 // 4 + (1 << 20), 32 * 1024 * 1024),
                         100 * 1024 * 1024))

    out_flat = pl.pallas_call(
        kernel,
        out_shape=jax.ShapeDtypeStruct((N, HW, C), jnp.bfloat16),
        grid=(N,),
        in_specs=[
            pl.BlockSpec((None, HW, C), lambda n: (n, 0, 0)),   # x (per image)
            pl.BlockSpec((C, f), lambda n: (0, 0)),             # collapse weight
            pl.BlockSpec((1, f), lambda n: (0, 0)),             # collapse bias
            pl.BlockSpec((HpWp, 2), lambda n: (0, 0)),          # W-boundary masks
            pl.BlockSpec((9 * f, f), lambda n: (0, 0)),         # fused 3x3 weight
            pl.BlockSpec((1, f), lambda n: (0, 0)),             # 3x3 bias
            pl.BlockSpec((f, C), lambda n: (0, 0)),             # restore weight
            pl.BlockSpec((1, C), lambda n: (0, 0)),             # restore bias
        ],
        out_specs=pl.BlockSpec((None, HW, C), lambda n: (n, 0, 0)),
        scratch_shapes=[
            pltpu.VMEM((HW, f), jnp.bfloat16),       # y (residual), blocked order
            pltpu.VMEM((pad_rows, f), jnp.float32),  # shared pad/clamp grid
            pltpu.VMEM((HpWp, 9 * f), jnp.bfloat16), # im2col for the 3x3 conv
        ],
        compiler_params=pltpu.CompilerParams(
            dimension_semantics=("parallel",),
            vmem_limit_bytes=vmem_limit),
        cost_estimate=cost,
    )(x_flat, wc, bc, maskw, wr9, br, wrest, brest)

    # undo the window-blocked ordering (bf16 pass, final cast fused by XLA)
    ob = out_flat.reshape(N, 4, 4, Hp, Wp, C)          # (n, a, b, i, j, c)
    out = jnp.transpose(ob, (0, 5, 3, 1, 4, 2)).reshape(N, C, H, W)
    return out.astype(x_nchw.dtype)


# ----------------------------------------------------------------------------
# Pure-JAX reference (mirrors the PyTorch forward, NCHW)
# ----------------------------------------------------------------------------
def lpa_reference(x, w_collapse, b_collapse, w_redis, b_redis,
                  w_restore, b_restore):
    N, C, H, W = x.shape
    Hp, Wp = H // 4, W // 4
    dn = ('NCHW', 'OIHW', 'NCHW')

    y = lax.conv_general_dilated(x, w_collapse, (1, 1), 'VALID',
                                 dimension_numbers=dn)
    y = y + b_collapse[None, :, None, None]
    res = y
    y = lax.reduce_window(y, -jnp.inf, lax.max, (1, 1, 4, 4), (1, 1, 4, 4),
                          'VALID')
    y = lax.conv_general_dilated(y, w_redis, (1, 1), ((1, 1), (1, 1)),
                                 dimension_numbers=dn)
    y = y + b_redis[None, :, None, None]
    Wh = jnp.asarray(bilinear_axis_matrix(H, Hp), jnp.float32)
    Ww = jnp.asarray(bilinear_axis_matrix(W, Wp), jnp.float32)
    y = jnp.einsum('Hh,nchw->ncHw', Wh, y)
    y = jnp.einsum('Ww,ncHw->ncHW', Ww, y)
    y = y + res
    z = lax.conv_general_dilated(y, w_restore, (1, 1), 'VALID',
                                 dimension_numbers=dn)
    z = z + b_restore[None, :, None, None]
    return x * jax.nn.sigmoid(z)


# ----------------------------------------------------------------------------
if __name__ == "__main__":
    N, n_feats, H, W = 2, 32, 16, 16
    f = n_feats // 4

    key = jax.random.PRNGKey(0)
    kx, k1, k2, k3, k4, k5, k6 = jax.random.split(key, 7)

    x = jax.random.normal(kx, (N, n_feats, H, W), jnp.float32)

    # deterministic synthetic parameters (PyTorch Conv2d layouts: OIHW + bias)
    w_collapse = jax.random.normal(k1, (f, n_feats, 1, 1), jnp.float32) * 0.2
    b_collapse = jax.random.normal(k2, (f,), jnp.float32) * 0.1
    w_redis = jax.random.normal(k3, (f, f, 3, 3), jnp.float32) * 0.2
    b_redis = jax.random.normal(k4, (f,), jnp.float32) * 0.1
    w_restore = jax.random.normal(k5, (n_feats, f, 1, 1), jnp.float32) * 0.2
    b_restore = jax.random.normal(k6, (n_feats,), jnp.float32) * 0.1

    out = lpa_forward(x, w_collapse, b_collapse, w_redis, b_redis,
                      w_restore, b_restore)
    out = jax.block_until_ready(out)

    ref = lpa_reference(x, w_collapse, b_collapse, w_redis, b_redis,
                        w_restore, b_restore)
    ref = jax.block_until_ready(ref)

    # bf16 image I/O + bf16 MXU operands (f32 accumulation) => loosened tolerance
    np.testing.assert_allclose(np.asarray(out), np.asarray(ref),
                               atol=5e-2, rtol=5e-2)
    print("KERNEL_OK")
</pallas_src>

<mosaic_0001>
module attributes {stable_mosaic.version = 11 : i64} {
  func.func @kernel(%arg0: i32, %arg1: memref<1x256x32xbf16, #tpu.memory_space<vmem>>, %arg2: memref<32x8xbf16, #tpu.memory_space<vmem>>, %arg3: memref<1x8xf32, #tpu.memory_space<vmem>>, %arg4: memref<16x2xf32, #tpu.memory_space<vmem>>, %arg5: memref<72x8xbf16, #tpu.memory_space<vmem>>, %arg6: memref<1x8xf32, #tpu.memory_space<vmem>>, %arg7: memref<8x32xbf16, #tpu.memory_space<vmem>>, %arg8: memref<1x32xf32, #tpu.memory_space<vmem>>, %arg9: memref<1x256x32xbf16, #tpu.memory_space<vmem>>, %arg10: memref<256x8xbf16, #tpu.memory_space<vmem>>, %arg11: memref<26x8xf32, #tpu.memory_space<vmem>>, %arg12: memref<16x72xbf16, #tpu.memory_space<vmem>>) attributes {dimension_semantics = [#tpu.dimension_semantics<parallel>], iteration_bounds = array<i64: 2>, scalar_prefetch = 0 : i64, scratch_operands = 3 : i64, tpu.core_type = #tpu.core_type<tc>, window_params = [{transform_indices = @transform_0, window_bounds = array<i64: 1, 256, 32>}, {pipeline_mode = #tpu.pipeline_mode<synchronous>, transform_indices = @transform_1, window_bounds = array<i64: 32, 8>}, {pipeline_mode = #tpu.pipeline_mode<synchronous>, transform_indices = @transform_2, window_bounds = array<i64: 1, 8>}, {pipeline_mode = #tpu.pipeline_mode<synchronous>, transform_indices = @transform_3, window_bounds = array<i64: 16, 2>}, {pipeline_mode = #tpu.pipeline_mode<synchronous>, transform_indices = @transform_4, window_bounds = array<i64: 72, 8>}, {pipeline_mode = #tpu.pipeline_mode<synchronous>, transform_indices = @transform_5, window_bounds = array<i64: 1, 8>}, {pipeline_mode = #tpu.pipeline_mode<synchronous>, transform_indices = @transform_6, window_bounds = array<i64: 8, 32>}, {pipeline_mode = #tpu.pipeline_mode<synchronous>, transform_indices = @transform_7, window_bounds = array<i64: 1, 32>}, {transform_indices = @transform_8, window_bounds = array<i64: 1, 256, 32>}]} {
    %c0 = arith.constant 0 : index
    %c0_0 = arith.constant 0 : index
    %c0_1 = arith.constant 0 : index
    %0 = vector.load %arg1[%c0, %c0_0, %c0_1] : memref<1x256x32xbf16, #tpu.memory_space<vmem>>, vector<1x256x32xbf16>
    %1 = vector.shape_cast %0 : vector<1x256x32xbf16> to vector<256x32xbf16>
    %c0_2 = arith.constant 0 : index
    %c0_3 = arith.constant 0 : index
    %2 = vector.load %arg2[%c0_2, %c0_3] : memref<32x8xbf16, #tpu.memory_space<vmem>>, vector<32x8xbf16>
    %cst = arith.constant dense<0.000000e+00> : vector<256x8xf32>
    %3 = tpu.matmul %1, %2, %cst {dimension_numbers = #tpu.dot_dimension_numbers<[1], [0], [0], [1], [0, 0, 1, 1], [], []>} : vector<256x32xbf16>, vector<32x8xbf16>, vector<256x8xf32> -> vector<256x8xf32>
    %c0_4 = arith.constant 0 : index
    %c0_5 = arith.constant 0 : index
    %4 = vector.load %arg3[%c0_4, %c0_5] : memref<1x8xf32, #tpu.memory_space<vmem>>, vector<1x8xf32>
    %5 = vector.broadcast %4 : vector<1x8xf32> to vector<256x8xf32>
    %6 = arith.addf %3, %5 : vector<256x8xf32>
    %7 = arith.truncf %6 : vector<256x8xf32> to vector<256x8xbf16>
    %c0_6 = arith.constant 0 : index
    %c0_7 = arith.constant 0 : index
    %8 = vector.load %arg10[%c0_6, %c0_7] : memref<256x8xbf16, #tpu.memory_space<vmem>>, vector<256x8xbf16>
    tpu.vector_store %arg10[%c0_6, %c0_7], %7 {strides = array<i32>} : memref<256x8xbf16, #tpu.memory_space<vmem>>, vector<256x8xbf16>,
    %c0_8 = arith.constant 0 : index
    %c0_9 = arith.constant 0 : index
    %9 = vector.load %arg10[%c0_8, %c0_9] : memref<256x8xbf16, #tpu.memory_space<vmem>>, vector<16x8xbf16>
    %c16 = arith.constant 16 : index
    %c0_10 = arith.constant 0 : index
    %10 = vector.load %arg10[%c16, %c0_10] : memref<256x8xbf16, #tpu.memory_space<vmem>>, vector<16x8xbf16>
    %c32 = arith.constant 32 : index
    %c0_11 = arith.constant 0 : index
    %11 = vector.load %arg10[%c32, %c0_11] : memref<256x8xbf16, #tpu.memory_space<vmem>>, vector<16x8xbf16>
    %c48 = arith.constant 48 : index
    %c0_12 = arith.constant 0 : index
    %12 = vector.load %arg10[%c48, %c0_12] : memref<256x8xbf16, #tpu.memory_space<vmem>>, vector<16x8xbf16>
    %c64 = arith.constant 64 : index
    %c0_13 = arith.constant 0 : index
    %13 = vector.load %arg10[%c64, %c0_13] : memref<256x8xbf16, #tpu.memory_space<vmem>>, vector<16x8xbf16>
    %c80 = arith.constant 80 : index
    %c0_14 = arith.constant 0 : index
    %14 = vector.load %arg10[%c80, %c0_14] : memref<256x8xbf16, #tpu.memory_space<vmem>>, vector<16x8xbf16>
    %c96 = arith.constant 96 : index
    %c0_15 = arith.constant 0 : index
    %15 = vector.load %arg10[%c96, %c0_15] : memref<256x8xbf16, #tpu.memory_space<vmem>>, vector<16x8xbf16>
    %c112 = arith.constant 112 : index
    %c0_16 = arith.constant 0 : index
    %16 = vector.load %arg10[%c112, %c0_16] : memref<256x8xbf16, #tpu.memory_space<vmem>>, vector<16x8xbf16>
    %c128 = arith.constant 128 : index
    %c0_17 = arith.constant 0 : index
    %17 = vector.load %arg10[%c128, %c0_17] : memref<256x8xbf16, #tpu.memory_space<vmem>>, vector<16x8xbf16>
    %c144 = arith.constant 144 : index
    %c0_18 = arith.constant 0 : index
    %18 = vector.load %arg10[%c144, %c0_18] : memref<256x8xbf16, #tpu.memory_space<vmem>>, vector<16x8xbf16>
    %c160 = arith.constant 160 : index
    %c0_19 = arith.constant 0 : index
    %19 = vector.load %arg10[%c160, %c0_19] : memref<256x8xbf16, #tpu.memory_space<vmem>>, vector<16x8xbf16>
    %c176 = arith.constant 176 : index
    %c0_20 = arith.constant 0 : index
    %20 = vector.load %arg10[%c176, %c0_20] : memref<256x8xbf16, #tpu.memory_space<vmem>>, vector<16x8xbf16>
    %c192 = arith.constant 192 : index
    %c0_21 = arith.constant 0 : index
    %21 = vector.load %arg10[%c192, %c0_21] : memref<256x8xbf16, #tpu.memory_space<vmem>>, vector<16x8xbf16>
    %c208 = arith.constant 208 : index
    %c0_22 = arith.constant 0 : index
    %22 = vector.load %arg10[%c208, %c0_22] : memref<256x8xbf16, #tpu.memory_space<vmem>>, vector<16x8xbf16>
    %c224 = arith.constant 224 : index
    %c0_23 = arith.constant 0 : index
    %23 = vector.load %arg10[%c224, %c0_23] : memref<256x8xbf16, #tpu.memory_space<vmem>>, vector<16x8xbf16>
    %c240 = arith.constant 240 : index
    %c0_24 = arith.constant 0 : index
    %24 = vector.load %arg10[%c240, %c0_24] : memref<256x8xbf16, #tpu.memory_space<vmem>>, vector<16x8xbf16>
    %25 = arith.maximumf %9, %10 : vector<16x8xbf16>
    %26 = arith.maximumf %11, %12 : vector<16x8xbf16>
    %27 = arith.maximumf %13, %14 : vector<16x8xbf16>
    %28 = arith.maximumf %15, %16 : vector<16x8xbf16>
    %29 = arith.maximumf %17, %18 : vector<16x8xbf16>
    %30 = arith.maximumf %19, %20 : vector<16x8xbf16>
    %31 = arith.maximumf %21, %22 : vector<16x8xbf16>
    %32 = arith.maximumf %23, %24 : vector<16x8xbf16>
    %33 = arith.maximumf %25, %26 : vector<16x8xbf16>
    %34 = arith.maximumf %27, %28 : vector<16x8xbf16>
    %35 = arith.maximumf %29, %30 : vector<16x8xbf16>
    %36 = arith.maximumf %31, %32 : vector<16x8xbf16>
    %37 = arith.maximumf %33, %34 : vector<16x8xbf16>
    %38 = arith.maximumf %35, %36 : vector<16x8xbf16>
    %39 = arith.maximumf %37, %38 : vector<16x8xbf16>
    %c0_25 = arith.constant 0 : index
    %c0_26 = arith.constant 0 : index
    %40 = vector.load %arg4[%c0_25, %c0_26] : memref<16x2xf32, #tpu.memory_space<vmem>>, vector<16x1xf32>
    %c0_27 = arith.constant 0 : index
    %c1 = arith.constant 1 : index
    %41 = vector.load %arg4[%c0_27, %c1] : memref<16x2xf32, #tpu.memory_space<vmem>>, vector<16x1xf32>
    %cst_28 = arith.constant 0.000000e+00 : f32
    %42 = vector.broadcast %cst_28 : f32 to vector<5x8xf32>
    %c0_29 = arith.constant 0 : index
    %c0_30 = arith.constant 0 : index
    %43 = vector.load %arg11[%c0_29, %c0_30] : memref<26x8xf32, #tpu.memory_space<vmem>>, vector<5x8xf32>
    tpu.vector_store %arg11[%c0_29, %c0_30], %42 {strides = array<i32>} : memref<26x8xf32, #tpu.memory_space<vmem>>, vector<5x8xf32>,
    %cst_31 = arith.constant 0.000000e+00 : f32
    %44 = vector.broadcast %cst_31 : f32 to vector<5x8xf32>
    %c21 = arith.constant 21 : index
    %c0_32 = arith.constant 0 : index
    %45 = vector.load %arg11[%c21, %c0_32] : memref<26x8xf32, #tpu.memory_space<vmem>>, vector<5x8xf32>
    tpu.vector_store %arg11[%c21, %c0_32], %44 {strides = array<i32>} : memref<26x8xf32, #tpu.memory_space<vmem>>, vector<5x8xf32>,
    %46 = arith.extf %39 : vector<16x8xbf16> to vector<16x8xf32>
    %c5 = arith.constant 5 : index
    %c0_33 = arith.constant 0 : index
    %47 = vector.load %arg11[%c5, %c0_33] : memref<26x8xf32, #tpu.memory_space<vmem>>, vector<16x8xf32>
    tpu.vector_store %arg11[%c5, %c0_33], %46 {strides = array<i32>} : memref<26x8xf32, #tpu.memory_space<vmem>>, vector<16x8xf32>,
    %c0_34 = arith.constant 0 : index
    %c0_35 = arith.constant 0 : index
    %48 = vector.load %arg11[%c0_34, %c0_35] : memref<26x8xf32, #tpu.memory_space<vmem>>, vector<16x8xf32>
    %49 = vector.broadcast %40 : vector<16x1xf32> to vector<16x8xf32>
    %50 = arith.mulf %48, %49 : vector<16x8xf32>
    %51 = arith.truncf %50 : vector<16x8xf32> to vector<16x8xbf16>
    %c0_36 = arith.constant 0 : index
    %c0_37 = arith.constant 0 : index
    %52 = vector.load %arg12[%c0_36, %c0_37] : memref<16x72xbf16, #tpu.memory_space<vmem>>, vector<16x8xbf16>
    tpu.vector_store %arg12[%c0_36, %c0_37], %51 {strides = array<i32>} : memref<16x72xbf16, #tpu.memory_space<vmem>>, vector<16x8xbf16>,
    %c1_38 = arith.constant 1 : index
    %c0_39 = arith.constant 0 : index
    %53 = vector.load %arg11[%c1_38, %c0_39] : memref<26x8xf32, #tpu.memory_space<vmem>>, vector<16x8xf32>
    %54 = arith.truncf %53 : vector<16x8xf32> to vector<16x8xbf16>
    %c0_40 = arith.constant 0 : index
    %c8 = arith.constant 8 : index
    %55 = vector.load %arg12[%c0_40, %c8] : memref<16x72xbf16, #tpu.memory_space<vmem>>, vector<16x8xbf16>
    tpu.vector_store %arg12[%c0_40, %c8], %54 {strides = array<i32>} : memref<16x72xbf16, #tpu.memory_space<vmem>>, vector<16x8xbf16>,
    %c2 = arith.constant 2 : index
    %c0_41 = arith.constant 0 : index
    %56 = vector.load %arg11[%c2, %c0_41] : memref<26x8xf32, #tpu.memory_space<vmem>>, vector<16x8xf32>
    %57 = vector.broadcast %41 : vector<16x1xf32> to vector<16x8xf32>
    %58 = arith.mulf %56, %57 : vector<16x8xf32>
    %59 = arith.truncf %58 : vector<16x8xf32> to vector<16x8xbf16>
    %c0_42 = arith.constant 0 : index
    %c16_43 = arith.constant 16 : index
    %60 = vector.load %arg12[%c0_42, %c16_43] : memref<16x72xbf16, #tpu.memory_space<vmem>>, vector<16x8xbf16>
    tpu.vector_store %arg12[%c0_42, %c16_43], %59 {strides = array<i32>} : memref<16x72xbf16, #tpu.memory_space<vmem>>, vector<16x8xbf16>,
    %c4 = arith.constant 4 : index
    %c0_44 = arith.constant 0 : index
    %61 = vector.load %arg11[%c4, %c0_44] : memref<26x8xf32, #tpu.memory_space<vmem>>, vector<16x8xf32>
    %62 = vector.broadcast %40 : vector<16x1xf32> to vector<16x8xf32>
    %63 = arith.mulf %61, %62 : vector<16x8xf32>
    %64 = arith.truncf %63 : vector<16x8xf32> to vector<16x8xbf16>
    %c0_45 = arith.constant 0 : index
    %c24 = arith.constant 24 : index
    %65 = vector.load %arg12[%c0_45, %c24] : memref<16x72xbf16, #tpu.memory_space<vmem>>, vector<16x8xbf16>
    tpu.vector_store %arg12[%c0_45, %c24], %64 {strides = array<i32>} : memref<16x72xbf16, #tpu.memory_space<vmem>>, vector<16x8xbf16>,
    %c5_46 = arith.constant 5 : index
    %c0_47 = arith.constant 0 : index
    %66 = vector.load %arg11[%c5_46, %c0_47] : memref<26x8xf32, #tpu.memory_space<vmem>>, vector<16x8xf32>
    %67 = arith.truncf %66 : vector<16x8xf32> to vector<16x8xbf16>
    %c0_48 = arith.constant 0 : index
    %c32_49 = arith.constant 32 : index
    %68 = vector.load %arg12[%c0_48, %c32_49] : memref<16x72xbf16, #tpu.memory_space<vmem>>, vector<16x8xbf16>
    tpu.vector_store %arg12[%c0_48, %c32_49], %67 {strides = array<i32>} : memref<16x72xbf16, #tpu.memory_space<vmem>>, vector<16x8xbf16>,
    %c6 = arith.constant 6 : index
    %c0_50 = arith.constant 0 : index
    %69 = vector.load %arg11[%c6, %c0_50] : memref<26x8xf32, #tpu.memory_space<vmem>>, vector<16x8xf32>
    %70 = vector.broadcast %41 : vector<16x1xf32> to vector<16x8xf32>
    %71 = arith.mulf %69, %70 : vector<16x8xf32>
    %72 = arith.truncf %71 : vector<16x8xf32> to vector<16x8xbf16>
    %c0_51 = arith.constant 0 : index
    %c40 = arith.constant 40 : index
    %73 = vector.load %arg12[%c0_51, %c40] : memref<16x72xbf16, #tpu.memory_space<vmem>>, vector<16x8xbf16>
    tpu.vector_store %arg12[%c0_51, %c40], %72 {strides = array<i32>} : memref<16x72xbf16, #tpu.memory_space<vmem>>, vector<16x8xbf16>,
    %c8_52 = arith.constant 8 : index
    %c0_53 = arith.constant 0 : index
    %74 = vector.load %arg11[%c8_52, %c0_53] : memref<26x8xf32, #tpu.memory_space<vmem>>, vector<16x8xf32>
    %75 = vector.broadcast %40 : vector<16x1xf32> to vector<16x8xf32>
    %76 = arith.mulf %74, %75 : vector<16x8xf32>
    %77 = arith.truncf %76 : vector<16x8xf32> to vector<16x8xbf16>
    %c0_54 = arith.constant 0 : index
    %c48_55 = arith.constant 48 : index
    %78 = vector.load %arg12[%c0_54, %c48_55] : memref<16x72xbf16, #tpu.memory_space<vmem>>, vector<16x8xbf16>
    tpu.vector_store %arg12[%c0_54, %c48_55], %77 {strides = array<i32>} : memref<16x72xbf16, #tpu.memory_space<vmem>>, vector<16x8xbf16>,
    %c9 = arith.constant 9 : index
    %c0_56 = arith.constant 0 : index
    %79 = vector.load %arg11[%c9, %c0_56] : memref<26x8xf32, #tpu.memory_space<vmem>>, vector<16x8xf32>
    %80 = arith.truncf %79 : vector<16x8xf32> to vector<16x8xbf16>
    %c0_57 = arith.constant 0 : index
    %c56 = arith.constant 56 : index
    %81 = vector.load %arg12[%c0_57, %c56] : memref<16x72xbf16, #tpu.memory_space<vmem>>, vector<16x8xbf16>
    tpu.vector_store %arg12[%c0_57, %c56], %80 {strides = array<i32>} : memref<16x72xbf16, #tpu.memory_space<vmem>>, vector<16x8xbf16>,
    %c10 = arith.constant 10 : index
    %c0_58 = arith.constant 0 : index
    %82 = vector.load %arg11[%c10, %c0_58] : memref<26x8xf32, #tpu.memory_space<vmem>>, vector<16x8xf32>
    %83 = vector.broadcast %41 : vector<16x1xf32> to vector<16x8xf32>
    %84 = arith.mulf %82, %83 : vector<16x8xf32>
    %85 = arith.truncf %84 : vector<16x8xf32> to vector<16x8xbf16>
    %c0_59 = arith.constant 0 : index
    %c64_60 = arith.constant 64 : index
    %86 = vector.load %arg12[%c0_59, %c64_60] : memref<16x72xbf16, #tpu.memory_space<vmem>>, vector<16x8xbf16>
    tpu.vector_store %arg12[%c0_59, %c64_60], %85 {strides = array<i32>} : memref<16x72xbf16, #tpu.memory_space<vmem>>, vector<16x8xbf16>,
    %c0_61 = arith.constant 0 : index
    %c0_62 = arith.constant 0 : index
    %87 = vector.load %arg12[%c0_61, %c0_62] : memref<16x72xbf16, #tpu.memory_space<vmem>>, vector<16x72xbf16>
    %c0_63 = arith.constant 0 : index
    %c0_64 = arith.constant 0 : index
    %88 = vector.load %arg5[%c0_63, %c0_64] : memref<72x8xbf16, #tpu.memory_space<vmem>>, vector<72x8xbf16>
    %cst_65 = arith.constant dense<0.000000e+00> : vector<16x8xf32>
    %89 = tpu.matmul %87, %88, %cst_65 {dimension_numbers = #tpu.dot_dimension_numbers<[1], [0], [0], [1], [0, 0, 1, 1], [], []>} : vector<16x72xbf16>, vector<72x8xbf16>, vector<16x8xf32> -> vector<16x8xf32>
    %c0_66 = arith.constant 0 : index
    %c0_67 = arith.constant 0 : index
    %90 = vector.load %arg6[%c0_66, %c0_67] : memref<1x8xf32, #tpu.memory_space<vmem>>, vector<1x8xf32>
    %91 = vector.broadcast %90 : vector<1x8xf32> to vector<16x8xf32>
    %92 = arith.addf %89, %91 : vector<16x8xf32>
    %93 = vector.extract_strided_slice %92 {offsets = [0, 0], sizes = [4, 8], strides = [1, 1]} : vector<16x8xf32> to vector<4x8xf32>
    %c1_68 = arith.constant 1 : index
    %c0_69 = arith.constant 0 : index
    %94 = vector.load %arg11[%c1_68, %c0_69] : memref<26x8xf32, #tpu.memory_space<vmem>>, vector<4x8xf32>
    tpu.vector_store %arg11[%c1_68, %c0_69], %93 {strides = array<i32>} : memref<26x8xf32, #tpu.memory_space<vmem>>, vector<4x8xf32>,
    %c5_70 = arith.constant 5 : index
    %c0_71 = arith.constant 0 : index
    %95 = vector.load %arg11[%c5_70, %c0_71] : memref<26x8xf32, #tpu.memory_space<vmem>>, vector<16x8xf32>
    tpu.vector_store %arg11[%c5_70, %c0_71], %92 {strides = array<i32>} : memref<26x8xf32, #tpu.memory_space<vmem>>, vector<16x8xf32>,
    %96 = vector.extract_strided_slice %92 {offsets = [12, 0], sizes = [4, 8], strides = [1, 1]} : vector<16x8xf32> to vector<4x8xf32>
    %c21_72 = arith.constant 21 : index
    %c0_73 = arith.constant 0 : index
    %97 = vector.load %arg11[%c21_72, %c0_73] : memref<26x8xf32, #tpu.memory_space<vmem>>, vector<4x8xf32>
    tpu.vector_store %arg11[%c21_72, %c0_73], %96 {strides = array<i32>} : memref<26x8xf32, #tpu.memory_space<vmem>>, vector<4x8xf32>,
    %cst_74 = arith.constant 1.000000e+00 : f32
    %98 = vector.broadcast %cst_74 : f32 to vector<16x1xf32>
    %99 = arith.subf %98, %40 : vector<16x1xf32>
    %cst_75 = arith.constant 1.000000e+00 : f32
    %100 = vector.broadcast %cst_75 : f32 to vector<16x1xf32>
    %101 = arith.subf %100, %41 : vector<16x1xf32>
    %c1_76 = arith.constant 1 : index
    %c0_77 = arith.constant 0 : index
    %102 = vector.load %arg11[%c1_76, %c0_77] : memref<26x8xf32, #tpu.memory_space<vmem>>, vector<16x8xf32>
    %c0_78 = arith.constant 0 : index
    %c0_79 = arith.constant 0 : index
    %103 = vector.load %arg11[%c0_78, %c0_79] : memref<26x8xf32, #tpu.memory_space<vmem>>, vector<16x8xf32>
    %104 = vector.broadcast %40 : vector<16x1xf32> to vector<16x8xf32>
    %105 = arith.mulf %104, %103 : vector<16x8xf32>
    %106 = vector.broadcast %99 : vector<16x1xf32> to vector<16x8xf32>
    %107 = arith.mulf %106, %102 : vector<16x8xf32>
    %108 = arith.addf %105, %107 : vector<16x8xf32>
    %c2_80 = arith.constant 2 : index
    %c0_81 = arith.constant 0 : index
    %109 = vector.load %arg11[%c2_80, %c0_81] : memref<26x8xf32, #tpu.memory_space<vmem>>, vector<16x8xf32>
    %110 = vector.broadcast %41 : vector<16x1xf32> to vector<16x8xf32>
    %111 = arith.mulf %110, %109 : vector<16x8xf32>
    %112 = vector.broadcast %101 : vector<16x1xf32> to vector<16x8xf32>
    %113 = arith.mulf %112, %102 : vector<16x8xf32>
    %114 = arith.addf %111, %113 : vector<16x8xf32>
    %c5_82 = arith.constant 5 : index
    %c0_83 = arith.constant 0 : index
    %115 = vector.load %arg11[%c5_82, %c0_83] : memref<26x8xf32, #tpu.memory_space<vmem>>, vector<16x8xf32>
    %c4_84 = arith.constant 4 : index
    %c0_85 = arith.constant 0 : index
    %116 = vector.load %arg11[%c4_84, %c0_85] : memref<26x8xf32, #tpu.memory_space<vmem>>, vector<16x8xf32>
    %117 = vector.broadcast %40 : vector<16x1xf32> to vector<16x8xf32>
    %118 = arith.mulf %117, %116 : vector<16x8xf32>
    %119 = vector.broadcast %99 : vector<16x1xf32> to vector<16x8xf32>
    %120 = arith.mulf %119, %115 : vector<16x8xf32>
    %121 = arith.addf %118, %120 : vector<16x8xf32>
    %c6_86 = arith.constant 6 : index
    %c0_87 = arith.constant 0 : index
    %122 = vector.load %arg11[%c6_86, %c0_87] : memref<26x8xf32, #tpu.memory_space<vmem>>, vector<16x8xf32>
    %123 = vector.broadcast %41 : vector<16x1xf32> to vector<16x8xf32>
    %124 = arith.mulf %123, %122 : vector<16x8xf32>
    %125 = vector.broadcast %101 : vector<16x1xf32> to vector<16x8xf32>
    %126 = arith.mulf %125, %115 : vector<16x8xf32>
    %127 = arith.addf %124, %126 : vector<16x8xf32>
    %c9_88 = arith.constant 9 : index
    %c0_89 = arith.constant 0 : index
    %128 = vector.load %arg11[%c9_88, %c0_89] : memref<26x8xf32, #tpu.memory_space<vmem>>, vector<16x8xf32>
    %c8_90 = arith.constant 8 : index
    %c0_91 = arith.constant 0 : index
    %129 = vector.load %arg11[%c8_90, %c0_91] : memref<26x8xf32, #tpu.memory_space<vmem>>, vector<16x8xf32>
    %130 = vector.broadcast %40 : vector<16x1xf32> to vector<16x8xf32>
    %131 = arith.mulf %130, %129 : vector<16x8xf32>
    %132 = vector.broadcast %99 : vector<16x1xf32> to vector<16x8xf32>
    %133 = arith.mulf %132, %128 : vector<16x8xf32>
    %134 = arith.addf %131, %133 : vector<16x8xf32>
    %c10_92 = arith.constant 10 : index
    %c0_93 = arith.constant 0 : index
    %135 = vector.load %arg11[%c10_92, %c0_93] : memref<26x8xf32, #tpu.memory_space<vmem>>, vector<16x8xf32>
    %136 = vector.broadcast %41 : vector<16x1xf32> to vector<16x8xf32>
    %137 = arith.mulf %136, %135 : vector<16x8xf32>
    %138 = vector.broadcast %101 : vector<16x1xf32> to vector<16x8xf32>
    %139 = arith.mulf %138, %128 : vector<16x8xf32>
    %140 = arith.addf %137, %139 : vector<16x8xf32>
    %cst_94 = arith.constant 3.906250e-01 : f32
    %141 = vector.broadcast %cst_94 : f32 to vector<16x8xf32>
    %142 = arith.mulf %141, %115 : vector<16x8xf32>
    %cst_95 = arith.constant 2.343750e-01 : f32
    %143 = vector.broadcast %cst_95 : f32 to vector<16x8xf32>
    %144 = arith.mulf %143, %121 : vector<16x8xf32>
    %145 = arith.addf %142, %144 : vector<16x8xf32>
    %cst_96 = arith.constant 2.343750e-01 : f32
    %146 = vector.broadcast %cst_96 : f32 to vector<16x8xf32>
    %147 = arith.mulf %146, %102 : vector<16x8xf32>
    %148 = arith.addf %145, %147 : vector<16x8xf32>
    %cst_97 = arith.constant 1.406250e-01 : f32
    %149 = vector.broadcast %cst_97 : f32 to vector<16x8xf32>
    %150 = arith.mulf %149, %108 : vector<16x8xf32>
    %151 = arith.addf %148, %150 : vector<16x8xf32>
    %c0_98 = arith.constant 0 : index
    %c0_99 = arith.constant 0 : index
    %152 = vector.load %arg10[%c0_98, %c0_99] : memref<256x8xbf16, #tpu.memory_space<vmem>>, vector<16x8xbf16>
    %153 = arith.extf %152 : vector<16x8xbf16> to vector<16x8xf32>
    %154 = arith.addf %151, %153 : vector<16x8xf32>
    %155 = arith.truncf %154 : vector<16x8xf32> to vector<16x8xbf16>
    %c0_100 = arith.constant 0 : index
    %c0_101 = arith.constant 0 : index
    %156 = vector.load %arg7[%c0_100, %c0_101] : memref<8x32xbf16, #tpu.memory_space<vmem>>, vector<8x32xbf16>
    %cst_102 = arith.constant dense<0.000000e+00> : vector<16x32xf32>
    %157 = tpu.matmul %155, %156, %cst_102 {dimension_numbers = #tpu.dot_dimension_numbers<[1], [0], [0], [1], [0, 0, 1, 1], [], []>} : vector<16x8xbf16>, vector<8x32xbf16>, vector<16x32xf32> -> vector<16x32xf32>
    %c0_103 = arith.constant 0 : index
    %c0_104 = arith.constant 0 : index
    %158 = vector.load %arg8[%c0_103, %c0_104] : memref<1x32xf32, #tpu.memory_space<vmem>>, vector<1x32xf32>
    %159 = vector.broadcast %158 : vector<1x32xf32> to vector<16x32xf32>
    %160 = arith.addf %157, %159 : vector<16x32xf32>
    %c0_105 = arith.constant 0 : index
    %c0_106 = arith.constant 0 : index
    %c0_107 = arith.constant 0 : index
    %161 = vector.load %arg1[%c0_105, %c0_106, %c0_107] : memref<1x256x32xbf16, #tpu.memory_space<vmem>>, vector<1x16x32xbf16>
    %162 = vector.shape_cast %161 : vector<1x16x32xbf16> to vector<16x32xbf16>
    %163 = arith.negf %160 : vector<16x32xf32>
    %164 = math.exp %163 : vector<16x32xf32>
    %cst_108 = arith.constant 1.000000e+00 : f32
    %165 = vector.broadcast %cst_108 : f32 to vector<16x32xf32>
    %166 = arith.addf %165, %164 : vector<16x32xf32>
    %167 = arith.divf %165, %166 : vector<16x32xf32>
    %168 = arith.extf %162 : vector<16x32xbf16> to vector<16x32xf32>
    %169 = arith.mulf %168, %167 : vector<16x32xf32>
    %170 = arith.truncf %169 : vector<16x32xf32> to vector<16x32xbf16>
    %c0_109 = arith.constant 0 : index
    %c0_110 = arith.constant 0 : index
    %c0_111 = arith.constant 0 : index
    %171 = vector.load %arg9[%c0_109, %c0_110, %c0_111] : memref<1x256x32xbf16, #tpu.memory_space<vmem>>, vector<1x16x32xbf16>
    %172 = vector.shape_cast %171 : vector<1x16x32xbf16> to vector<16x32xbf16>
    %173 = vector.shape_cast %170 : vector<16x32xbf16> to vector<1x16x32xbf16>
    tpu.vector_store %arg9[%c0_109, %c0_110, %c0_111], %173 {strides = array<i32>} : memref<1x256x32xbf16, #tpu.memory_space<vmem>>, vector<1x16x32xbf16>,
    %cst_112 = arith.constant 5.468750e-01 : f32
    %174 = vector.broadcast %cst_112 : f32 to vector<16x8xf32>
    %175 = arith.mulf %174, %115 : vector<16x8xf32>
    %cst_113 = arith.constant 7.812500e-02 : f32
    %176 = vector.broadcast %cst_113 : f32 to vector<16x8xf32>
    %177 = arith.mulf %176, %121 : vector<16x8xf32>
    %178 = arith.addf %175, %177 : vector<16x8xf32>
    %cst_114 = arith.constant 3.281250e-01 : f32
    %179 = vector.broadcast %cst_114 : f32 to vector<16x8xf32>
    %180 = arith.mulf %179, %102 : vector<16x8xf32>
    %181 = arith.addf %178, %180 : vector<16x8xf32>
    %cst_115 = arith.constant 4.687500e-02 : f32
    %182 = vector.broadcast %cst_115 : f32 to vector<16x8xf32>
    %183 = arith.mulf %182, %108 : vector<16x8xf32>
    %184 = arith.addf %181, %183 : vector<16x8xf32>
    %c16_116 = arith.constant 16 : index
    %c0_117 = arith.constant 0 : index
    %185 = vector.load %arg10[%c16_116, %c0_117] : memref<256x8xbf16, #tpu.memory_space<vmem>>, vector<16x8xbf16>
    %186 = arith.extf %185 : vector<16x8xbf16> to vector<16x8xf32>
    %187 = arith.addf %184, %186 : vector<16x8xf32>
    %188 = arith.truncf %187 : vector<16x8xf32> to vector<16x8xbf16>
    %c0_118 = arith.constant 0 : index
    %c0_119 = arith.constant 0 : index
    %189 = vector.load %arg7[%c0_118, %c0_119] : memref<8x32xbf16, #tpu.memory_space<vmem>>, vector<8x32xbf16>
    %cst_120 = arith.constant dense<0.000000e+00> : vector<16x32xf32>
    %190 = tpu.matmul %188, %189, %cst_120 {dimension_numbers = #tpu.dot_dimension_numbers<[1], [0], [0], [1], [0, 0, 1, 1], [], []>} : vector<16x8xbf16>, vector<8x32xbf16>, vector<16x32xf32> -> vector<16x32xf32>
    %c0_121 = arith.constant 0 : index
    %c0_122 = arith.constant 0 : index
    %191 = vector.load %arg8[%c0_121, %c0_122] : memref<1x32xf32, #tpu.memory_space<vmem>>, vector<1x32xf32>
    %192 = vector.broadcast %191 : vector<1x32xf32> to vector<16x32xf32>
    %193 = arith.addf %190, %192 : vector<16x32xf32>
    %c0_123 = arith.constant 0 : index
    %c16_124 = arith.constant 16 : index
    %c0_125 = arith.constant 0 : index
    %194 = vector.load %arg1[%c0_123, %c16_124, %c0_125] : memref<1x256x32xbf16, #tpu.memory_space<vmem>>, vector<1x16x32xbf16>
    %195 = vector.shape_cast %194 : vector<1x16x32xbf16> to vector<16x32xbf16>
    %196 = arith.negf %193 : vector<16x32xf32>
    %197 = math.exp %196 : vector<16x32xf32>
    %cst_126 = arith.constant 1.000000e+00 : f32
    %198 = vector.broadcast %cst_126 : f32 to vector<16x32xf32>
    %199 = arith.addf %198, %197 : vector<16x32xf32>
    %200 = arith.divf %198, %199 : vector<16x32xf32>
    %201 = arith.extf %195 : vector<16x32xbf16> to vector<16x32xf32>
    %202 = arith.mulf %201, %200 : vector<16x32xf32>
    %203 = arith.truncf %202 : vector<16x32xf32> to vector<16x32xbf16>
    %c0_127 = arith.constant 0 : index
    %c16_128 = arith.constant 16 : index
    %c0_129 = arith.constant 0 : index
    %204 = vector.load %arg9[%c0_127, %c16_128, %c0_129] : memref<1x256x32xbf16, #tpu.memory_space<vmem>>, vector<1x16x32xbf16>
    %205 = vector.shape_cast %204 : vector<1x16x32xbf16> to vector<16x32xbf16>
    %206 = vector.shape_cast %203 : vector<16x32xbf16> to vector<1x16x32xbf16>
    tpu.vector_store %arg9[%c0_127, %c16_128, %c0_129], %206 {strides = array<i32>} : memref<1x256x32xbf16, #tpu.memory_space<vmem>>, vector<1x16x32xbf16>,
    %cst_130 = arith.constant 5.468750e-01 : f32
    %207 = vector.broadcast %cst_130 : f32 to vector<16x8xf32>
    %208 = arith.mulf %207, %115 : vector<16x8xf32>
    %cst_131 = arith.constant 7.812500e-02 : f32
    %209 = vector.broadcast %cst_131 : f32 to vector<16x8xf32>
    %210 = arith.mulf %209, %127 : vector<16x8xf32>
    %211 = arith.addf %208, %210 : vector<16x8xf32>
    %cst_132 = arith.constant 3.281250e-01 : f32
    %212 = vector.broadcast %cst_132 : f32 to vector<16x8xf32>
    %213 = arith.mulf %212, %102 : vector<16x8xf32>
    %214 = arith.addf %211, %213 : vector<16x8xf32>
    %cst_133 = arith.constant 4.687500e-02 : f32
    %215 = vector.broadcast %cst_133 : f32 to vector<16x8xf32>
    %216 = arith.mulf %215, %114 : vector<16x8xf32>
    %217 = arith.addf %214, %216 : vector<16x8xf32>
    %c32_134 = arith.constant 32 : index
    %c0_135 = arith.constant 0 : index
    %218 = vector.load %arg10[%c32_134, %c0_135] : memref<256x8xbf16, #tpu.memory_space<vmem>>, vector<16x8xbf16>
    %219 = arith.extf %218 : vector<16x8xbf16> to vector<16x8xf32>
    %220 = arith.addf %217, %219 : vector<16x8xf32>
    %221 = arith.truncf %220 : vector<16x8xf32> to vector<16x8xbf16>
    %c0_136 = arith.constant 0 : index
    %c0_137 = arith.constant 0 : index
    %222 = vector.load %arg7[%c0_136, %c0_137] : memref<8x32xbf16, #tpu.memory_space<vmem>>, vector<8x32xbf16>
    %cst_138 = arith.constant dense<0.000000e+00> : vector<16x32xf32>
    %223 = tpu.matmul %221, %222, %cst_138 {dimension_numbers = #tpu.dot_dimension_numbers<[1], [0], [0], [1], [0, 0, 1, 1], [], []>} : vector<16x8xbf16>, vector<8x32xbf16>, vector<16x32xf32> -> vector<16x32xf32>
    %c0_139 = arith.constant 0 : index
    %c0_140 = arith.constant 0 : index
    %224 = vector.load %arg8[%c0_139, %c0_140] : memref<1x32xf32, #tpu.memory_space<vmem>>, vector<1x32xf32>
    %225 = vector.broadcast %224 : vector<1x32xf32> to vector<16x32xf32>
    %226 = arith.addf %223, %225 : vector<16x32xf32>
    %c0_141 = arith.constant 0 : index
    %c32_142 = arith.constant 32 : index
    %c0_143 = arith.constant 0 : index
    %227 = vector.load %arg1[%c0_141, %c32_142, %c0_143] : memref<1x256x32xbf16, #tpu.memory_space<vmem>>, vector<1x16x32xbf16>
    %228 = vector.shape_cast %227 : vector<1x16x32xbf16> to vector<16x32xbf16>
    %229 = arith.negf %226 : vector<16x32xf32>
    %230 = math.exp %229 : vector<16x32xf32>
    %cst_144 = arith.constant 1.000000e+00 : f32
    %231 = vector.broadcast %cst_144 : f32 to vector<16x32xf32>
    %232 = arith.addf %231, %230 : vector<16x32xf32>
    %233 = arith.divf %231, %232 : vector<16x32xf32>
    %234 = arith.extf %228 : vector<16x32xbf16> to vector<16x32xf32>
    %235 = arith.mulf %234, %233 : vector<16x32xf32>
    %236 = arith.truncf %235 : vector<16x32xf32> to vector<16x32xbf16>
    %c0_145 = arith.constant 0 : index
    %c32_146 = arith.constant 32 : index
    %c0_147 = arith.constant 0 : index
    %237 = vector.load %arg9[%c0_145, %c32_146, %c0_147] : memref<1x256x32xbf16, #tpu.memory_space<vmem>>, vector<1x16x32xbf16>
    %238 = vector.shape_cast %237 : vector<1x16x32xbf16> to vector<16x32xbf16>
    %239 = vector.shape_cast %236 : vector<16x32xbf16> to vector<1x16x32xbf16>
    tpu.vector_store %arg9[%c0_145, %c32_146, %c0_147], %239 {strides = array<i32>} : memref<1x256x32xbf16, #tpu.memory_space<vmem>>, vector<1x16x32xbf16>,
    %cst_148 = arith.constant 3.906250e-01 : f32
    %240 = vector.broadcast %cst_148 : f32 to vector<16x8xf32>
    %241 = arith.mulf %240, %115 : vector<16x8xf32>
    %cst_149 = arith.constant 2.343750e-01 : f32
    %242 = vector.broadcast %cst_149 : f32 to vector<16x8xf32>
    %243 = arith.mulf %242, %127 : vector<16x8xf32>
    %244 = arith.addf %241, %243 : vector<16x8xf32>
    %cst_150 = arith.constant 2.343750e-01 : f32
    %245 = vector.broadcast %cst_150 : f32 to vector<16x8xf32>
    %246 = arith.mulf %245, %102 : vector<16x8xf32>
    %247 = arith.addf %244, %246 : vector<16x8xf32>
    %cst_151 = arith.constant 1.406250e-01 : f32
    %248 = vector.broadcast %cst_151 : f32 to vector<16x8xf32>
    %249 = arith.mulf %248, %114 : vector<16x8xf32>
    %250 = arith.addf %247, %249 : vector<16x8xf32>
    %c48_152 = arith.constant 48 : index
    %c0_153 = arith.constant 0 : index
    %251 = vector.load %arg10[%c48_152, %c0_153] : memref<256x8xbf16, #tpu.memory_space<vmem>>, vector<16x8xbf16>
    %252 = arith.extf %251 : vector<16x8xbf16> to vector<16x8xf32>
    %253 = arith.addf %250, %252 : vector<16x8xf32>
    %254 = arith.truncf %253 : vector<16x8xf32> to vector<16x8xbf16>
    %c0_154 = arith.constant 0 : index
    %c0_155 = arith.constant 0 : index
    %255 = vector.load %arg7[%c0_154, %c0_155] : memref<8x32xbf16, #tpu.memory_space<vmem>>, vector<8x32xbf16>
    %cst_156 = arith.constant dense<0.000000e+00> : vector<16x32xf32>
    %256 = tpu.matmul %254, %255, %cst_156 {dimension_numbers = #tpu.dot_dimension_numbers<[1], [0], [0], [1], [0, 0, 1, 1], [], []>} : vector<16x8xbf16>, vector<8x32xbf16>, vector<16x32xf32> -> vector<16x32xf32>
    %c0_157 = arith.constant 0 : index
    %c0_158 = arith.constant 0 : index
    %257 = vector.load %arg8[%c0_157, %c0_158] : memref<1x32xf32, #tpu.memory_space<vmem>>, vector<1x32xf32>
    %258 = vector.broadcast %257 : vector<1x32xf32> to vector<16x32xf32>
    %259 = arith.addf %256, %258 : vector<16x32xf32>
    %c0_159 = arith.constant 0 : index
    %c48_160 = arith.constant 48 : index
    %c0_161 = arith.constant 0 : index
    %260 = vector.load %arg1[%c0_159, %c48_160, %c0_161] : memref<1x256x32xbf16, #tpu.memory_space<vmem>>, vector<1x16x32xbf16>
    %261 = vector.shape_cast %260 : vector<1x16x32xbf16> to vector<16x32xbf16>
    %262 = arith.negf %259 : vector<16x32xf32>
    %263 = math.exp %262 : vector<16x32xf32>
    %cst_162 = arith.constant 1.000000e+00 : f32
    %264 = vector.broadcast %cst_162 : f32 to vector<16x32xf32>
    %265 = arith.addf %264, %263 : vector<16x32xf32>
    %266 = arith.divf %264, %265 : vector<16x32xf32>
    %267 = arith.extf %261 : vector<16x32xbf16> to vector<16x32xf32>
    %268 = arith.mulf %267, %266 : vector<16x32xf32>
    %269 = arith.truncf %268 : vector<16x32xf32> to vector<16x32xbf16>
    %c0_163 = arith.constant 0 : index
    %c48_164 = arith.constant 48 : index
    %c0_165 = arith.constant 0 : index
    %270 = vector.load %arg9[%c0_163, %c48_164, %c0_165] : memref<1x256x32xbf16, #tpu.memory_space<vmem>>, vector<1x16x32xbf16>
    %271 = vector.shape_cast %270 : vector<1x16x32xbf16> to vector<16x32xbf16>
    %272 = vector.shape_cast %269 : vector<16x32xbf16> to vector<1x16x32xbf16>
    tpu.vector_store %arg9[%c0_163, %c48_164, %c0_165], %272 {strides = array<i32>} : memref<1x256x32xbf16, #tpu.memory_space<vmem>>, vector<1x16x32xbf16>,
    %cst_166 = arith.constant 5.468750e-01 : f32
    %273 = vector.broadcast %cst_166 : f32 to vector<16x8xf32>
    %274 = arith.mulf %273, %115 : vector<16x8xf32>
    %cst_167 = arith.constant 3.281250e-01 : f32
    %275 = vector.broadcast %cst_167 : f32 to vector<16x8xf32>
    %276 = arith.mulf %275, %121 : vector<16x8xf32>
    %277 = arith.addf %274, %276 : vector<16x8xf32>
    %cst_168 = arith.constant 7.812500e-02 : f32
    %278 = vector.broadcast %cst_168 : f32 to vector<16x8xf32>
    %279 = arith.mulf %278, %102 : vector<16x8xf32>
    %280 = arith.addf %277, %279 : vector<16x8xf32>
    %cst_169 = arith.constant 4.687500e-02 : f32
    %281 = vector.broadcast %cst_169 : f32 to vector<16x8xf32>
    %282 = arith.mulf %281, %108 : vector<16x8xf32>
    %283 = arith.addf %280, %282 : vector<16x8xf32>
    %c64_170 = arith.constant 64 : index
    %c0_171 = arith.constant 0 : index
    %284 = vector.load %arg10[%c64_170, %c0_171] : memref<256x8xbf16, #tpu.memory_space<vmem>>, vector<16x8xbf16>
    %285 = arith.extf %284 : vector<16x8xbf16> to vector<16x8xf32>
    %286 = arith.addf %283, %285 : vector<16x8xf32>
    %287 = arith.truncf %286 : vector<16x8xf32> to vector<16x8xbf16>
    %c0_172 = arith.constant 0 : index
    %c0_173 = arith.constant 0 : index
    %288 = vector.load %arg7[%c0_172, %c0_173] : memref<8x32xbf16, #tpu.memory_space<vmem>>, vector<8x32xbf16>
    %cst_174 = arith.constant dense<0.000000e+00> : vector<16x32xf32>
    %289 = tpu.matmul %287, %288, %cst_174 {dimension_numbers = #tpu.dot_dimension_numbers<[1], [0], [0], [1], [0, 0, 1, 1], [], []>} : vector<16x8xbf16>, vector<8x32xbf16>, vector<16x32xf32> -> vector<16x32xf32>
    %c0_175 = arith.constant 0 : index
    %c0_176 = arith.constant 0 : index
    %290 = vector.load %arg8[%c0_175, %c0_176] : memref<1x32xf32, #tpu.memory_space<vmem>>, vector<1x32xf32>
    %291 = vector.broadcast %290 : vector<1x32xf32> to vector<16x32xf32>
    %292 = arith.addf %289, %291 : vector<16x32xf32>
    %c0_177 = arith.constant 0 : index
    %c64_178 = arith.constant 64 : index
    %c0_179 = arith.constant 0 : index
    %293 = vector.load %arg1[%c0_177, %c64_178, %c0_179] : memref<1x256x32xbf16, #tpu.memory_space<vmem>>, vector<1x16x32xbf16>
    %294 = vector.shape_cast %293 : vector<1x16x32xbf16> to vector<16x32xbf16>
    %295 = arith.negf %292 : vector<16x32xf32>
    %296 = math.exp %295 : vector<16x32xf32>
    %cst_180 = arith.constant 1.000000e+00 : f32
    %297 = vector.broadcast %cst_180 : f32 to vector<16x32xf32>
    %298 = arith.addf %297, %296 : vector<16x32xf32>
    %299 = arith.divf %297, %298 : vector<16x32xf32>
    %300 = arith.extf %294 : vector<16x32xbf16> to vector<16x32xf32>
    %301 = arith.mulf %300, %299 : vector<16x32xf32>
    %302 = arith.truncf %301 : vector<16x32xf32> to vector<16x32xbf16>
    %c0_181 = arith.constant 0 : index
    %c64_182 = arith.constant 64 : index
    %c0_183 = arith.constant 0 : index
    %303 = vector.load %arg9[%c0_181, %c64_182, %c0_183] : memref<1x256x32xbf16, #tpu.memory_space<vmem>>, vector<1x16x32xbf16>
    %304 = vector.shape_cast %303 : vector<1x16x32xbf16> to vector<16x32xbf16>
    %305 = vector.shape_cast %302 : vector<16x32xbf16> to vector<1x16x32xbf16>
    tpu.vector_store %arg9[%c0_181, %c64_182, %c0_183], %305 {strides = array<i32>} : memref<1x256x32xbf16, #tpu.memory_space<vmem>>, vector<1x16x32xbf16>,
    %cst_184 = arith.constant 7.656250e-01 : f32
    %306 = vector.broadcast %cst_184 : f32 to vector<16x8xf32>
    %307 = arith.mulf %306, %115 : vector<16x8xf32>
    %cst_185 = arith.constant 1.093750e-01 : f32
    %308 = vector.broadcast %cst_185 : f32 to vector<16x8xf32>
    %309 = arith.mulf %308, %121 : vector<16x8xf32>
    %310 = arith.addf %307, %309 : vector<16x8xf32>
    %cst_186 = arith.constant 1.093750e-01 : f32
    %311 = vector.broadcast %cst_186 : f32 to vector<16x8xf32>
    %312 = arith.mulf %311, %102 : vector<16x8xf32>
    %313 = arith.addf %310, %312 : vector<16x8xf32>
    %cst_187 = arith.constant 1.562500e-02 : f32
    %314 = vector.broadcast %cst_187 : f32 to vector<16x8xf32>
    %315 = arith.mulf %314, %108 : vector<16x8xf32>
    %316 = arith.addf %313, %315 : vector<16x8xf32>
    %c80_188 = arith.constant 80 : index
    %c0_189 = arith.constant 0 : index
    %317 = vector.load %arg10[%c80_188, %c0_189] : memref<256x8xbf16, #tpu.memory_space<vmem>>, vector<16x8xbf16>
    %318 = arith.extf %317 : vector<16x8xbf16> to vector<16x8xf32>
    %319 = arith.addf %316, %318 : vector<16x8xf32>
    %320 = arith.truncf %319 : vector<16x8xf32> to vector<16x8xbf16>
    %c0_190 = arith.constant 0 : index
    %c0_191 = arith.constant 0 : index
    %321 = vector.load %arg7[%c0_190, %c0_191] : memref<8x32xbf16, #tpu.memory_space<vmem>>, vector<8x32xbf16>
    %cst_192 = arith.constant dense<0.000000e+00> : vector<16x32xf32>
    %322 = tpu.matmul %320, %321, %cst_192 {dimension_numbers = #tpu.dot_dimension_numbers<[1], [0], [0], [1], [0, 0, 1, 1], [], []>} : vector<16x8xbf16>, vector<8x32xbf16>, vector<16x32xf32> -> vector<16x32xf32>
    %c0_193 = arith.constant 0 : index
    %c0_194 = arith.constant 0 : index
    %323 = vector.load %arg8[%c0_193, %c0_194] : memref<1x32xf32, #tpu.memory_space<vmem>>, vector<1x32xf32>
    %324 = vector.broadcast %323 : vector<1x32xf32> to vector<16x32xf32>
    %325 = arith.addf %322, %324 : vector<16x32xf32>
    %c0_195 = arith.constant 0 : index
    %c80_196 = arith.constant 80 : index
    %c0_197 = arith.constant 0 : index
    %326 = vector.load %arg1[%c0_195, %c80_196, %c0_197] : memref<1x256x32xbf16, #tpu.memory_space<vmem>>, vector<1x16x32xbf16>
    %327 = vector.shape_cast %326 : vector<1x16x32xbf16> to vector<16x32xbf16>
    %328 = arith.negf %325 : vector<16x32xf32>
    %329 = math.exp %328 : vector<16x32xf32>
    %cst_198 = arith.constant 1.000000e+00 : f32
    %330 = vector.broadcast %cst_198 : f32 to vector<16x32xf32>
    %331 = arith.addf %330, %329 : vector<16x32xf32>
    %332 = arith.divf %330, %331 : vector<16x32xf32>
    %333 = arith.extf %327 : vector<16x32xbf16> to vector<16x32xf32>
    %334 = arith.mulf %333, %332 : vector<16x32xf32>
    %335 = arith.truncf %334 : vector<16x32xf32> to vector<16x32xbf16>
    %c0_199 = arith.constant 0 : index
    %c80_200 = arith.constant 80 : index
    %c0_201 = arith.constant 0 : index
    %336 = vector.load %arg9[%c0_199, %c80_200, %c0_201] : memref<1x256x32xbf16, #tpu.memory_space<vmem>>, vector<1x16x32xbf16>
    %337 = vector.shape_cast %336 : vector<1x16x32xbf16> to vector<16x32xbf16>
    %338 = vector.shape_cast %335 : vector<16x32xbf16> to vector<1x16x32xbf16>
    tpu.vector_store %arg9[%c0_199, %c80_200, %c0_201], %338 {strides = array<i32>} : memref<1x256x32xbf16, #tpu.memory_space<vmem>>, vector<1x16x32xbf16>,
    %cst_202 = arith.constant 7.656250e-01 : f32
    %339 = vector.broadcast %cst_202 : f32 to vector<16x8xf32>
    %340 = arith.mulf %339, %115 : vector<16x8xf32>
    %cst_203 = arith.constant 1.093750e-01 : f32
    %341 = vector.broadcast %cst_203 : f32 to vector<16x8xf32>
    %342 = arith.mulf %341, %127 : vector<16x8xf32>
    %343 = arith.addf %340, %342 : vector<16x8xf32>
    %cst_204 = arith.constant 1.093750e-01 : f32
    %344 = vector.broadcast %cst_204 : f32 to vector<16x8xf32>
    %345 = arith.mulf %344, %102 : vector<16x8xf32>
    %346 = arith.addf %343, %345 : vector<16x8xf32>
    %cst_205 = arith.constant 1.562500e-02 : f32
    %347 = vector.broadcast %cst_205 : f32 to vector<16x8xf32>
    %348 = arith.mulf %347, %114 : vector<16x8xf32>
    %349 = arith.addf %346, %348 : vector<16x8xf32>
    %c96_206 = arith.constant 96 : index
    %c0_207 = arith.constant 0 : index
    %350 = vector.load %arg10[%c96_206, %c0_207] : memref<256x8xbf16, #tpu.memory_space<vmem>>, vector<16x8xbf16>
    %351 = arith.extf %350 : vector<16x8xbf16> to vector<16x8xf32>
    %352 = arith.addf %349, %351 : vector<16x8xf32>
    %353 = arith.truncf %352 : vector<16x8xf32> to vector<16x8xbf16>
    %c0_208 = arith.constant 0 : index
    %c0_209 = arith.constant 0 : index
    %354 = vector.load %arg7[%c0_208, %c0_209] : memref<8x32xbf16, #tpu.memory_space<vmem>>, vector<8x32xbf16>
    %cst_210 = arith.constant dense<0.000000e+00> : vector<16x32xf32>
    %355 = tpu.matmul %353, %354, %cst_210 {dimension_numbers = #tpu.dot_dimension_numbers<[1], [0], [0], [1], [0, 0, 1, 1], [], []>} : vector<16x8xbf16>, vector<8x32xbf16>, vector<16x32xf32> -> vector<16x32xf32>
    %c0_211 = arith.constant 0 : index
    %c0_212 = arith.constant 0 : index
    %356 = vector.load %arg8[%c0_211, %c0_212] : memref<1x32xf32, #tpu.memory_space<vmem>>, vector<1x32xf32>
    %357 = vector.broadcast %356 : vector<1x32xf32> to vector<16x32xf32>
    %358 = arith.addf %355, %357 : vector<16x32xf32>
    %c0_213 = arith.constant 0 : index
    %c96_214 = arith.constant 96 : index
    %c0_215 = arith.constant 0 : index
    %359 = vector.load %arg1[%c0_213, %c96_214, %c0_215] : memref<1x256x32xbf16, #tpu.memory_space<vmem>>, vector<1x16x32xbf16>
    %360 = vector.shape_cast %359 : vector<1x16x32xbf16> to vector<16x32xbf16>
    %361 = arith.negf %358 : vector<16x32xf32>
    %362 = math.exp %361 : vector<16x32xf32>
    %cst_216 = arith.constant 1.000000e+00 : f32
    %363 = vector.broadcast %cst_216 : f32 to vector<16x32xf32>
    %364 = arith.addf %363, %362 : vector<16x32xf32>
    %365 = arith.divf %363, %364 : vector<16x32xf32>
    %366 = arith.extf %360 : vector<16x32xbf16> to vector<16x32xf32>
    %367 = arith.mulf %366, %365 : vector<16x32xf32>
    %368 = arith.truncf %367 : vector<16x32xf32> to vector<16x32xbf16>
    %c0_217 = arith.constant 0 : index
    %c96_218 = arith.constant 96 : index
    %c0_219 = arith.constant 0 : index
    %369 = vector.load %arg9[%c0_217, %c96_218, %c0_219] : memref<1x256x32xbf16, #tpu.memory_space<vmem>>, vector<1x16x32xbf16>
    %370 = vector.shape_cast %369 : vector<1x16x32xbf16> to vector<16x32xbf16>
    %371 = vector.shape_cast %368 : vector<16x32xbf16> to vector<1x16x32xbf16>
    tpu.vector_store %arg9[%c0_217, %c96_218, %c0_219], %371 {strides = array<i32>} : memref<1x256x32xbf16, #tpu.memory_space<vmem>>, vector<1x16x32xbf16>,
    %cst_220 = arith.constant 5.468750e-01 : f32
    %372 = vector.broadcast %cst_220 : f32 to vector<16x8xf32>
    %373 = arith.mulf %372, %115 : vector<16x8xf32>
    %cst_221 = arith.constant 3.281250e-01 : f32
    %374 = vector.broadcast %cst_221 : f32 to vector<16x8xf32>
    %375 = arith.mulf %374, %127 : vector<16x8xf32>
    %376 = arith.addf %373, %375 : vector<16x8xf32>
    %cst_222 = arith.constant 7.812500e-02 : f32
    %377 = vector.broadcast %cst_222 : f32 to vector<16x8xf32>
    %378 = arith.mulf %377, %102 : vector<16x8xf32>
    %379 = arith.addf %376, %378 : vector<16x8xf32>
    %cst_223 = arith.constant 4.687500e-02 : f32
    %380 = vector.broadcast %cst_223 : f32 to vector<16x8xf32>
    %381 = arith.mulf %380, %114 : vector<16x8xf32>
    %382 = arith.addf %379, %381 : vector<16x8xf32>
    %c112_224 = arith.constant 112 : index
    %c0_225 = arith.constant 0 : index
    %383 = vector.load %arg10[%c112_224, %c0_225] : memref<256x8xbf16, #tpu.memory_space<vmem>>, vector<16x8xbf16>
    %384 = arith.extf %383 : vector<16x8xbf16> to vector<16x8xf32>
    %385 = arith.addf %382, %384 : vector<16x8xf32>
    %386 = arith.truncf %385 : vector<16x8xf32> to vector<16x8xbf16>
    %c0_226 = arith.constant 0 : index
    %c0_227 = arith.constant 0 : index
    %387 = vector.load %arg7[%c0_226, %c0_227] : memref<8x32xbf16, #tpu.memory_space<vmem>>, vector<8x32xbf16>
    %cst_228 = arith.constant dense<0.000000e+00> : vector<16x32xf32>
    %388 = tpu.matmul %386, %387, %cst_228 {dimension_numbers = #tpu.dot_dimension_numbers<[1], [0], [0], [1], [0, 0, 1, 1], [], []>} : vector<16x8xbf16>, vector<8x32xbf16>, vector<16x32xf32> -> vector<16x32xf32>
    %c0_229 = arith.constant 0 : index
    %c0_230 = arith.constant 0 : index
    %389 = vector.load %arg8[%c0_229, %c0_230] : memref<1x32xf32, #tpu.memory_space<vmem>>, vector<1x32xf32>
    %390 = vector.broadcast %389 : vector<1x32xf32> to vector<16x32xf32>
    %391 = arith.addf %388, %390 : vector<16x32xf32>
    %c0_231 = arith.constant 0 : index
    %c112_232 = arith.constant 112 : index
    %c0_233 = arith.constant 0 : index
    %392 = vector.load %arg1[%c0_231, %c112_232, %c0_233] : memref<1x256x32xbf16, #tpu.memory_space<vmem>>, vector<1x16x32xbf16>
    %393 = vector.shape_cast %392 : vector<1x16x32xbf16> to vector<16x32xbf16>
    %394 = arith.negf %391 : vector<16x32xf32>
    %395 = math.exp %394 : vector<16x32xf32>
    %cst_234 = arith.constant 1.000000e+00 : f32
    %396 = vector.broadcast %cst_234 : f32 to vector<16x32xf32>
    %397 = arith.addf %396, %395 : vector<16x32xf32>
    %398 = arith.divf %396, %397 : vector<16x32xf32>
    %399 = arith.extf %393 : vector<16x32xbf16> to vector<16x32xf32>
    %400 = arith.mulf %399, %398 : vector<16x32xf32>
    %401 = arith.truncf %400 : vector<16x32xf32> to vector<16x32xbf16>
    %c0_235 = arith.constant 0 : index
    %c112_236 = arith.constant 112 : index
    %c0_237 = arith.constant 0 : index
    %402 = vector.load %arg9[%c0_235, %c112_236, %c0_237] : memref<1x256x32xbf16, #tpu.memory_space<vmem>>, vector<1x16x32xbf16>
    %403 = vector.shape_cast %402 : vector<1x16x32xbf16> to vector<16x32xbf16>
    %404 = vector.shape_cast %401 : vector<16x32xbf16> to vector<1x16x32xbf16>
    tpu.vector_store %arg9[%c0_235, %c112_236, %c0_237], %404 {strides = array<i32>} : memref<1x256x32xbf16, #tpu.memory_space<vmem>>, vector<1x16x32xbf16>,
    %cst_238 = arith.constant 5.468750e-01 : f32
    %405 = vector.broadcast %cst_238 : f32 to vector<16x8xf32>
    %406 = arith.mulf %405, %115 : vector<16x8xf32>
    %cst_239 = arith.constant 3.281250e-01 : f32
    %407 = vector.broadcast %cst_239 : f32 to vector<16x8xf32>
    %408 = arith.mulf %407, %121 : vector<16x8xf32>
    %409 = arith.addf %406, %408 : vector<16x8xf32>
    %cst_240 = arith.constant 7.812500e-02 : f32
    %410 = vector.broadcast %cst_240 : f32 to vector<16x8xf32>
    %411 = arith.mulf %410, %128 : vector<16x8xf32>
    %412 = arith.addf %409, %411 : vector<16x8xf32>
    %cst_241 = arith.constant 4.687500e-02 : f32
    %413 = vector.broadcast %cst_241 : f32 to vector<16x8xf32>
    %414 = arith.mulf %413, %134 : vector<16x8xf32>
    %415 = arith.addf %412, %414 : vector<16x8xf32>
    %c128_242 = arith.constant 128 : index
    %c0_243 = arith.constant 0 : index
    %416 = vector.load %arg10[%c128_242, %c0_243] : memref<256x8xbf16, #tpu.memory_space<vmem>>, vector<16x8xbf16>
    %417 = arith.extf %416 : vector<16x8xbf16> to vector<16x8xf32>
    %418 = arith.addf %415, %417 : vector<16x8xf32>
    %419 = arith.truncf %418 : vector<16x8xf32> to vector<16x8xbf16>
    %c0_244 = arith.constant 0 : index
    %c0_245 = arith.constant 0 : index
    %420 = vector.load %arg7[%c0_244, %c0_245] : memref<8x32xbf16, #tpu.memory_space<vmem>>, vector<8x32xbf16>
    %cst_246 = arith.constant dense<0.000000e+00> : vector<16x32xf32>
    %421 = tpu.matmul %419, %420, %cst_246 {dimension_numbers = #tpu.dot_dimension_numbers<[1], [0], [0], [1], [0, 0, 1, 1], [], []>} : vector<16x8xbf16>, vector<8x32xbf16>, vector<16x32xf32> -> vector<16x32xf32>
    %c0_247 = arith.constant 0 : index
    %c0_248 = arith.constant 0 : index
    %422 = vector.load %arg8[%c0_247, %c0_248] : memref<1x32xf32, #tpu.memory_space<vmem>>, vector<1x32xf32>
    %423 = vector.broadcast %422 : vector<1x32xf32> to vector<16x32xf32>
    %424 = arith.addf %421, %423 : vector<16x32xf32>
    %c0_249 = arith.constant 0 : index
    %c128_250 = arith.constant 128 : index
    %c0_251 = arith.constant 0 : index
    %425 = vector.load %arg1[%c0_249, %c128_250, %c0_251] : memref<1x256x32xbf16, #tpu.memory_space<vmem>>, vector<1x16x32xbf16>
    %426 = vector.shape_cast %425 : vector<1x16x32xbf16> to vector<16x32xbf16>
    %427 = arith.negf %424 : vector<16x32xf32>
    %428 = math.exp %427 : vector<16x32xf32>
    %cst_252 = arith.constant 1.000000e+00 : f32
    %429 = vector.broadcast %cst_252 : f32 to vector<16x32xf32>
    %430 = arith.addf %429, %428 : vector<16x32xf32>
    %431 = arith.divf %429, %430 : vector<16x32xf32>
    %432 = arith.extf %426 : vector<16x32xbf16> to vector<16x32xf32>
    %433 = arith.mulf %432, %431 : vector<16x32xf32>
    %434 = arith.truncf %433 : vector<16x32xf32> to vector<16x32xbf16>
    %c0_253 = arith.constant 0 : index
    %c128_254 = arith.constant 128 : index
    %c0_255 = arith.constant 0 : index
    %435 = vector.load %arg9[%c0_253, %c128_254, %c0_255] : memref<1x256x32xbf16, #tpu.memory_space<vmem>>, vector<1x16x32xbf16>
    %436 = vector.shape_cast %435 : vector<1x16x32xbf16> to vector<16x32xbf16>
    %437 = vector.shape_cast %434 : vector<16x32xbf16> to vector<1x16x32xbf16>
    tpu.vector_store %arg9[%c0_253, %c128_254, %c0_255], %437 {strides = array<i32>} : memref<1x256x32xbf16, #tpu.memory_space<vmem>>, vector<1x16x32xbf16>,
    %cst_256 = arith.constant 7.656250e-01 : f32
    %438 = vector.broadcast %cst_256 : f32 to vector<16x8xf32>
    %439 = arith.mulf %438, %115 : vector<16x8xf32>
    %cst_257 = arith.constant 1.093750e-01 : f32
    %440 = vector.broadcast %cst_257 : f32 to vector<16x8xf32>
    %441 = arith.mulf %440, %121 : vector<16x8xf32>
    %442 = arith.addf %439, %441 : vector<16x8xf32>
    %cst_258 = arith.constant 1.093750e-01 : f32
    %443 = vector.broadcast %cst_258 : f32 to vector<16x8xf32>
    %444 = arith.mulf %443, %128 : vector<16x8xf32>
    %445 = arith.addf %442, %444 : vector<16x8xf32>
    %cst_259 = arith.constant 1.562500e-02 : f32
    %446 = vector.broadcast %cst_259 : f32 to vector<16x8xf32>
    %447 = arith.mulf %446, %134 : vector<16x8xf32>
    %448 = arith.addf %445, %447 : vector<16x8xf32>
    %c144_260 = arith.constant 144 : index
    %c0_261 = arith.constant 0 : index
    %449 = vector.load %arg10[%c144_260, %c0_261] : memref<256x8xbf16, #tpu.memory_space<vmem>>, vector<16x8xbf16>
    %450 = arith.extf %449 : vector<16x8xbf16> to vector<16x8xf32>
    %451 = arith.addf %448, %450 : vector<16x8xf32>
    %452 = arith.truncf %451 : vector<16x8xf32> to vector<16x8xbf16>
    %c0_262 = arith.constant 0 : index
    %c0_263 = arith.constant 0 : index
    %453 = vector.load %arg7[%c0_262, %c0_263] : memref<8x32xbf16, #tpu.memory_space<vmem>>, vector<8x32xbf16>
    %cst_264 = arith.constant dense<0.000000e+00> : vector<16x32xf32>
    %454 = tpu.matmul %452, %453, %cst_264 {dimension_numbers = #tpu.dot_dimension_numbers<[1], [0], [0], [1], [0, 0, 1, 1], [], []>} : vector<16x8xbf16>, vector<8x32xbf16>, vector<16x32xf32> -> vector<16x32xf32>
    %c0_265 = arith.constant 0 : index
    %c0_266 = arith.constant 0 : index
    %455 = vector.load %arg8[%c0_265, %c0_266] : memref<1x32xf32, #tpu.memory_space<vmem>>, vector<1x32xf32>
    %456 = vector.broadcast %455 : vector<1x32xf32> to vector<16x32xf32>
    %457 = arith.addf %454, %456 : vector<16x32xf32>
    %c0_267 = arith.constant 0 : index
    %c144_268 = arith.constant 144 : index
    %c0_269 = arith.constant 0 : index
    %458 = vector.load %arg1[%c0_267, %c144_268, %c0_269] : memref<1x256x32xbf16, #tpu.memory_space<vmem>>, vector<1x16x32xbf16>
    %459 = vector.shape_cast %458 : vector<1x16x32xbf16> to vector<16x32xbf16>
    %460 = arith.negf %457 : vector<16x32xf32>
    %461 = math.exp %460 : vector<16x32xf32>
    %cst_270 = arith.constant 1.000000e+00 : f32
    %462 = vector.broadcast %cst_270 : f32 to vector<16x32xf32>
    %463 = arith.addf %462, %461 : vector<16x32xf32>
    %464 = arith.divf %462, %463 : vector<16x32xf32>
    %465 = arith.extf %459 : vector<16x32xbf16> to vector<16x32xf32>
    %466 = arith.mulf %465, %464 : vector<16x32xf32>
    %467 = arith.truncf %466 : vector<16x32xf32> to vector<16x32xbf16>
    %c0_271 = arith.constant 0 : index
    %c144_272 = arith.constant 144 : index
    %c0_273 = arith.constant 0 : index
    %468 = vector.load %arg9[%c0_271, %c144_272, %c0_273] : memref<1x256x32xbf16, #tpu.memory_space<vmem>>, vector<1x16x32xbf16>
    %469 = vector.shape_cast %468 : vector<1x16x32xbf16> to vector<16x32xbf16>
    %470 = vector.shape_cast %467 : vector<16x32xbf16> to vector<1x16x32xbf16>
    tpu.vector_store %arg9[%c0_271, %c144_272, %c0_273], %470 {strides = array<i32>} : memref<1x256x32xbf16, #tpu.memory_space<vmem>>, vector<1x16x32xbf16>,
    %cst_274 = arith.constant 7.656250e-01 : f32
    %471 = vector.broadcast %cst_274 : f32 to vector<16x8xf32>
    %472 = arith.mulf %471, %115 : vector<16x8xf32>
    %cst_275 = arith.constant 1.093750e-01 : f32
    %473 = vector.broadcast %cst_275 : f32 to vector<16x8xf32>
    %474 = arith.mulf %473, %127 : vector<16x8xf32>
    %475 = arith.addf %472, %474 : vector<16x8xf32>
    %cst_276 = arith.constant 1.093750e-01 : f32
    %476 = vector.broadcast %cst_276 : f32 to vector<16x8xf32>
    %477 = arith.mulf %476, %128 : vector<16x8xf32>
    %478 = arith.addf %475, %477 : vector<16x8xf32>
    %cst_277 = arith.constant 1.562500e-02 : f32
    %479 = vector.broadcast %cst_277 : f32 to vector<16x8xf32>
    %480 = arith.mulf %479, %140 : vector<16x8xf32>
    %481 = arith.addf %478, %480 : vector<16x8xf32>
    %c160_278 = arith.constant 160 : index
    %c0_279 = arith.constant 0 : index
    %482 = vector.load %arg10[%c160_278, %c0_279] : memref<256x8xbf16, #tpu.memory_space<vmem>>, vector<16x8xbf16>
    %483 = arith.extf %482 : vector<16x8xbf16> to vector<16x8xf32>
    %484 = arith.addf %481, %483 : vector<16x8xf32>
    %485 = arith.truncf %484 : vector<16x8xf32> to vector<16x8xbf16>
    %c0_280 = arith.constant 0 : index
    %c0_281 = arith.constant 0 : index
    %486 = vector.load %arg7[%c0_280, %c0_281] : memref<8x32xbf16, #tpu.memory_space<vmem>>, vector<8x32xbf16>
    %cst_282 = arith.constant dense<0.000000e+00> : vector<16x32xf32>
    %487 = tpu.matmul %485, %486, %cst_282 {dimension_numbers = #tpu.dot_dimension_numbers<[1], [0], [0], [1], [0, 0, 1, 1], [], []>} : vector<16x8xbf16>, vector<8x32xbf16>, vector<16x32xf32> -> vector<16x32xf32>
    %c0_283 = arith.constant 0 : index
    %c0_284 = arith.constant 0 : index
    %488 = vector.load %arg8[%c0_283, %c0_284] : memref<1x32xf32, #tpu.memory_space<vmem>>, vector<1x32xf32>
    %489 = vector.broadcast %488 : vector<1x32xf32> to vector<16x32xf32>
    %490 = arith.addf %487, %489 : vector<16x32xf32>
    %c0_285 = arith.constant 0 : index
    %c160_286 = arith.constant 160 : index
    %c0_287 = arith.constant 0 : index
    %491 = vector.load %arg1[%c0_285, %c160_286, %c0_287] : memref<1x256x32xbf16, #tpu.memory_space<vmem>>, vector<1x16x32xbf16>
    %492 = vector.shape_cast %491 : vector<1x16x32xbf16> to vector<16x32xbf16>
    %493 = arith.negf %490 : vector<16x32xf32>
    %494 = math.exp %493 : vector<16x32xf32>
    %cst_288 = arith.constant 1.000000e+00 : f32
    %495 = vector.broadcast %cst_288 : f32 to vector<16x32xf32>
    %496 = arith.addf %495, %494 : vector<16x32xf32>
    %497 = arith.divf %495, %496 : vector<16x32xf32>
    %498 = arith.extf %492 : vector<16x32xbf16> to vector<16x32xf32>
    %499 = arith.mulf %498, %497 : vector<16x32xf32>
    %500 = arith.truncf %499 : vector<16x32xf32> to vector<16x32xbf16>
    %c0_289 = arith.constant 0 : index
    %c160_290 = arith.constant 160 : index
    %c0_291 = arith.constant 0 : index
    %501 = vector.load %arg9[%c0_289, %c160_290, %c0_291] : memref<1x256x32xbf16, #tpu.memory_space<vmem>>, vector<1x16x32xbf16>
    %502 = vector.shape_cast %501 : vector<1x16x32xbf16> to vector<16x32xbf16>
    %503 = vector.shape_cast %500 : vector<16x32xbf16> to vector<1x16x32xbf16>
    tpu.vector_store %arg9[%c0_289, %c160_290, %c0_291], %503 {strides = array<i32>} : memref<1x256x32xbf16, #tpu.memory_space<vmem>>, vector<1x16x32xbf16>,
    %cst_292 = arith.constant 5.468750e-01 : f32
    %504 = vector.broadcast %cst_292 : f32 to vector<16x8xf32>
    %505 = arith.mulf %504, %115 : vector<16x8xf32>
    %cst_293 = arith.constant 3.281250e-01 : f32
    %506 = vector.broadcast %cst_293 : f32 to vector<16x8xf32>
    %507 = arith.mulf %506, %127 : vector<16x8xf32>
    %508 = arith.addf %505, %507 : vector<16x8xf32>
    %cst_294 = arith.constant 7.812500e-02 : f32
    %509 = vector.broadcast %cst_294 : f32 to vector<16x8xf32>
    %510 = arith.mulf %509, %128 : vector<16x8xf32>
    %511 = arith.addf %508, %510 : vector<16x8xf32>
    %cst_295 = arith.constant 4.687500e-02 : f32
    %512 = vector.broadcast %cst_295 : f32 to vector<16x8xf32>
    %513 = arith.mulf %512, %140 : vector<16x8xf32>
    %514 = arith.addf %511, %513 : vector<16x8xf32>
    %c176_296 = arith.constant 176 : index
    %c0_297 = arith.constant 0 : index
    %515 = vector.load %arg10[%c176_296, %c0_297] : memref<256x8xbf16, #tpu.memory_space<vmem>>, vector<16x8xbf16>
    %516 = arith.extf %515 : vector<16x8xbf16> to vector<16x8xf32>
    %517 = arith.addf %514, %516 : vector<16x8xf32>
    %518 = arith.truncf %517 : vector<16x8xf32> to vector<16x8xbf16>
    %c0_298 = arith.constant 0 : index
    %c0_299 = arith.constant 0 : index
    %519 = vector.load %arg7[%c0_298, %c0_299] : memref<8x32xbf16, #tpu.memory_space<vmem>>, vector<8x32xbf16>
    %cst_300 = arith.constant dense<0.000000e+00> : vector<16x32xf32>
    %520 = tpu.matmul %518, %519, %cst_300 {dimension_numbers = #tpu.dot_dimension_numbers<[1], [0], [0], [1], [0, 0, 1, 1], [], []>} : vector<16x8xbf16>, vector<8x32xbf16>, vector<16x32xf32> -> vector<16x32xf32>
    %c0_301 = arith.constant 0 : index
    %c0_302 = arith.constant 0 : index
    %521 = vector.load %arg8[%c0_301, %c0_302] : memref<1x32xf32, #tpu.memory_space<vmem>>, vector<1x32xf32>
    %522 = vector.broadcast %521 : vector<1x32xf32> to vector<16x32xf32>
    %523 = arith.addf %520, %522 : vector<16x32xf32>
    %c0_303 = arith.constant 0 : index
    %c176_304 = arith.constant 176 : index
    %c0_305 = arith.constant 0 : index
    %524 = vector.load %arg1[%c0_303, %c176_304, %c0_305] : memref<1x256x32xbf16, #tpu.memory_space<vmem>>, vector<1x16x32xbf16>
    %525 = vector.shape_cast %524 : vector<1x16x32xbf16> to vector<16x32xbf16>
    %526 = arith.negf %523 : vector<16x32xf32>
    %527 = math.exp %526 : vector<16x32xf32>
    %cst_306 = arith.constant 1.000000e+00 : f32
    %528 = vector.broadcast %cst_306 : f32 to vector<16x32xf32>
    %529 = arith.addf %528, %527 : vector<16x32xf32>
    %530 = arith.divf %528, %529 : vector<16x32xf32>
    %531 = arith.extf %525 : vector<16x32xbf16> to vector<16x32xf32>
    %532 = arith.mulf %531, %530 : vector<16x32xf32>
    %533 = arith.truncf %532 : vector<16x32xf32> to vector<16x32xbf16>
    %c0_307 = arith.constant 0 : index
    %c176_308 = arith.constant 176 : index
    %c0_309 = arith.constant 0 : index
    %534 = vector.load %arg9[%c0_307, %c176_308, %c0_309] : memref<1x256x32xbf16, #tpu.memory_space<vmem>>, vector<1x16x32xbf16>
    %535 = vector.shape_cast %534 : vector<1x16x32xbf16> to vector<16x32xbf16>
    %536 = vector.shape_cast %533 : vector<16x32xbf16> to vector<1x16x32xbf16>
    tpu.vector_store %arg9[%c0_307, %c176_308, %c0_309], %536 {strides = array<i32>} : memref<1x256x32xbf16, #tpu.memory_space<vmem>>, vector<1x16x32xbf16>,
    %cst_310 = arith.constant 3.906250e-01 : f32
    %537 = vector.broadcast %cst_310 : f32 to vector<16x8xf32>
    %538 = arith.mulf %537, %115 : vector<16x8xf32>
    %cst_311 = arith.constant 2.343750e-01 : f32
    %539 = vector.broadcast %cst_311 : f32 to vector<16x8xf32>
    %540 = arith.mulf %539, %121 : vector<16x8xf32>
    %541 = arith.addf %538, %540 : vector<16x8xf32>
    %cst_312 = arith.constant 2.343750e-01 : f32
    %542 = vector.broadcast %cst_312 : f32 to vector<16x8xf32>
    %543 = arith.mulf %542, %128 : vector<16x8xf32>
    %544 = arith.addf %541, %543 : vector<16x8xf32>
    %cst_313 = arith.constant 1.406250e-01 : f32
    %545 = vector.broadcast %cst_313 : f32 to vector<16x8xf32>
    %546 = arith.mulf %545, %134 : vector<16x8xf32>
    %547 = arith.addf %544, %546 : vector<16x8xf32>
    %c192_314 = arith.constant 192 : index
    %c0_315 = arith.constant 0 : index
    %548 = vector.load %arg10[%c192_314, %c0_315] : memref<256x8xbf16, #tpu.memory_space<vmem>>, vector<16x8xbf16>
    %549 = arith.extf %548 : vector<16x8xbf16> to vector<16x8xf32>
    %550 = arith.addf %547, %549 : vector<16x8xf32>
    %551 = arith.truncf %550 : vector<16x8xf32> to vector<16x8xbf16>
    %c0_316 = arith.constant 0 : index
    %c0_317 = arith.constant 0 : index
    %552 = vector.load %arg7[%c0_316, %c0_317] : memref<8x32xbf16, #tpu.memory_space<vmem>>, vector<8x32xbf16>
    %cst_318 = arith.constant dense<0.000000e+00> : vector<16x32xf32>
    %553 = tpu.matmul %551, %552, %cst_318 {dimension_numbers = #tpu.dot_dimension_numbers<[1], [0], [0], [1], [0, 0, 1, 1], [], []>} : vector<16x8xbf16>, vector<8x32xbf16>, vector<16x32xf32> -> vector<16x32xf32>
    %c0_319 = arith.constant 0 : index
    %c0_320 = arith.constant 0 : index
    %554 = vector.load %arg8[%c0_319, %c0_320] : memref<1x32xf32, #tpu.memory_space<vmem>>, vector<1x32xf32>
    %555 = vector.broadcast %554 : vector<1x32xf32> to vector<16x32xf32>
    %556 = arith.addf %553, %555 : vector<16x32xf32>
    %c0_321 = arith.constant 0 : index
    %c192_322 = arith.constant 192 : index
    %c0_323 = arith.constant 0 : index
    %557 = vector.load %arg1[%c0_321, %c192_322, %c0_323] : memref<1x256x32xbf16, #tpu.memory_space<vmem>>, vector<1x16x32xbf16>
    %558 = vector.shape_cast %557 : vector<1x16x32xbf16> to vector<16x32xbf16>
    %559 = arith.negf %556 : vector<16x32xf32>
    %560 = math.exp %559 : vector<16x32xf32>
    %cst_324 = arith.constant 1.000000e+00 : f32
    %561 = vector.broadcast %cst_324 : f32 to vector<16x32xf32>
    %562 = arith.addf %561, %560 : vector<16x32xf32>
    %563 = arith.divf %561, %562 : vector<16x32xf32>
    %564 = arith.extf %558 : vector<16x32xbf16> to vector<16x32xf32>
    %565 = arith.mulf %564, %563 : vector<16x32xf32>
    %566 = arith.truncf %565 : vector<16x32xf32> to vector<16x32xbf16>
    %c0_325 = arith.constant 0 : index
    %c192_326 = arith.constant 192 : index
    %c0_327 = arith.constant 0 : index
    %567 = vector.load %arg9[%c0_325, %c192_326, %c0_327] : memref<1x256x32xbf16, #tpu.memory_space<vmem>>, vector<1x16x32xbf16>
    %568 = vector.shape_cast %567 : vector<1x16x32xbf16> to vector<16x32xbf16>
    %569 = vector.shape_cast %566 : vector<16x32xbf16> to vector<1x16x32xbf16>
    tpu.vector_store %arg9[%c0_325, %c192_326, %c0_327], %569 {strides = array<i32>} : memref<1x256x32xbf16, #tpu.memory_space<vmem>>, vector<1x16x32xbf16>,
    %cst_328 = arith.constant 5.468750e-01 : f32
    %570 = vector.broadcast %cst_328 : f32 to vector<16x8xf32>
    %571 = arith.mulf %570, %115 : vector<16x8xf32>
    %cst_329 = arith.constant 7.812500e-02 : f32
    %572 = vector.broadcast %cst_329 : f32 to vector<16x8xf32>
    %573 = arith.mulf %572, %121 : vector<16x8xf32>
    %574 = arith.addf %571, %573 : vector<16x8xf32>
    %cst_330 = arith.constant 3.281250e-01 : f32
    %575 = vector.broadcast %cst_330 : f32 to vector<16x8xf32>
    %576 = arith.mulf %575, %128 : vector<16x8xf32>
    %577 = arith.addf %574, %576 : vector<16x8xf32>
    %cst_331 = arith.constant 4.687500e-02 : f32
    %578 = vector.broadcast %cst_331 : f32 to vector<16x8xf32>
    %579 = arith.mulf %578, %134 : vector<16x8xf32>
    %580 = arith.addf %577, %579 : vector<16x8xf32>
    %c208_332 = arith.constant 208 : index
    %c0_333 = arith.constant 0 : index
    %581 = vector.load %arg10[%c208_332, %c0_333] : memref<256x8xbf16, #tpu.memory_space<vmem>>, vector<16x8xbf16>
    %582 = arith.extf %581 : vector<16x8xbf16> to vector<16x8xf32>
    %583 = arith.addf %580, %582 : vector<16x8xf32>
    %584 = arith.truncf %583 : vector<16x8xf32> to vector<16x8xbf16>
    %c0_334 = arith.constant 0 : index
    %c0_335 = arith.constant 0 : index
    %585 = vector.load %arg7[%c0_334, %c0_335] : memref<8x32xbf16, #tpu.memory_space<vmem>>, vector<8x32xbf16>
    %cst_336 = arith.constant dense<0.000000e+00> : vector<16x32xf32>
    %586 = tpu.matmul %584, %585, %cst_336 {dimension_numbers = #tpu.dot_dimension_numbers<[1], [0], [0], [1], [0, 0, 1, 1], [], []>} : vector<16x8xbf16>, vector<8x32xbf16>, vector<16x32xf32> -> vector<16x32xf32>
    %c0_337 = arith.constant 0 : index
    %c0_338 = arith.constant 0 : index
    %587 = vector.load %arg8[%c0_337, %c0_338] : memref<1x32xf32, #tpu.memory_space<vmem>>, vector<1x32xf32>
    %588 = vector.broadcast %587 : vector<1x32xf32> to vector<16x32xf32>
    %589 = arith.addf %586, %588 : vector<16x32xf32>
    %c0_339 = arith.constant 0 : index
    %c208_340 = arith.constant 208 : index
    %c0_341 = arith.constant 0 : index
    %590 = vector.load %arg1[%c0_339, %c208_340, %c0_341] : memref<1x256x32xbf16, #tpu.memory_space<vmem>>, vector<1x16x32xbf16>
    %591 = vector.shape_cast %590 : vector<1x16x32xbf16> to vector<16x32xbf16>
    %592 = arith.negf %589 : vector<16x32xf32>
    %593 = math.exp %592 : vector<16x32xf32>
    %cst_342 = arith.constant 1.000000e+00 : f32
    %594 = vector.broadcast %cst_342 : f32 to vector<16x32xf32>
    %595 = arith.addf %594, %593 : vector<16x32xf32>
    %596 = arith.divf %594, %595 : vector<16x32xf32>
    %597 = arith.extf %591 : vector<16x32xbf16> to vector<16x32xf32>
    %598 = arith.mulf %597, %596 : vector<16x32xf32>
    %599 = arith.truncf %598 : vector<16x32xf32> to vector<16x32xbf16>
    %c0_343 = arith.constant 0 : index
    %c208_344 = arith.constant 208 : index
    %c0_345 = arith.constant 0 : index
    %600 = vector.load %arg9[%c0_343, %c208_344, %c0_345] : memref<1x256x32xbf16, #tpu.memory_space<vmem>>, vector<1x16x32xbf16>
    %601 = vector.shape_cast %600 : vector<1x16x32xbf16> to vector<16x32xbf16>
    %602 = vector.shape_cast %599 : vector<16x32xbf16> to vector<1x16x32xbf16>
    tpu.vector_store %arg9[%c0_343, %c208_344, %c0_345], %602 {strides = array<i32>} : memref<1x256x32xbf16, #tpu.memory_space<vmem>>, vector<1x16x32xbf16>,
    %cst_346 = arith.constant 5.468750e-01 : f32
    %603 = vector.broadcast %cst_346 : f32 to vector<16x8xf32>
    %604 = arith.mulf %603, %115 : vector<16x8xf32>
    %cst_347 = arith.constant 7.812500e-02 : f32
    %605 = vector.broadcast %cst_347 : f32 to vector<16x8xf32>
    %606 = arith.mulf %605, %127 : vector<16x8xf32>
    %607 = arith.addf %604, %606 : vector<16x8xf32>
    %cst_348 = arith.constant 3.281250e-01 : f32
    %608 = vector.broadcast %cst_348 : f32 to vector<16x8xf32>
    %609 = arith.mulf %608, %128 : vector<16x8xf32>
    %610 = arith.addf %607, %609 : vector<16x8xf32>
    %cst_349 = arith.constant 4.687500e-02 : f32
    %611 = vector.broadcast %cst_349 : f32 to vector<16x8xf32>
    %612 = arith.mulf %611, %140 : vector<16x8xf32>
    %613 = arith.addf %610, %612 : vector<16x8xf32>
    %c224_350 = arith.constant 224 : index
    %c0_351 = arith.constant 0 : index
    %614 = vector.load %arg10[%c224_350, %c0_351] : memref<256x8xbf16, #tpu.memory_space<vmem>>, vector<16x8xbf16>
    %615 = arith.extf %614 : vector<16x8xbf16> to vector<16x8xf32>
    %616 = arith.addf %613, %615 : vector<16x8xf32>
    %617 = arith.truncf %616 : vector<16x8xf32> to vector<16x8xbf16>
    %c0_352 = arith.constant 0 : index
    %c0_353 = arith.constant 0 : index
    %618 = vector.load %arg7[%c0_352, %c0_353] : memref<8x32xbf16, #tpu.memory_space<vmem>>, vector<8x32xbf16>
    %cst_354 = arith.constant dense<0.000000e+00> : vector<16x32xf32>
    %619 = tpu.matmul %617, %618, %cst_354 {dimension_numbers = #tpu.dot_dimension_numbers<[1], [0], [0], [1], [0, 0, 1, 1], [], []>} : vector<16x8xbf16>, vector<8x32xbf16>, vector<16x32xf32> -> vector<16x32xf32>
    %c0_355 = arith.constant 0 : index
    %c0_356 = arith.constant 0 : index
    %620 = vector.load %arg8[%c0_355, %c0_356] : memref<1x32xf32, #tpu.memory_space<vmem>>, vector<1x32xf32>
    %621 = vector.broadcast %620 : vector<1x32xf32> to vector<16x32xf32>
    %622 = arith.addf %619, %621 : vector<16x32xf32>
    %c0_357 = arith.constant 0 : index
    %c224_358 = arith.constant 224 : index
    %c0_359 = arith.constant 0 : index
    %623 = vector.load %arg1[%c0_357, %c224_358, %c0_359] : memref<1x256x32xbf16, #tpu.memory_space<vmem>>, vector<1x16x32xbf16>
    %624 = vector.shape_cast %623 : vector<1x16x32xbf16> to vector<16x32xbf16>
    %625 = arith.negf %622 : vector<16x32xf32>
    %626 = math.exp %625 : vector<16x32xf32>
    %cst_360 = arith.constant 1.000000e+00 : f32
    %627 = vector.broadcast %cst_360 : f32 to vector<16x32xf32>
    %628 = arith.addf %627, %626 : vector<16x32xf32>
    %629 = arith.divf %627, %628 : vector<16x32xf32>
    %630 = arith.extf %624 : vector<16x32xbf16> to vector<16x32xf32>
    %631 = arith.mulf %630, %629 : vector<16x32xf32>
    %632 = arith.truncf %631 : vector<16x32xf32> to vector<16x32xbf16>
    %c0_361 = arith.constant 0 : index
    %c224_362 = arith.constant 224 : index
    %c0_363 = arith.constant 0 : index
    %633 = vector.load %arg9[%c0_361, %c224_362, %c0_363] : memref<1x256x32xbf16, #tpu.memory_space<vmem>>, vector<1x16x32xbf16>
    %634 = vector.shape_cast %633 : vector<1x16x32xbf16> to vector<16x32xbf16>
    %635 = vector.shape_cast %632 : vector<16x32xbf16> to vector<1x16x32xbf16>
    tpu.vector_store %arg9[%c0_361, %c224_362, %c0_363], %635 {strides = array<i32>} : memref<1x256x32xbf16, #tpu.memory_space<vmem>>, vector<1x16x32xbf16>,
    %cst_364 = arith.constant 3.906250e-01 : f32
    %636 = vector.broadcast %cst_364 : f32 to vector<16x8xf32>
    %637 = arith.mulf %636, %115 : vector<16x8xf32>
    %cst_365 = arith.constant 2.343750e-01 : f32
    %638 = vector.broadcast %cst_365 : f32 to vector<16x8xf32>
    %639 = arith.mulf %638, %127 : vector<16x8xf32>
    %640 = arith.addf %637, %639 : vector<16x8xf32>
    %cst_366 = arith.constant 2.343750e-01 : f32
    %641 = vector.broadcast %cst_366 : f32 to vector<16x8xf32>
    %642 = arith.mulf %641, %128 : vector<16x8xf32>
    %643 = arith.addf %640, %642 : vector<16x8xf32>
    %cst_367 = arith.constant 1.406250e-01 : f32
    %644 = vector.broadcast %cst_367 : f32 to vector<16x8xf32>
    %645 = arith.mulf %644, %140 : vector<16x8xf32>
    %646 = arith.addf %643, %645 : vector<16x8xf32>
    %c240_368 = arith.constant 240 : index
    %c0_369 = arith.constant 0 : index
    %647 = vector.load %arg10[%c240_368, %c0_369] : memref<256x8xbf16, #tpu.memory_space<vmem>>, vector<16x8xbf16>
    %648 = arith.extf %647 : vector<16x8xbf16> to vector<16x8xf32>
    %649 = arith.addf %646, %648 : vector<16x8xf32>
    %650 = arith.truncf %649 : vector<16x8xf32> to vector<16x8xbf16>
    %c0_370 = arith.constant 0 : index
    %c0_371 = arith.constant 0 : index
    %651 = vector.load %arg7[%c0_370, %c0_371] : memref<8x32xbf16, #tpu.memory_space<vmem>>, vector<8x32xbf16>
    %cst_372 = arith.constant dense<0.000000e+00> : vector<16x32xf32>
    %652 = tpu.matmul %650, %651, %cst_372 {dimension_numbers = #tpu.dot_dimension_numbers<[1], [0], [0], [1], [0, 0, 1, 1], [], []>} : vector<16x8xbf16>, vector<8x32xbf16>, vector<16x32xf32> -> vector<16x32xf32>
    %c0_373 = arith.constant 0 : index
    %c0_374 = arith.constant 0 : index
    %653 = vector.load %arg8[%c0_373, %c0_374] : memref<1x32xf32, #tpu.memory_space<vmem>>, vector<1x32xf32>
    %654 = vector.broadcast %653 : vector<1x32xf32> to vector<16x32xf32>
    %655 = arith.addf %652, %654 : vector<16x32xf32>
    %c0_375 = arith.constant 0 : index
    %c240_376 = arith.constant 240 : index
    %c0_377 = arith.constant 0 : index
    %656 = vector.load %arg1[%c0_375, %c240_376, %c0_377] : memref<1x256x32xbf16, #tpu.memory_space<vmem>>, vector<1x16x32xbf16>
    %657 = vector.shape_cast %656 : vector<1x16x32xbf16> to vector<16x32xbf16>
    %658 = arith.negf %655 : vector<16x32xf32>
    %659 = math.exp %658 : vector<16x32xf32>
    %cst_378 = arith.constant 1.000000e+00 : f32
    %660 = vector.broadcast %cst_378 : f32 to vector<16x32xf32>
    %661 = arith.addf %660, %659 : vector<16x32xf32>
    %662 = arith.divf %660, %661 : vector<16x32xf32>
    %663 = arith.extf %657 : vector<16x32xbf16> to vector<16x32xf32>
    %664 = arith.mulf %663, %662 : vector<16x32xf32>
    %665 = arith.truncf %664 : vector<16x32xf32> to vector<16x32xbf16>
    %c0_379 = arith.constant 0 : index
    %c240_380 = arith.constant 240 : index
    %c0_381 = arith.constant 0 : index
    %666 = vector.load %arg9[%c0_379, %c240_380, %c0_381] : memref<1x256x32xbf16, #tpu.memory_space<vmem>>, vector<1x16x32xbf16>
    %667 = vector.shape_cast %666 : vector<1x16x32xbf16> to vector<16x32xbf16>
    %668 = vector.shape_cast %665 : vector<16x32xbf16> to vector<1x16x32xbf16>
    tpu.vector_store %arg9[%c0_379, %c240_380, %c0_381], %668 {strides = array<i32>} : memref<1x256x32xbf16, #tpu.memory_space<vmem>>, vector<1x16x32xbf16>,
    return
  }
  func.func @transform_0(%arg0: i32) -> (i32, i32, i32) {
    %c0_i32 = arith.constant 0 : i32
    %c0_i32_0 = arith.constant 0 : i32
    %c0_i32_1 = arith.constant 0 : i32
    return %arg0, %c0_i32, %c0_i32_0 : i32, i32, i32
  }
  func.func @transform_1(%arg0: i32) -> (i32, i32) {
    %c0_i32 = arith.constant 0 : i32
    %c0_i32_0 = arith.constant 0 : i32
    %c0_i32_1 = arith.constant 0 : i32
    return %c0_i32, %c0_i32_0 : i32, i32
  }
  func.func @transform_2(%arg0: i32) -> (i32, i32) {
    %c0_i32 = arith.constant 0 : i32
    %c0_i32_0 = arith.constant 0 : i32
    %c0_i32_1 = arith.constant 0 : i32
    return %c0_i32, %c0_i32_0 : i32, i32
  }
  func.func @transform_3(%arg0: i32) -> (i32, i32) {
    %c0_i32 = arith.constant 0 : i32
    %c0_i32_0 = arith.constant 0 : i32
    %c0_i32_1 = arith.constant 0 : i32
    return %c0_i32, %c0_i32_0 : i32, i32
  }
  func.func @transform_4(%arg0: i32) -> (i32, i32) {
    %c0_i32 = arith.constant 0 : i32
    %c0_i32_0 = arith.constant 0 : i32
    %c0_i32_1 = arith.constant 0 : i32
    return %c0_i32, %c0_i32_0 : i32, i32
  }
  func.func @transform_5(%arg0: i32) -> (i32, i32) {
    %c0_i32 = arith.constant 0 : i32
    %c0_i32_0 = arith.constant 0 : i32
    %c0_i32_1 = arith.constant 0 : i32
    return %c0_i32, %c0_i32_0 : i32, i32
  }
  func.func @transform_6(%arg0: i32) -> (i32, i32) {
    %c0_i32 = arith.constant 0 : i32
    %c0_i32_0 = arith.constant 0 : i32
    %c0_i32_1 = arith.constant 0 : i32
    return %c0_i32, %c0_i32_0 : i32, i32
  }
  func.func @transform_7(%arg0: i32) -> (i32, i32) {
    %c0_i32 = arith.constant 0 : i32
    %c0_i32_0 = arith.constant 0 : i32
    %c0_i32_1 = arith.constant 0 : i32
    return %c0_i32, %c0_i32_0 : i32, i32
  }
  func.func @transform_8(%arg0: i32) -> (i32, i32, i32) {
    %c0_i32 = arith.constant 0 : i32
    %c0_i32_0 = arith.constant 0 : i32
    %c0_i32_1 = arith.constant 0 : i32
    return %arg0, %c0_i32, %c0_i32_0 : i32, i32, i32
  }
}

</mosaic_0001>

<bundles_post_ra>
// kernel: tpu_custom_call.1
= control target key start
LH: loop header
LB: loop body
LE: loop exit
PB: predicated region body
PF: predicated region fallthrough
CT: control target
= control target key end

     0   :  { %s3765_s27 = smov 0   ;;  %s4560_s0 = inlined_call_operand.vmem [shape: bf16[2,256,32], index: 0, kind: input, shape index: {}]   ;;  %s4561_s1 = inlined_call_operand.vmem [shape: bf16[32,8], index: 1, kind: input, shape index: {}]   ;;  %s4562_s2 = inlined_call_operand.vmem [shape: f32[1,8], index: 2, kind: input, shape index: {}]   ;;  %s4563_s3 = inlined_call_operand.vmem [shape: f32[16,2], index: 3, kind: input, shape index: {}]   ;;  %s4564_s4 = inlined_call_operand.vmem [shape: bf16[72,8], index: 4, kind: input, shape index: {}]   ;;  %s4565_s5 = inlined_call_operand.vmem [shape: f32[1,8], index: 5, kind: input, shape index: {}]   ;;  %s4566_s6 = inlined_call_operand.vmem [shape: bf16[8,32], index: 6, kind: input, shape index: {}]   ;;  %s4567_s7 = inlined_call_operand.vmem [shape: f32[1,32], index: 7, kind: input, shape index: {}]   ;;  %s4568_s8 = inlined_call_operand.vmem [shape: bf16[2,256,32], index: 8, kind: output, shape index: {}]  }
   0x1 LB: > { %s2879_s28 = sadd.s32 4294967295, %s3706_s27   ;;  %p2883_p0 = scmp.ge.s32.totalorder %s3706_s27, 1  ;;  %s3706_s27 = sphi %s3765_s27, %s18_s27  }
   0x2   : > { %p262_p1 = scmp.lt.s32.totalorder %s3706_s27, 3 }
   0x4   : > { %p263_p2 = pnand %p2883_p0, %p262_p1 }
   0x6   : > { %266 = sbr.rel (%p263_p2) target bundleno = 1016 (0x3f8), region = 52 }
   0xb   : > { %v3548_v0 = vld [vmem:[%s4561_s1 + $0x8] sm:$0xff]   ;;  %p296_p3 = scmp.lt.s32.totalorder %s2879_s28, 1  ;;  %v3549_v1 = vld [vmem:[%s4561_s1] sm:$0xff]   ;;  %vm442_vm0 = vcmask 261120   ;;  %v3708_v3 = vmov 1   ;;  %v3709_v4 = vmov 0  }
   0xc   : > { %3377 = vmatprep.subr.bf16.mxu0 %v3548_v0  ;;  %v3784_v2 = vld [vmem:[%s4563_s3] sm:$0xff]  ;;  %3543 = vset.pattern.permute.xlu0 %v3708_v3  ;;  %v3791_v5 = vld [vmem:[%s4563_s3 + $0x8] sm:$0xff]  ;;  %vm877_vm1 = vcmask 61440   ;;  %v4569_v22 = vmov 0.0   ;;  %vm780_vm2 = vcmask 60416   ;;  %vm882_vm3 = vcmask 64512  }
   0xd   : > { %s4600_s28 = smov (!%p296_p3, %s2879_s28), 1  ;;  %3378 = vmatpush3.bf16.msra.mxu0 %v3548_v0  ;;  %3544 = vset.pattern.permute.xlu1 %v3709_v4  ;;  %878 = vst.msk [vmem:[#allocation3] sm:$0x1f] %vm877_vm1, %v4569_v22  ;;  %879 = vst.msk [vmem:[#allocation3 + $0x15] sm:$0x1f] %vm877_vm1, %v4569_v22  ;;  %s3711_s21 = smov 8  }
   0xe   : > { %3379 = vmatprep.subr.bf16.mxu0 %v3549_v1  ;;  %s3079_s13 = sshll.u32 %s4600_s28, 7  ;;  %889 = vperm.xlu1 %3544, %v3784_v2   ;;  %v3843_v23 = vld [vmem:[%s4562_s2] ss:$0 sm:$0xff]  ;;  %s3712_s22 = smov 32   ;;  %vm1117_vm4 = vcmask 1043456   ;;  %vm3717_vm5 = vmmov 0  }
   0xf   : > { %s3798_s18 = scalar_lea.vmem %s4560_s0, %s3079_s13  ;;  %929 = vperm.xlu0 %3543, %v3784_v2   ;;  %3413 = vmatprep.subr.bf16.mxu1 %v4569_v22  ;;  %s3713_s23 = smov 16   ;;  %vm923_vm6 = vcmask 126016   ;;  %vm950_vm7 = vcmask 191616   ;;  %vm969_vm8 = vcmask 257216   ;;  %vm986_vm9 = vcmask 322816  }
  0x10   : > { %v3550_v6 = vld [vmem:[%s3798_s18] sm:$0xff]   ;;  %v3551_v7 = vld [vmem:[%s3798_s18 + $0x8] sm:$0xff]   ;;  %v3552_v8 = vld [vmem:[%s3798_s18 + $0x10] sm:$0xff]   ;;  %s3714_s30 = smov 56   ;;  %s3715_s9 = smov 24   ;;  %3423 = vmatprep.mubr.msk.bf16.mxu1 %vm3717_vm5, %v4569_v22  ;;  %vm1005_vm10 = vcmask 388416  }
  0x11   : > { %3380 = vmatpush3.bf16.msra.mxu0 %v3549_v1  ;;  %3381 = vmatprep.mubr.msk.bf16.mxu0 %vm442_vm0, %v3550_v6  ;;  %v3553_v9 = vld [vmem:[%s3798_s18 + $0x18] sm:$0xff]   ;;  %v3554_v10 = vld [vmem:[%s3798_s18 + $0x20] sm:$0xff]   ;;  %v3555_v11 = vld [vmem:[%s3798_s18 + $0x28] sm:$0xff]   ;;  %s3716_s15 = smov 40   ;;  %s3718_s19 = smov 48   ;;  %vm1024_vm11 = vcmask 454016  }
  0x12   : > { %894 = vperm.xlu1 %3544, %v3791_v5   ;;  %v3556_v12 = vld [vmem:[%s3798_s18 + $0x30] sm:$0xff]   ;;  %v3557_v13 = vld [vmem:[%s3798_s18 + $0x38] sm:$0xff]   ;;  %v3558_v14 = vld [vmem:[%s3798_s18 + $0x40] sm:$0xff]   ;;  %3463 = vmatprep.subr.bf16.mxu0 %v4569_v22  ;;  %s3719_s20 = smov 64   ;;  %vm1041_vm12 = vcmask 519616   ;;  %vm1060_vm13 = vcmask 585216  }
  0x13   : > { %933 = vperm.xlu0 %3543, %v3791_v5   ;;  %v3559_v15 = vld [vmem:[%s3798_s18 + $0x48] sm:$0xff]   ;;  %v3560_v16 = vld [vmem:[%s3798_s18 + $0x50] sm:$0xff]   ;;  %v3561_v17 = vld [vmem:[%s3798_s18 + $0x58] sm:$0xff]   ;;  %vm1113_vm14 = vcmask 588800   ;;  %vm1165_vm15 = vcmask 64516  }
  0x14   : > { %3382 = vmatmul.mubr.msk.bf16.vlgmr.msra.gmra.mxu0 %vm442_vm0, %v3551_v7  ;;  %v3562_v18 = vld [vmem:[%s3798_s18 + $0x60] sm:$0xff]   ;;  %v3563_v19 = vld [vmem:[%s3798_s18 + $0x68] sm:$0xff]   ;;  %v3564_v20 = vld [vmem:[%s3798_s18 + $0x70] sm:$0xff]  }
  0x15   : > { %3385 = vmatprep.mubr.msk.bf16.mxu0 %vm442_vm0, %v3552_v8  ;;  %v3565_v21 = vld [vmem:[%s3798_s18 + $0x78] sm:$0xff]  }
  0x17   : > { %3545 = vset.pattern.permute.xlu0 %v3709_v4 }
  0x1c   : > { %3386 = vmatmul.mubr.msk.bf16.gmra.mxu0 %vm442_vm0, %v3553_v9 }
  0x1d   : > { %3389 = vmatprep.mubr.msk.bf16.mxu0 %vm442_vm0, %v3554_v10 }
  0x24   : > { %3390 = vmatmul.mubr.msk.bf16.gmra.mxu0 %vm442_vm0, %v3555_v11 }
  0x25   : > { %3393 = vmatprep.mubr.msk.bf16.mxu0 %vm442_vm0, %v3556_v12 }
  0x2c   : > { %3394 = vmatmul.mubr.msk.bf16.gmra.mxu0 %vm442_vm0, %v3557_v13 }
  0x2d   : > { %3397 = vmatprep.mubr.msk.bf16.mxu0 %vm442_vm0, %v3558_v14 }
  0x34   : > { %3398 = vmatmul.mubr.msk.bf16.gmra.mxu0 %vm442_vm0, %v3559_v15 }
  0x35   : > { %3401 = vmatprep.mubr.msk.bf16.mxu0 %vm442_vm0, %v3560_v16 }
  0x3c   : > { %3402 = vmatmul.mubr.msk.bf16.gmra.mxu0 %vm442_vm0, %v3561_v17 }
  0x3d   : > { %3405 = vmatprep.mubr.msk.bf16.mxu0 %vm442_vm0, %v3562_v18 }
  0x44   : > { %3406 = vmatmul.mubr.msk.bf16.gmra.mxu0 %vm442_vm0, %v3563_v19 }
  0x45   : > { %3409 = vmatprep.mubr.msk.bf16.mxu0 %vm442_vm0, %v3564_v20 }
  0x4c   : > { %3410 = vmatmul.mubr.msk.bf16.gmra.mxu0 %vm442_vm0, %v3565_v21  ;;  %vm1343_vm0 = vcmask 257024  }
  0x4d   : > { %3465 = vmatprep.mubr.msk.bf16.mxu0 %vm3717_vm5, %v4569_v22 }
  0xd4   : > { %v3383_v24 = vpop.f32.mrf.mxu0 }
  0xd5   : > { %v534_v25 = vadd.f32 %v3383_v24, %v3843_v23 }
  0xd6   : > { %v525_v26 = vpop.f32.mrf.mxu0 }
  0xd7   : > { %v3083_v27 = vpack.c.bf16 %v534_v25, %v534_v25  ;;  %v526_v28 = vadd.f32 %v3843_v23, %v525_v26 }
  0xd8   : > { %v3384_v29 = vpop.f32.mrf.mxu0 }
  0xd9   : > { %783 = vst.msk [vmem:[#allocation2 + $0x8] sm:$0xf] %vm780_vm2, %v3083_v27  ;;  %v3081_v30 = vpack.c.bf16 %v526_v28, %v526_v28  ;;  %v537_v31 = vadd.f32 %v3384_v29, %v3843_v23 }
  0xda   : > { %v528_v32 = vpop.f32.mrf.mxu0 }
  0xdb   : > { %781 = vst.msk [vmem:[#allocation2] sm:$0xf] %vm780_vm2, %v3081_v30  ;;  %v3084_v33 = vpack.c.bf16 %v537_v31, %v537_v31  ;;  %v529_v34 = vadd.f32 %v3843_v23, %v528_v32 }
  0xdc   : > { %v3387_v35 = vpop.f32.mrf.mxu0 }
  0xdd   : > { %784 = vst.msk [vmem:[#allocation2 + $0xc] sm:$0xf] %vm780_vm2, %v3084_v33  ;;  %v3082_v36 = vpack.c.bf16 %v529_v34, %v529_v34  ;;  %v550_v37 = vadd.f32 %v3387_v35, %v3843_v23 }
  0xde   : > { %v541_v38 = vpop.f32.mrf.mxu0 }
  0xdf   : > { %782 = vst.msk [vmem:[#allocation2 + $0x4] sm:$0xf] %vm780_vm2, %v3082_v36  ;;  %v3087_v39 = vpack.c.bf16 %v550_v37, %v550_v37  ;;  %v542_v40 = vadd.f32 %v3843_v23, %v541_v38 }
  0xe0   : > { %v3388_v41 = vpop.f32.mrf.mxu0 }
  0xe1   : > { %787 = vst.msk [vmem:[#allocation2 + $0x18] sm:$0xf] %vm780_vm2, %v3087_v39  ;;  %v3085_v42 = vpack.c.bf16 %v542_v40, %v542_v40  ;;  %v553_v43 = vadd.f32 %v3388_v41, %v3843_v23 }
  0xe2   : > { %v544_v44 = vpop.f32.mrf.mxu0 }
  0xe3   : > { %785 = vst.msk [vmem:[#allocation2 + $0x10] sm:$0xf] %vm780_vm2, %v3085_v42  ;;  %v3088_v45 = vpack.c.bf16 %v553_v43, %v553_v43  ;;  %v545_v46 = vadd.f32 %v3843_v23, %v544_v44 }
  0xe4   : > { %v3391_v47 = vpop.f32.mrf.mxu0 }
  0xe5   : > { %788 = vst.msk [vmem:[#allocation2 + $0x1c] sm:$0xf] %vm780_vm2, %v3088_v45  ;;  %v3086_v48 = vpack.c.bf16 %v545_v46, %v545_v46  ;;  %v566_v49 = vadd.f32 %v3391_v47, %v3843_v23 }
  0xe6   : > { %v557_v50 = vpop.f32.mrf.mxu0 }
  0xe7   : > { %786 = vst.msk [vmem:[#allocation2 + $0x14] sm:$0xf] %vm780_vm2, %v3086_v48  ;;  %v3091_v51 = vpack.c.bf16 %v566_v49, %v566_v49  ;;  %v558_v52 = vadd.f32 %v3843_v23, %v557_v50 }
  0xe8   : > { %v3392_v53 = vpop.f32.mrf.mxu0 }
  0xe9   : > { %791 = vst.msk [vmem:[#allocation2 + $0x28] sm:$0xf] %vm780_vm2, %v3091_v51  ;;  %v3089_v54 = vpack.c.bf16 %v558_v52, %v558_v52  ;;  %v569_v55 = vadd.f32 %v3392_v53, %v3843_v23 }
  0xea   : > { %v560_v56 = vpop.f32.mrf.mxu0 }
  0xeb   : > { %789 = vst.msk [vmem:[#allocation2 + $0x20] sm:$0xf] %vm780_vm2, %v3089_v54  ;;  %v3092_v57 = vpack.c.bf16 %v569_v55, %v569_v55  ;;  %v561_v58 = vadd.f32 %v3843_v23, %v560_v56 }
  0xec   : > { %v3395_v59 = vpop.f32.mrf.mxu0 }
  0xed   : > { %792 = vst.msk [vmem:[#allocation2 + $0x2c] sm:$0xf] %vm780_vm2, %v3092_v57  ;;  %v3090_v60 = vpack.c.bf16 %v561_v58, %v561_v58  ;;  %v582_v61 = vadd.f32 %v3395_v59, %v3843_v23 }
  0xee   : > { %v573_v62 = vpop.f32.mrf.mxu0 }
  0xef   : > { %790 = vst.msk [vmem:[#allocation2 + $0x24] sm:$0xf] %vm780_vm2, %v3090_v60  ;;  %v3095_v63 = vpack.c.bf16 %v582_v61, %v582_v61  ;;  %v574_v0 = vadd.f32 %v3843_v23, %v573_v62  ;;  %v817_v61 = vld [vmem:[#allocation2 + $0x10] sm:$0xf] }
  0xf0   : > { %v3396_v1 = vpop.f32.mrf.mxu0 }
  0xf1   : > { %795 = vst.msk [vmem:[#allocation2 + $0x38] sm:$0xf] %vm780_vm2, %v3095_v63  ;;  %v3093_v4 = vpack.c.bf16 %v574_v0, %v574_v0  ;;  %v585_v6 = vadd.f32 %v3396_v1, %v3843_v23  ;;  %v813_v1 = vld [vmem:[#allocation2] sm:$0xf] }
  0xf2   : > { %v576_v7 = vpop.f32.mrf.mxu0  ;;  %v821_v62 = vld [vmem:[#allocation2 + $0x20] sm:$0xf] }
  0xf3   : > { %793 = vst.msk [vmem:[#allocation2 + $0x30] sm:$0xf] %vm780_vm2, %v3093_v4  ;;  %v3096_v8 = vpack.c.bf16 %v585_v6, %v585_v6  ;;  %v577_v9 = vadd.f32 %v3843_v23, %v576_v7  ;;  %v819_v4 = vld [vmem:[#allocation2 + $0x18] sm:$0xf] }
  0xf4   : > { %v3399_v10 = vpop.f32.mrf.mxu0 }
  0xf5   : > { %796 = vst.msk [vmem:[#allocation2 + $0x3c] sm:$0xf] %vm780_vm2, %v3096_v8  ;;  %v3094_v11 = vpack.c.bf16 %v577_v9, %v577_v9  ;;  %v598_v12 = vadd.f32 %v3399_v10, %v3843_v23  ;;  %v815_v8 = vld [vmem:[#allocation2 + $0x8] sm:$0xf] }
  0xf6   : > { %v589_v13 = vpop.f32.mrf.mxu0  ;;  %v823_v9 = vld [vmem:[#allocation2 + $0x28] sm:$0xf]  ;;  %v822_v10 = vld [vmem:[#allocation2 + $0x24] sm:$0xf] }
  0xf7   : > { %794 = vst.msk [vmem:[#allocation2 + $0x34] sm:$0xf] %vm780_vm2, %v3094_v11  ;;  %v3099_v14 = vpack.c.bf16 %v598_v12, %v598_v12  ;;  %v590_v15 = vadd.f32 %v3843_v23, %v589_v13  ;;  %v847_v12 = vmax.bf16 %v819_v4, %v817_v61  ;;  %v818_v13 = vld [vmem:[#allocation2 + $0x14] sm:$0xf] }
  0xf8   : > { %v3400_v16 = vpop.f32.mrf.mxu0  ;;  %v827_v63 = vld [vmem:[#allocation2 + $0x38] sm:$0xf] }
  0xf9   : > { %799 = vst.msk [vmem:[#allocation2 + $0x48] sm:$0xf] %vm780_vm2, %v3099_v14  ;;  %v3097_v17 = vpack.c.bf16 %v590_v15, %v590_v15  ;;  %v601_v18 = vadd.f32 %v3400_v16, %v3843_v23  ;;  %v849_v14 = vmax.bf16 %v823_v9, %v821_v62 }
  0xfa   : > { %v592_v19 = vpop.f32.mrf.mxu0  ;;  %v825_v58 = vld [vmem:[#allocation2 + $0x30] sm:$0xf] }
  0xfb   : > { %797 = vst.msk [vmem:[#allocation2 + $0x40] sm:$0xf] %vm780_vm2, %v3097_v17  ;;  %v3100_v20 = vpack.c.bf16 %v601_v18, %v601_v18  ;;  %v593_v21 = vadd.f32 %v3843_v23, %v592_v19  ;;  %v851_v6 = vmax.bf16 %v827_v63, %v825_v58 }
  0xfc   : > { %v3403_v24 = vpop.f32.mrf.mxu0  ;;  %v828_v17 = vld [vmem:[#allocation2 + $0x3c] sm:$0xf] }
  0xfd   : > { %800 = vst.msk [vmem:[#allocation2 + $0x4c] sm:$0xf] %vm780_vm2, %v3100_v20  ;;  %v3098_v25 = vpack.c.bf16 %v593_v21, %v593_v21  ;;  %v614_v26 = vadd.f32 %v3403_v24, %v3843_v23  ;;  %v845_v21 = vmax.bf16 %v815_v8, %v813_v1  ;;  %v863_v24 = vmax.bf16 %v851_v6, %v849_v14  ;;  %v3911_v1 = vpop.permute.xlu1 %889  ;;  %v3913_v8 = vpop.permute.xlu0 %929 }
  0xfe   : > { %v605_v27 = vpop.f32.mrf.mxu0  ;;  %v826_v11 = vld [vmem:[#allocation2 + $0x34] sm:$0xf] }
  0xff   : > { %798 = vst.msk [vmem:[#allocation2 + $0x44] sm:$0xf] %vm780_vm2, %v3098_v25  ;;  %v3103_v28 = vpack.c.bf16 %v614_v26, %v614_v26  ;;  %v606_v29 = vadd.f32 %v3843_v23, %v605_v27  ;;  %v852_v25 = vmax.bf16 %v828_v17, %v826_v11 }
 0x100   : > { %v3404_v30 = vpop.f32.mrf.mxu0  ;;  %v831_v18 = vld [vmem:[#allocation2 + $0x48] sm:$0xf] }
 0x101   : > { %803 = vst.msk [vmem:[#allocation2 + $0x58] sm:$0xf] %vm780_vm2, %v3103_v28  ;;  %v3101_v31 = vpack.c.bf16 %v606_v29, %v606_v29  ;;  %v617_v32 = vadd.f32 %v3404_v30, %v3843_v23  ;;  %v814_v29 = vld [vmem:[#allocation2 + $0x4] sm:$0xf]  ;;  %v820_v30 = vld [vmem:[#allocation2 + $0x1c] sm:$0xf] }
 0x102   : > { %v608_v33 = vpop.f32.mrf.mxu0 }
 0x103   : > { %801 = vst.msk [vmem:[#allocation2 + $0x50] sm:$0xf] %vm780_vm2, %v3101_v31  ;;  %v3104_v34 = vpack.c.bf16 %v617_v32, %v617_v32  ;;  %v609_v35 = vadd.f32 %v3843_v23, %v608_v33  ;;  %v824_v31 = vld [vmem:[#allocation2 + $0x2c] sm:$0xf] }
 0x104   : > { %v3407_v36 = vpop.f32.mrf.mxu0 }
 0x105   : > { %804 = vst.msk [vmem:[#allocation2 + $0x5c] sm:$0xf] %vm780_vm2, %v3104_v34  ;;  %v3102_v37 = vpack.c.bf16 %v609_v35, %v609_v35  ;;  %v630_v38 = vadd.f32 %v3407_v36, %v3843_v23  ;;  %v861_v35 = vmax.bf16 %v847_v12, %v845_v21  ;;  %v850_v36 = vmax.bf16 %v824_v31, %v822_v10 }
 0x106   : > { %v621_v39 = vpop.f32.mrf.mxu0 }
 0x107   : > { %802 = vst.msk [vmem:[#allocation2 + $0x54] sm:$0xf] %vm780_vm2, %v3102_v37  ;;  %v3107_v40 = vpack.c.bf16 %v630_v38, %v630_v38  ;;  %v622_v41 = vadd.f32 %v3843_v23, %v621_v39  ;;  %v830_v37 = vld [vmem:[#allocation2 + $0x44] sm:$0xf] }
 0x108   : > { %v3408_v42 = vpop.f32.mrf.mxu0  ;;  %v835_v15 = vld [vmem:[#allocation2 + $0x58] sm:$0xf] }
 0x109   : > { %807 = vst.msk [vmem:[#allocation2 + $0x68] sm:$0xf] %vm780_vm2, %v3107_v40  ;;  %v3105_v43 = vpack.c.bf16 %v622_v41, %v622_v41  ;;  %v633_v44 = vadd.f32 %v3408_v42, %v3843_v23  ;;  %v816_v40 = vld [vmem:[#allocation2 + $0xc] sm:$0xf]  ;;  %v848_v41 = vmax.bf16 %v820_v30, %v818_v13 }
 0x10a   : > { %v624_v45 = vpop.f32.mrf.mxu0  ;;  %v833_v7 = vld [vmem:[#allocation2 + $0x50] sm:$0xf]  ;;  %v832_v42 = vld [vmem:[#allocation2 + $0x4c] sm:$0xf] }
 0x10b   : > { %805 = vst.msk [vmem:[#allocation2 + $0x60] sm:$0xf] %vm780_vm2, %v3105_v43  ;;  %v3108_v46 = vpack.c.bf16 %v633_v44, %v633_v44  ;;  %v625_v47 = vadd.f32 %v3843_v23, %v624_v45  ;;  %v855_v19 = vmax.bf16 %v835_v15, %v833_v7 }
 0x10c   : > { %v3411_v48 = vpop.f32.mrf.mxu0  ;;  %v836_v38 = vld [vmem:[#allocation2 + $0x5c] sm:$0xf] }
 0x10d   : > { %808 = vst.msk [vmem:[#allocation2 + $0x6c] sm:$0xf] %vm780_vm2, %v3108_v46  ;;  %v3106_v49 = vpack.c.bf16 %v625_v47, %v625_v47  ;;  %v646_v50 = vadd.f32 %v3411_v48, %v3843_v23  ;;  %v846_v46 = vmax.bf16 %v816_v40, %v814_v29  ;;  %v869_v47 = vmax.bf16 %v863_v24, %v861_v35  ;;  %v3566_v29 = vld [vmem:[%s4564_s4 + $0x20] ss:$0 sps:$4 sm:$0xff]  }
 0x10e   : > { %v637_v51 = vpop.f32.mrf.mxu0  ;;  %v834_v20 = vld [vmem:[#allocation2 + $0x54] sm:$0xf]  ;;  %v864_v48 = vmax.bf16 %v852_v25, %v850_v36  ;;  %v3921_v25 = vpop.permute.xlu0 %933 }
 0x10f   : > { %806 = vst.msk [vmem:[#allocation2 + $0x64] sm:$0xf] %vm780_vm2, %v3106_v49  ;;  %v3111_v52 = vpack.c.bf16 %v646_v50, %v646_v50  ;;  %v638_v53 = vadd.f32 %v3843_v23, %v637_v51  ;;  %v856_v44 = vmax.bf16 %v836_v38, %v834_v20 }
 0x110   : > { %v3412_v54 = vpop.f32.mrf.mxu0  ;;  %v839_v26 = vld [vmem:[#allocation2 + $0x68] sm:$0xf] }
 0x111   : > { %811 = vst.msk [vmem:[#allocation2 + $0x78] sm:$0xf] %vm780_vm2, %v3111_v52  ;;  %v3109_v55 = vpack.c.bf16 %v638_v53, %v638_v53  ;;  %v649_v56 = vadd.f32 %v3412_v54, %v3843_v23  ;;  %v854_v52 = vmax.bf16 %v832_v42, %v830_v37  ;;  %v3567_v37 = vld [vmem:[%s4564_s4 + $0x18] sm:$0xff]   ;;  %v3568_v42 = vld [vmem:[%s4564_s4 + $0x10] sm:$0xff]  }
 0x112   : > { %v640_v57 = vpop.f32.mrf.mxu0  ;;  %v837_v16 = vld [vmem:[#allocation2 + $0x60] sm:$0xf] }
 0x113   : > { %809 = vst.msk [vmem:[#allocation2 + $0x70] sm:$0xf] %vm780_vm2, %v3109_v55  ;;  %v3112_v59 = vpack.c.bf16 %v649_v56, %v649_v56  ;;  %v641_v60 = vadd.f32 %v3843_v23, %v640_v57  ;;  %v829_v23 = vld [vmem:[#allocation2 + $0x40] sm:$0xf]  ;;  %v857_v33 = vmax.bf16 %v839_v26, %v837_v16  ;;  %v862_v56 = vmax.bf16 %v848_v41, %v846_v46 }
 0x114   : > { %v853_v32 = vmax.bf16 %v831_v18, %v829_v23  ;;  %v840_v49 = vld [vmem:[#allocation2 + $0x6c] sm:$0xf]  ;;  %v866_v57 = vmax.bf16 %v856_v44, %v854_v52  ;;  %v3918_v18 = vpop.permute.xlu1 %894 }
 0x115   : > { %812 = vst.msk [vmem:[#allocation2 + $0x7c] sm:$0xf] %vm780_vm2, %v3112_v59  ;;  %v3110_v0 = vpack.c.bf16 %v641_v60, %v641_v60  ;;  %v870_v60 = vmax.bf16 %v864_v48, %v862_v56  ;;  %v3569_v48 = vld [vmem:[%s4564_s4 + $0x8] sm:$0xff]  }
 0x116   : > { %v838_v39 = vld [vmem:[#allocation2 + $0x64] sm:$0xf]  ;;  %v865_v43 = vmax.bf16 %v855_v19, %v853_v32 }
 0x117   : > { %810 = vst.msk [vmem:[#allocation2 + $0x74] sm:$0xf] %vm780_vm2, %v3110_v0  ;;  %v858_v53 = vmax.bf16 %v840_v49, %v838_v39 }
 0x118   : > { %v843_v27 = vld [vmem:[#allocation2 + $0x78] sm:$0xf] }
 0x11a   : > { %v841_v28 = vld [vmem:[#allocation2 + $0x70] sm:$0xf] }
 0x11b   : > { %v859_v34 = vmax.bf16 %v843_v27, %v841_v28 }
 0x11c   : > { %v844_v50 = vld [vmem:[#allocation2 + $0x7c] sm:$0xf] }
 0x11d   : > { %v867_v45 = vmax.bf16 %v859_v34, %v857_v33  ;;  %v1119_v34 = vsel %vm1117_vm4, %v3566_v29, 0 }
 0x11e   : > { %v842_v51 = vld [vmem:[#allocation2 + $0x74] sm:$0xf]  ;;  %3414 = vmatpush3.bf16.msra.mxu1 %v1119_v34 }
 0x11f   : > { %v871_v54 = vmax.bf16 %v867_v45, %v865_v43  ;;  %v860_v55 = vmax.bf16 %v844_v50, %v842_v51  ;;  %3415 = vmatprep.subr.bf16.mxu1 %v4569_v22 }
 0x121   : > { %v868_v58 = vmax.bf16 %v860_v55, %v858_v53  ;;  %v873_v59 = vmax.bf16 %v871_v54, %v869_v47  ;;  %v3570_v54 = vld [vmem:[%s4564_s4] sm:$0xff]  }
 0x122   : > { %3416 = vmatpush3.bf16.msra.mxu1 %v3567_v37 }
 0x123   : > { %v872_v61 = vmax.bf16 %v868_v58, %v866_v57  ;;  %v880_v62 = vunpack.c.l.bf16 %v873_v59  ;;  %3417 = vmatprep.subr.bf16.mxu1 %v4569_v22  ;;  %v1167_v59 = vsub.f32 1.0, %v3784_v2 }
 0x125   : > { %883 = vst.msk [vmem:[#allocation3 + $0x5] sm:$0xff] %vm882_vm3, %v880_v62  ;;  %v874_v63 = vmax.bf16 %v872_v61, %v870_v60  ;;  %v1168_v60 = vsub.f32 1.0, %v3791_v5 }
 0x126   : > { %3418 = vmatpush3.bf16.msra.mxu1 %v3568_v42 }
 0x127   : > { %v881_v0 = vunpack.c.l.bf16 %v874_v63  ;;  %3419 = vmatprep.subr.bf16.mxu1 %v4569_v22 }
 0x129   : > { %884 = vst.msk [vmem:[#allocation3 + $0xd] sm:$0xff] %vm882_vm3, %v881_v0 }
 0x12a   : > { %3420 = vmatpush3.bf16.msra.mxu1 %v3569_v48 }
 0x12b   : > { %3421 = vmatprep.subr.bf16.mxu1 %v4569_v22 }
 0x12c   : > { %v909_v4 = vld [vmem:[#allocation3 + $0x1] sm:$0xff] }
 0x12d   : > { %v3115_v6 = vpack.c.bf16 %v909_v4, %v909_v4  ;;  %v885_v7 = vld [vmem:[#allocation3] sm:$0xff] }
 0x12e   : > { %v972_v9 = vld [vmem:[#allocation3 + $0x5] sm:$0xff]  ;;  %v897_v11 = vmul.f32 %v3911_v1, %v885_v7  ;;  %3422 = vmatpush3.bf16.msra.mxu1 %v3570_v54 }
 0x12f   : > { %v926_v10 = vld [vmem:[#allocation3 + $0x2] sm:$0xff]  ;;  %917 = vrot.lane.b32.xlu0 %v3115_v6, %s3711_s21  ;;  %v3121_v23 = vpack.c.bf16 %v972_v9, %v972_v9  ;;  %3427 = vmatprep.subr.bf16.mxu1 %v4569_v22 }
 0x130   : > { %v910_v12 = vld [vmem:[#allocation3 + $0x9] sm:$0xff]  ;;  %v3113_v13 = vpack.c.bf16 %v897_v11, %v897_v11  ;;  %v936_v15 = vmul.f32 %v3913_v8, %v926_v10  ;;  %v1028_v26 = vld [vmem:[#allocation3 + $0x11] sm:$0xff] }
 0x131   : > { %v3116_v14 = vpack.c.bf16 %v910_v12, %v910_v12  ;;  %v973_v16 = vld [vmem:[#allocation3 + $0xd] sm:$0xff]  ;;  %v953_v17 = vld [vmem:[#allocation3 + $0x4] sm:$0xff]  ;;  %v3128_v31 = vpack.c.bf16 %v1028_v26, %v1028_v26 }
 0x132   : > { %907 = vst.msk [vmem:[#allocation4] sm:$0xf] %vm780_vm2, %v3113_v13  ;;  %v1008_v19 = vld [vmem:[#allocation3 + $0x8] sm:$0xff]  ;;  %v3122_v20 = vpack.c.bf16 %v973_v16, %v973_v16  ;;  %v3117_v21 = vpack.c.bf16 %v936_v15, %v936_v15  ;;  %v955_v24 = vmul.f32 %v953_v17, %v3911_v1  ;;  %v1009_v47 = vld [vmem:[#allocation3 + $0x10] sm:$0xff]  ;;  %v1871_v15 = vld [vmem:[%s4566_s6] sm:$0xf] }
 0x133   : > { %919 = vrot.lane.b32.xlu1 %v3116_v14, %s3711_s21  ;;  %980 = vrot.lane.b32.xlu0 %v3121_v23, %s3712_s22  ;;  %v927_v27 = vld [vmem:[#allocation3 + $0xa] sm:$0xff]  ;;  %v898_v28 = vmul.f32 %v1008_v19, %v3918_v18  ;;  %v1010_v46 = vmul.f32 %v1008_v19, %v3911_v1  ;;  %v1011_v51 = vmul.f32 %v1009_v47, %v3918_v18  ;;  %v1045_v53 = vld [vmem:[#allocation3 + $0x12] sm:$0xff]  ;;  %v1262_v16 = vld [vmem:[%s4566_s6] sm:$0xf]  ;;  %v1883_v17 = vsel %vm1117_vm4, %v1871_v15, 0 }
 0x134   : > { %v3119_v32 = vpack.c.bf16 %v955_v24, %v955_v24  ;;  %v937_v33 = vmul.f32 %v3921_v25, %v927_v27  ;;  %v954_v35 = vld [vmem:[#allocation3 + $0xc] sm:$0xff]  ;;  %v1046_v52 = vmul.f32 %v3913_v8, %v927_v27  ;;  %v1047_v57 = vmul.f32 %v1045_v53, %v3921_v25  ;;  %3464 = vmatpush3.bf16.msra.mxu0 %v1883_v17 }
 0x135   : > { %v3114_v30 = vpack.c.bf16 %v898_v28, %v898_v28  ;;  %v989_v36 = vld [vmem:[#allocation3 + $0x6] sm:$0xff]  ;;  %v956_v39 = vmul.f32 %v954_v35, %v3918_v18  ;;  %v990_v41 = vld [vmem:[#allocation3 + $0xe] sm:$0xff]  ;;  %v3125_v50 = vpack.c.bf16 %v1010_v46, %v1010_v46  ;;  %v3126_v55 = vpack.c.bf16 %v1011_v51, %v1011_v51  ;;  %3475 = vmatprep.subr.bf16.mxu0 %v4569_v22 }
 0x136   : > { %v3118_v38 = vpack.c.bf16 %v937_v33, %v937_v33  ;;  %v991_v40 = vmul.f32 %v989_v36, %v3913_v8  ;;  %v992_v45 = vmul.f32 %v990_v41, %v3921_v25  ;;  %v3129_v56 = vpack.c.bf16 %v1046_v52, %v1046_v52 }
 0x137   : > { %982 = vrot.lane.b32.xlu1 %v3122_v20, %s3712_s22  ;;  %944 = vrot.lane.b32.xlu0 %v3117_v21, %s3713_s23  ;;  %908 = vst.msk [vmem:[#allocation4 + $0x4] sm:$0xf] %vm780_vm2, %v3114_v30  ;;  %v3120_v43 = vpack.c.bf16 %v956_v39, %v956_v39  ;;  %v3130_v58 = vpack.c.bf16 %v1047_v57, %v1047_v57  ;;  %v1274_v19 = vsel %vm1117_vm4, %v1262_v16, 0  ;;  %v2973_v20 = vld [vmem:[%s4565_s5] ss:$0 sm:$0xff] }
 0x138   : > { %v3123_v44 = vpack.c.bf16 %v991_v40, %v991_v40  ;;  %v3124_v49 = vpack.c.bf16 %v992_v45, %v992_v45 }
 0x13b   : > { %1037 = vrot.lane.b32.xlu1 %v3128_v31, %s3714_s30  ;;  %963 = vrot.lane.b32.xlu0 %v3119_v32, %s3715_s9 }
 0x13f   : > { %946 = vrot.lane.b32.xlu1 %v3118_v38, %s3713_s23  ;;  %1035 = vrot.lane.b32.xlu0 %v3116_v14, %s3714_s30  ;;  %s4456_s23 = scalar_lea.vmem %s4568_s8, %s3079_s13 }
 0x143   : > { %965 = vrot.lane.b32.xlu1 %v3120_v43, %s3715_s9  ;;  %999 = vrot.lane.b32.xlu0 %v3123_v44, %s3716_s15 }
 0x147   : > { %1001 = vrot.lane.b32.xlu1 %v3124_v49, %s3716_s15  ;;  %1018 = vrot.lane.b32.xlu0 %v3125_v50, %s3718_s19 }
 0x14b   : > { %1020 = vrot.lane.b32.xlu1 %v3126_v55, %s3718_s19  ;;  %1054 = vrot.lane.b32.xlu0 %v3129_v56, %s3719_s20 }
 0x14f   : > { %1056 = vrot.lane.b32.xlu1 %v3130_v58, %s3719_s20  ;;  %1177 = vperm.xlu0 %3545, %v1167_v59  }
 0x153   : > { %1182 = vperm.xlu1 %3544, %v1168_v60   ;;  %3547 = vset.pattern.permute.xlu0 %v3708_v3 }
 0x154   : > { %1198 = vperm.xlu0 %3547, %v1168_v60  }
 0x157   : > { %3546 = vset.pattern.permute.xlu1 %v3708_v3 }
 0x158   : > { %1194 = vperm.xlu1 %3546, %v1167_v59  }
 0x1a1   : > { %v918_v61 = vpop.permute.xlu0 %917 }
 0x1a2   : > { %924 = vst.msk [vmem:[#allocation4] sm:$0xf] %vm923_vm6, %v918_v61 }
 0x1a5   : > { %v920_v62 = vpop.permute.xlu1 %919  ;;  %v981_v63 = vpop.permute.xlu0 %980 }
 0x1a6   : > { %925 = vst.msk [vmem:[#allocation4 + $0x4] sm:$0xf] %vm923_vm6, %v920_v62 }
 0x1a9   : > { %v983_v0 = vpop.permute.xlu1 %982  ;;  %v945_v2 = vpop.permute.xlu0 %944 }
 0x1aa   : > { %951 = vst.msk [vmem:[#allocation4] sm:$0xf] %vm950_vm7, %v945_v2 }
 0x1ad   : > { %v1038_v5 = vpop.permute.xlu1 %1037  ;;  %v964_v4 = vpop.permute.xlu0 %963 }
 0x1ae   : > { %970 = vst.msk [vmem:[#allocation4] sm:$0xf] %vm969_vm8, %v964_v4 }
 0x1af   : > { %987 = vst.msk [vmem:[#allocation4] sm:$0xf] %vm986_vm9, %v981_v63 }
 0x1b1   : > { %v947_v6 = vpop.permute.xlu1 %946  ;;  %v1036_v7 = vpop.permute.xlu0 %1035 }
 0x1b2   : > { %952 = vst.msk [vmem:[#allocation4 + $0x4] sm:$0xf] %vm950_vm7, %v947_v6 }
 0x1b5   : > { %v966_v3 = vpop.permute.xlu1 %965  ;;  %v1000_v9 = vpop.permute.xlu0 %999 }
 0x1b6   : > { %971 = vst.msk [vmem:[#allocation4 + $0x4] sm:$0xf] %vm969_vm8, %v966_v3 }
 0x1b7   : > { %1006 = vst.msk [vmem:[#allocation4] sm:$0xf] %vm1005_vm10, %v1000_v9  ;;  %v4042_v9 = vld [vmem:[#allocation2] sm:$0xff]  }
 0x1b8   : > { %988 = vst.msk [vmem:[#allocation4 + $0x4] sm:$0xf] %vm986_vm9, %v983_v0 }
 0x1b9   : > { %v1002_v10 = vpop.permute.xlu1 %1001  ;;  %v1019_v11 = vpop.permute.xlu0 %1018 }
 0x1ba   : > { %1007 = vst.msk [vmem:[#allocation4 + $0x4] sm:$0xf] %vm1005_vm10, %v1002_v10  ;;  %v4044_v10 = vld [vmem:[#allocation2 + $0x30] sm:$0xff]  }
 0x1bb   : > { %1025 = vst.msk [vmem:[#allocation4] sm:$0xf] %vm1024_vm11, %v1019_v11 }
 0x1bc   : > { %1042 = vst.msk [vmem:[#allocation4] sm:$0xf] %vm1041_vm12, %v1036_v7  ;;  %v4038_v7 = vld [vmem:[#allocation2 + $0x8] sm:$0xff]  }
 0x1bd   : > { %v1021_v12 = vpop.permute.xlu1 %1020  ;;  %v1055_v13 = vpop.permute.xlu0 %1054 }
 0x1be   : > { %1026 = vst.msk [vmem:[#allocation4 + $0x4] sm:$0xf] %vm1024_vm11, %v1021_v12 }
 0x1bf   : > { %1061 = vst.msk [vmem:[#allocation4] sm:$0xf] %vm1060_vm13, %v1055_v13 }
 0x1c0   : > { %1043 = vst.msk [vmem:[#allocation4 + $0x4] sm:$0xf] %vm1041_vm12, %v1038_v5 }
 0x1c1   : > { %v1057_v14 = vpop.permute.xlu1 %1056 }
 0x1c2   : > { %1062 = vst.msk [vmem:[#allocation4 + $0x4] sm:$0xf] %vm1060_vm13, %v1057_v14 }
 0x1c9   : > { %v3571_v23 = vld [vmem:[#allocation4] sm:$0xff]  }
 0x1ca   : > { %3424 = vmatmul.mubr.msk.bf16.vlgmr.msra.gmra.mxu1 %vm1113_vm14, %v3571_v23  ;;  %v3984_v37 = vpop.permute.xlu0 %1177 }
 0x1cb   : > { %3429 = vmatprep.mubr.msk.bf16.mxu1 %vm3717_vm5, %v4569_v22  ;;  %3428 = vmatpush3.bf16.msra.mxu1 %v1274_v19 }
 0x1cc   : > { %3433 = vmatprep.subr.bf16.mxu1 %v4569_v22 }
 0x1ce   : > { %v3980_v30 = vpop.permute.xlu1 %1182 }
 0x1d3   : > { %v1195_v31 = vpop.permute.xlu1 %1194 }
 0x28a   : > { %v1155_v21 = vpop.f32.mrf.mxu1 }
 0x28b   : > { %v1156_v24 = vadd.f32 %v2973_v20, %v1155_v21 }
 0x28c   : > { %v3425_v26 = vpop.f32.mrf.mxu1 }
 0x28d   : > { %1162 = vst.msk [vmem:[#allocation3 + $0x1] sm:$0xf] %vm780_vm2, %v1156_v24  ;;  %v3213_v26 = vunpack.c.l.bf16 %v4044_v10 }
 0x28e   : > { %1163 = vst.msk [vmem:[#allocation3 + $0x5] sm:$0xff] %vm882_vm3, %v1156_v24  ;;  %v1158_v27 = vpop.f32.mrf.mxu1  ;;  %v4065_v24 = vld [vmem:[#allocation2 + $0x40] sm:$0xff]  }
 0x28f   : > { %v1159_v28 = vadd.f32 %v2973_v20, %v1158_v27  ;;  %v4068_v27 = vld [vmem:[#allocation2 + $0x50] sm:$0xff]  }
 0x290   : > { %v3426_v29 = vpop.f32.mrf.mxu1 }
 0x291   : > { %1166 = vst.msk [vmem:[#allocation3 + $0x11] sm:$0xf0] %vm1165_vm15, %v1159_v28 }
 0x292   : > { %1164 = vst.msk [vmem:[#allocation3 + $0xd] sm:$0xff] %vm882_vm3, %v1159_v28 }
 0x295   : > { %v1205_v32 = vld [vmem:[#allocation3 + $0x5] sm:$0xff] }
 0x296   : > { %v1207_v33 = vld [vmem:[#allocation3 + $0x4] sm:$0xff]  ;;  %v1219_v39 = vmul.f32 %v1205_v32, %v1195_v31  ;;  %v1211_v44 = vmul.f32 %v1205_v32, %v3984_v37  ;;  %v3993_v45 = vmul.f32 0.390625, %v1205_v32  ;;  %v4020_v59 = vmul.f32 0.546875, %v1205_v32 }
 0x297   : > { %v1209_v43 = vmul.f32 %v1207_v33, %v3911_v1  ;;  %v4022_v60 = vld [vmem:[#allocation3 + $0x1] sm:$0xff]  ;;  %v4036_v6 = vmul.f32 0.765625, %v1205_v32  ;;  %v4073_v32 = vld [vmem:[#allocation2 + $0x78] sm:$0xff]  }
 0x298   : > { %4577 = vst [vmem:[#allocation5_spill] sm:$0xff] %v4020_v59  ;;  %v1189_v61 = vld [vmem:[#allocation3 + $0x2] sm:$0xff]  ;;  %v1201_v4 = vmul.f32 %v1195_v31, %v4022_v60  ;;  %v4061_v19 = vmul.f32 0.109375, %v4022_v60 }
 0x299   : > { %v1215_v34 = vld [vmem:[#allocation3 + $0x6] sm:$0xff]  ;;  %v4003_v50 = vadd.f32 %v1211_v44, %v1209_v43  ;;  %v1191_v5 = vmul.f32 %v1189_v61, %v3913_v8  ;;  %4578 = vst [vmem:[#allocation6_spill] sm:$0xff] %v4036_v6  ;;  %v1216_v23 = vld [vmem:[#allocation3 + $0xe] sm:$0xff] }
 0x29a   : > { %v3982_v35 = vld [vmem:[#allocation3 + $0x9] sm:$0xff]  ;;  %v1217_v38 = vmul.f32 %v1215_v34, %v3913_v8  ;;  %4579 = vst [vmem:[#allocation7_spill] sm:$0xff] %v4061_v19  ;;  %v1171_v34 = vld [vmem:[#allocation3] sm:$0xff] }
 0x29b   : > { %v1233_v36 = vld [vmem:[#allocation3 + $0xa] sm:$0xff]  ;;  %v1237_v41 = vmul.f32 %v3982_v35, %v1195_v31  ;;  %v4006_v51 = vmul.f32 0.234375, %v3982_v35  ;;  %v1229_v53 = vmul.f32 %v3982_v35, %v3984_v37  ;;  %v1348_v56 = vmul.f32 0.078125, %v4003_v50 }
 0x29c   : > { %v1235_v40 = vmul.f32 %v1233_v36, %v3913_v8  ;;  %v3989_v42 = vadd.f32 %v1219_v39, %v1217_v38  ;;  %v3996_v47 = vld [vmem:[#allocation3 + $0x8] sm:$0xff]  ;;  %v4029_v0 = vmul.f32 0.328125, %v3982_v35  ;;  %v4052_v8 = vpop.permute.xlu0 %1198  ;;  %v4058_v17 = vadd.f32 %v1201_v4, %v1191_v5  ;;  %v1226_v16 = vld [vmem:[#allocation3 + $0x10] sm:$0xff] }
 0x29d   : > { %v1227_v52 = vmul.f32 %v3996_v47, %v3911_v1  ;;  %v4026_v63 = vadd.f32 %v1348_v56, %v4020_v59  ;;  %v1208_v12 = vld [vmem:[#allocation3 + $0xc] sm:$0xff]  ;;  %v1243_v28 = vmul.f32 0.234375, %v4003_v50  ;;  %v1218_v39 = vmul.f32 %v1216_v23, %v3921_v25 }
 0x29e   : > { %v1550_v46 = vmul.f32 0.234375, %v3989_v42  ;;  %v3998_v48 = vadd.f32 %v1237_v41, %v1235_v40  ;;  %v1854_v62 = vmul.f32 0.109375, %v3989_v42  ;;  %v4054_v14 = vld [vmem:[#allocation3 + $0xd] sm:$0xff]  ;;  %v1210_v31 = vmul.f32 %v1208_v12, %v3918_v18  ;;  %v1367_v41 = vld [vmem:[%s4566_s6] sm:$0xf] }
 0x29f   : > { %v4018_v58 = vadd.f32 %v1229_v53, %v1227_v52  ;;  %v2540_v3 = vadd.f32 %v4029_v0, %v4026_v63  ;;  %v1212_v38 = vmul.f32 %v4054_v14, %v3980_v30  ;;  %v1220_v40 = vmul.f32 %v4054_v14, %v4052_v8 }
 0x2a0   : > { %v4001_v49 = vadd.f32 %v1550_v46, %v3993_v45  ;;  %v2730_v55 = vmul.f32 0.140625, %v3998_v48  ;;  %v4047_v11 = vadd.f32 %v1854_v62, %v4036_v6  ;;  %v1192_v43 = vmul.f32 %v1233_v36, %v3921_v25  ;;  %v2067_v46 = vld [vmem:[%s4566_s6] sm:$0xf] }
 0x2a1   : > { %v4032_v2 = vmul.f32 0.046875, %v4018_v58  ;;  %v1202_v44 = vmul.f32 %v3982_v35, %v4052_v8  ;;  %v4095_v56 = vadd.f32 %v1212_v38, %v1210_v31  ;;  %v4097_v61 = vadd.f32 %v1220_v40, %v1218_v39 }
 0x2a2   : > { %v2728_v54 = vadd.f32 %v4006_v51, %v4001_v49  ;;  %v1858_v33 = vadd.f32 %v4047_v11, %v4061_v19  ;;  %v1173_v62 = vmul.f32 %v1171_v34, %v3911_v1  ;;  %v1185_v5 = vmul.f32 %v3984_v37, %v4022_v60 }
 0x2a3   : > { %v4050_v13 = vadd.f32 %v2540_v3, %v4032_v2  ;;  %v4104_v4 = vsel %vm1117_vm4, %v1367_v41, 0  ;;  %v4107_v3 = vmul.f32 0.234375, %v4022_v60  ;;  %v4110_v23 = vadd.f32 %v1243_v28, %v3993_v45 }
 0x2a4   : > { %v4016_v57 = vadd.f32 %v2730_v55, %v2728_v54  ;;  %v1860_v55 = vmul.f32 0.015625, %v4058_v17  ;;  %v2079_v31 = vsel %vm1117_vm4, %v2067_v46, 0  ;;  %v4113_v38 = vadd.f32 %v1202_v44, %v1192_v43  ;;  %v1224_v43 = vld [vmem:[#allocation3 + $0x11] sm:$0xff] }
 0x2a5   : > { %v1244_v39 = vmul.f32 0.234375, %v4095_v56  ;;  %v4117_v1 = vmul.f32 0.765625, %v4054_v14  ;;  %v1855_v37 = vmul.f32 0.109375, %v4097_v61  ;;  %v4121_v34 = vmul.f32 0.328125, %v4022_v60  ;;  %v1234_v44 = vld [vmem:[#allocation3 + $0x12] sm:$0xff] }
 0x2a6   : > { %v1862_v12 = vadd.f32 %v1860_v55, %v1858_v33  ;;  %v1650_v40 = vmul.f32 0.328125, %v4003_v50  ;;  %v1174_v45 = vmul.f32 %v3996_v47, %v3918_v18  ;;  %v1186_v28 = vmul.f32 %v3982_v35, %v3980_v30 }
 0x2a7   : > { %v4129_v33 = vmul.f32 0.109375, %v3982_v35  ;;  %v4131_v41 = vadd.f32 %v1185_v5, %v1173_v62  ;;  %v1242_v46 = vmul.f32 0.390625, %v4054_v14  ;;  %v1857_v55 = vadd.f32 %v1855_v37, %v4117_v1 }
 0x2a8   : > { %v1868_v15 = vadd.f32 %v3213_v26, %v1862_v12  ;;  %v1249_v54 = vadd.f32 %v4107_v3, %v4110_v23  ;;  %v1349_v47 = vmul.f32 0.078125, %v4095_v56  ;;  %v1551_v36 = vmul.f32 0.234375, %v4097_v61 }
 0x2a9   : > { %4580 = vst [vmem:[#allocation8_spill] sm:$0xff] %v4131_v41  ;;  %v4139_v53 = vadd.f32 %v1244_v39, %v1242_v46  ;;  %v1651_v62 = vmul.f32 0.328125, %v4095_v56  ;;  %v1859_v5 = vadd.f32 %v4129_v33, %v1857_v55  ;;  %v1861_v52 = vmul.f32 0.015625, %v4113_v38 }
 0x2aa   : > { %v4145_v21 = vadd.f32 %v1650_v40, %v4020_v59  ;;  %v4147_v26 = vadd.f32 %v1186_v28, %v1174_v45  ;;  %v1236_v12 = vmul.f32 %v1234_v44, %v3921_v25  ;;  %v1238_v37 = vmul.f32 %v1224_v43, %v4052_v8 }
 0x2ab   : > { %v1228_v20 = vmul.f32 %v1226_v16, %v3918_v18  ;;  %v1230_v39 = vmul.f32 %v1224_v43, %v3980_v30  ;;  %v4154_v22 = vmul.f32 0.546875, %v4054_v14  ;;  %v1863_v29 = vadd.f32 %v1861_v52, %v1859_v5 }
 0x2ac   : > { %v1450_v19 = vmul.f32 0.078125, %v3989_v42  ;;  %v4158_v6 = vmul.f32 0.078125, %v3982_v35  ;;  %v1251_v40 = vmul.f32 0.140625, %v4131_v41  ;;  %v4161_v45 = vadd.f32 %v1551_v36, %v1242_v46 }
 0x2ad   : > { %4581 = vst [vmem:[#allocation9_spill] sm:$0xff] %v4154_v22  ;;  %v1250_v25 = vadd.f32 %v4006_v51, %v4139_v53  ;;  %v1351_v18 = vadd.f32 %v1349_v47, %v4154_v22  ;;  %v4167_v30 = vadd.f32 %v1651_v62, %v4154_v22  ;;  %v4582_v8 = vunpack.c.h.bf16 %v4044_v10 }
 0x2ae   : > { %v1253_v16 = vadd.f32 %v1251_v40, %v1249_v54  ;;  %v2054_v35 = vadd.f32 %v4158_v6, %v4145_v21  ;;  %v4173_v52 = vadd.f32 %v1238_v37, %v1236_v12  ;;  %v4175_v28 = vmul.f32 0.234375, %v1224_v43 }
 0x2af   : > { %v1869_v14 = vadd.f32 %v4582_v8, %v1863_v29  ;;  %v4177_v36 = vadd.f32 %v1230_v39, %v1228_v20  ;;  %v4179_v46 = vmul.f32 0.078125, %v1224_v43  ;;  %v1252_v47 = vmul.f32 0.140625, %v4147_v26 }
 0x2b0   : > { %v4183_v62 = vadd.f32 %v1450_v19, %v4020_v59  ;;  %v2250_v10 = vmul.f32 0.015625, %v3998_v48  ;;  %v1451_v29 = vmul.f32 0.078125, %v4097_v61  ;;  %v2729_v54 = vadd.f32 %v4175_v28, %v4161_v45 }
 0x2b1   : > { %v1870_v44 = vpack.c.bf16 %v1869_v14, %v1868_v15  ;;  %4583 = vst [vmem:[#allocation10_spill] sm:$0xff] %v4179_v46  ;;  %v2248_v5 = vadd.f32 %v4129_v33, %v4047_v11  ;;  %v1355_v20 = vadd.f32 %v4029_v0, %v1351_v18  ;;  %v2055_v15 = vadd.f32 %v4179_v46, %v4167_v30 }
 0x2b2   : > { %v1254_v12 = vadd.f32 %v1252_v47, %v1250_v25  ;;  %v1354_v19 = vadd.f32 %v4121_v34, %v4026_v63  ;;  %v2058_v37 = vadd.f32 %v4032_v2, %v2054_v35  ;;  %v4198_v39 = vmul.f32 0.109375, %v1224_v43 }
 0x2b3   : > { %3466 = vmatmul.mubr.msk.bf16.vlgmr.msra.gmra.mxu0 %vm882_vm3, %v1870_v44  ;;  %v2731_v40 = vmul.f32 0.140625, %v4173_v52  ;;  %v4584_v8 = vmov 0.0   ;;  %v4585_v11 = vunpack.c.l.bf16 %v4042_v9  ;;  %v4586_v25 = vunpack.c.h.bf16 %v4042_v9 }
 0x2b4   : > { %3476 = vmatpush3.bf16.msra.mxu0 %v2079_v31  ;;  %3477 = vmatprep.mubr.msk.bf16.mxu0 %vm3717_vm5, %v4584_v8  ;;  %v4208_v44 = vmul.f32 0.046875, %v4147_v26  ;;  %v2057_v63 = vmul.f32 0.046875, %v4177_v36  ;;  %v4213_v2 = vmul.f32 0.046875, %v4131_v41  ;;  %v4216_v31 = vadd.f32 %v1451_v29, %v4154_v22 }
 0x2b5   : > { %v1259_v14 = vadd.f32 %v4585_v11, %v1253_v16  ;;  %v1260_v47 = vadd.f32 %v4586_v25, %v1254_v12  ;;  %3487 = vmatprep.subr.bf16.mxu0 %v4584_v8  ;;  %v2249_v35 = vadd.f32 %v4198_v39, %v1857_v55  ;;  %v2733_v46 = vadd.f32 %v2731_v40, %v2729_v54  ;;  %v2261_v25 = vld [vmem:[%s4566_s6] sm:$0xf] }
 0x2b6   : > { %v4219_v16 = vmul.f32 0.328125, %v1224_v43  ;;  %v1359_v12 = vadd.f32 %v4208_v44, %v1355_v20  ;;  %v2059_v11 = vadd.f32 %v2057_v63, %v2055_v15  ;;  %v1454_v41 = vadd.f32 %v4183_v62, %v4121_v34 }
 0x2b7   : > { %v1261_v9 = vpack.c.bf16 %v1260_v47, %v1259_v14  ;;  %v2252_v59 = vadd.f32 %v2250_v10, %v2248_v5  ;;  %v1358_v29 = vadd.f32 %v4213_v2, %v1354_v19  ;;  %v3286_v22 = vunpack.c.h.bf16 %v4073_v32  ;;  %v3315_v14 = vld [vmem:[#allocation2 + $0x68] sm:$0xff]  }
 0x2b8   : > { %v2251_v55 = vmul.f32 0.015625, %v4173_v52  ;;  %v2541_v43 = vadd.f32 %v4219_v16, %v1351_v18  ;;  %v4587_v54 = vunpack.c.l.bf16 %v4065_v24  ;;  %v4588_v15 = vunpack.c.h.bf16 %v4065_v24 }
 0x2b9   : > { %3430 = vmatmul.mubr.msk.bf16.vlgmr.msra.gmra.mxu1 %vm882_vm3, %v1261_v9  ;;  %v4589_v34 = vunpack.c.l.bf16 %v4073_v32  ;;  %v1455_v5 = vadd.f32 %v4029_v0, %v4216_v31  ;;  %v4243_v19 = vadd.f32 %v3286_v22, %v2733_v46  ;;  %v2273_v18 = vsel %vm1117_vm4, %v2261_v25, 0  ;;  %v1467_v22 = vld [vmem:[%s4566_s6] sm:$0xf]  ;;  %v3293_v25 = vld [vmem:[#allocation2 + $0x10] sm:$0xff]  }
 0x2ba   : > { %v2064_v20 = vadd.f32 %v4587_v54, %v2058_v37  ;;  %v2065_v40 = vadd.f32 %v4588_v15, %v2059_v11  ;;  %3434 = vmatpush3.bf16.msra.mxu1 %v4104_v4  ;;  %3435 = vmatprep.mubr.msk.bf16.mxu1 %vm3717_vm5, %v4584_v8  ;;  %v4250_v24 = vmul.f32 0.046875, %v4058_v17  ;;  %v2253_v37 = vadd.f32 %v2251_v55, %v2249_v35 }
 0x2bb   : > { %v4239_v10 = vadd.f32 %v4589_v34, %v4016_v57  ;;  %3439 = vmatprep.subr.bf16.mxu1 %v4584_v8  ;;  %v4590_v57 = vunpack.c.h.bf16 %v4038_v7  ;;  %v3246_v4 = vunpack.c.h.bf16 %v4068_v27  ;;  %v4260_v47 = vmul.f32 0.046875, %v4113_v38 }
 0x2bc   : > { %v2066_v46 = vpack.c.bf16 %v2065_v40, %v2064_v20  ;;  %v3269_v9 = vunpack.c.l.bf16 %v3315_v14  ;;  %v3270_v11 = vunpack.c.h.bf16 %v3315_v14  ;;  %v1458_v35 = vadd.f32 %v4250_v24, %v1454_v41  ;;  %v2455_v41 = vld [vmem:[%s4566_s6] sm:$0xf] }
 0x2bd   : > { %v1365_v32 = vadd.f32 %v4590_v57, %v1359_v12  ;;  %v4591_v55 = vunpack.c.l.bf16 %v4068_v27  ;;  %v4592_v12 = vunpack.c.l.bf16 %v4038_v7  ;;  %v2543_v34 = vadd.f32 %v2541_v43, %v2057_v63 }
 0x2be   : > { %3478 = vmatmul.mubr.msk.bf16.vlgmr.msra.gmra.mxu0 %vm882_vm3, %v2066_v46  ;;  %v1459_v20 = vadd.f32 %v4260_v47, %v1455_v5  ;;  %v2443_v40 = vadd.f32 %v4175_v28, %v4139_v53  ;;  %v1479_v57 = vsel %vm1117_vm4, %v1467_v22, 0  ;;  %v2259_v27 = vadd.f32 %v3246_v4, %v2253_v37  ;;  %v1567_v4 = vld [vmem:[%s4566_s6] sm:$0xf] }
 0x2bf   : > { %v2258_v54 = vadd.f32 %v4591_v55, %v2252_v59  ;;  %v1364_v15 = vadd.f32 %v4592_v12, %v1358_v29  ;;  %3488 = vmatpush3.bf16.msra.mxu0 %v2273_v18  ;;  %3489 = vmatprep.mubr.msk.bf16.mxu0 %vm3717_vm5, %v4584_v8  ;;  %v2740_v59 = vpack.c.bf16 %v4243_v19, %v4239_v10  ;;  %v3181_v28 = vunpack.c.l.bf16 %v3293_v25 }
 0x2c0   : > { %3499 = vmatprep.subr.bf16.mxu0 %v4584_v8  ;;  %v4281_v63 = vadd.f32 %v3269_v9, %v4050_v13  ;;  %v4283_v53 = vadd.f32 %v3270_v11, %v2543_v34  ;;  %v3182_v29 = vunpack.c.h.bf16 %v3293_v25  ;;  %v2442_v43 = vadd.f32 %v4006_v51, %v4110_v23  ;;  %v3313_v23 = vld [vmem:[#allocation2 + $0x60] sm:$0xff]  }
 0x2c1   : > { %v1366_v7 = vpack.c.bf16 %v1365_v32, %v1364_v15  ;;  %v2444_v14 = vmul.f32 0.140625, %v4018_v58  ;;  %v2445_v5 = vmul.f32 0.140625, %v4177_v36  ;;  %v1464_v37 = vadd.f32 %v3181_v28, %v1458_v35 }
 0x2c2   : > { %v2550_v18 = vpack.c.bf16 %v4283_v53, %v4281_v63  ;;  %v1554_v13 = vadd.f32 %v4001_v49, %v4107_v3  ;;  %v2467_v32 = vsel %vm1117_vm4, %v2455_v41, 0  ;;  %v1465_v22 = vadd.f32 %v3182_v29, %v1459_v20  ;;  %v3295_v3 = vld [vmem:[#allocation2 + $0x18] sm:$0xff]  }
 0x2c3   : > { %3436 = vmatmul.mubr.msk.bf16.vlgmr.msra.gmra.mxu1 %vm882_vm3, %v1366_v7  ;;  %v1555_v46 = vadd.f32 %v4006_v51, %v4161_v45  ;;  %v2260_v9 = vpack.c.bf16 %v2259_v27, %v2258_v54  ;;  %v2447_v11 = vadd.f32 %v2445_v5, %v2443_v40  ;;  %v1556_v49 = vmul.f32 0.140625, %v4058_v17  ;;  %v2645_v17 = vld [vmem:[%s4566_s6] sm:$0xf]  ;;  %v3317_v40 = vld [vmem:[#allocation2 + $0x70] sm:$0xff]  }
 0x2c4   : > { %3440 = vmatpush3.bf16.msra.mxu1 %v1479_v57  ;;  %3441 = vmatprep.mubr.msk.bf16.mxu1 %vm3717_vm5, %v4584_v8  ;;  %v2446_v25 = vadd.f32 %v2444_v14, %v2442_v43  ;;  %v1557_v35 = vmul.f32 0.140625, %v4113_v38  ;;  %v3262_v55 = vunpack.c.h.bf16 %v3313_v23  ;;  %v2634_v51 = vadd.f32 %v4029_v0, %v4183_v62 }
 0x2c5   : > { %3445 = vmatprep.subr.bf16.mxu1 %v4584_v8  ;;  %v1558_v12 = vadd.f32 %v1556_v49, %v1554_v13  ;;  %v1579_v45 = vsel %vm1117_vm4, %v1567_v4, 0  ;;  %v3261_v54 = vunpack.c.l.bf16 %v3313_v23  ;;  %v2635_v38 = vadd.f32 %v4219_v16, %v4216_v31  ;;  %v3297_v23 = vld [vmem:[#allocation2 + $0x20] sm:$0xff]  }
 0x2c6   : > { %3490 = vmatmul.mubr.msk.bf16.vlgmr.msra.gmra.mxu0 %vm882_vm3, %v2260_v9  ;;  %v1559_v15 = vadd.f32 %v1557_v35, %v1555_v46  ;;  %v1466_v34 = vpack.c.bf16 %v1465_v22, %v1464_v37  ;;  %v2453_v20 = vadd.f32 %v3262_v55, %v2447_v11  ;;  %v3189_v0 = vunpack.c.l.bf16 %v3295_v3 }
 0x2c7   : > { %3500 = vmatpush3.bf16.msra.mxu0 %v2467_v32  ;;  %3501 = vmatprep.mubr.msk.bf16.mxu0 %vm3717_vm5, %v4584_v8  ;;  %v4318_v62 = vmul.f32 0.046875, %v3998_v48  ;;  %v3190_v57 = vunpack.c.h.bf16 %v3295_v3  ;;  %v4321_v27 = vmul.f32 0.046875, %v4173_v52  ;;  %v2452_v7 = vadd.f32 %v3261_v54, %v2446_v25  ;;  %v4595_v54 = vld [vmem:[#allocation5_spill] sm:$0xff] }
 0x2c8   : > { %3511 = vmatprep.subr.bf16.mxu0 %v4584_v8  ;;  %v2657_v41 = vsel %vm1117_vm4, %v2645_v17, 0  ;;  %v1564_v28 = vadd.f32 %v3189_v0, %v1558_v12  ;;  %v1654_v31 = vmul.f32 0.078125, %v4022_v60  ;;  %v1753_v29 = vmul.f32 0.109375, %v4095_v56  ;;  %v1667_v60 = vld [vmem:[%s4566_s6] sm:$0xf]  ;;  %v4594_v12 = vld [vmem:[#allocation7_spill] sm:$0xff] }
 0x2c9   : > { %v2636_v16 = vadd.f32 %v2634_v51, %v4318_v62  ;;  %v1565_v48 = vadd.f32 %v3190_v57, %v1559_v15  ;;  %v1657_v52 = vadd.f32 %v4158_v6, %v4167_v30  ;;  %v2637_v43 = vadd.f32 %v2635_v38, %v4321_v27  ;;  %v4596_v38 = vld [vmem:[#allocation8_spill] sm:$0xff] }
 0x2ca   : > { %v2454_v14 = vpack.c.bf16 %v2453_v20, %v2452_v7  ;;  %v3277_v5 = vunpack.c.l.bf16 %v3317_v40  ;;  %v1656_v56 = vadd.f32 %v1654_v31, %v4145_v21  ;;  %v1752_v37 = vmul.f32 0.109375, %v4003_v50  ;;  %v4593_v50 = vld [vmem:[#allocation6_spill] sm:$0xff]  ;;  %v4597_v20 = vld [vmem:[#allocation9_spill] sm:$0xff] }
 0x2cb   : > { %3442 = vmatmul.mubr.msk.bf16.vlgmr.msra.gmra.mxu1 %vm882_vm3, %v1466_v34  ;;  %v3278_v13 = vunpack.c.h.bf16 %v3317_v40  ;;  %v1679_v30 = vsel %vm1117_vm4, %v1667_v60, 0  ;;  %v1755_v22 = vadd.f32 %v1753_v29, %v4117_v1  ;;  %v1566_v4 = vpack.c.bf16 %v1565_v48, %v1564_v28  ;;  %v1969_v48 = vld [vmem:[%s4566_s6] sm:$0xf] }
 0x2cc   : > { %3446 = vmatpush3.bf16.msra.mxu1 %v1579_v45  ;;  %3447 = vmatprep.mubr.msk.bf16.mxu1 %vm3717_vm5, %v4584_v8  ;;  %v2642_v32 = vadd.f32 %v3277_v5, %v2636_v16  ;;  %v1659_v9 = vadd.f32 %v1657_v52, %v4208_v44  ;;  %v1658_v21 = vadd.f32 %v1656_v56, %v4213_v2  ;;  %v3198_v49 = vunpack.c.h.bf16 %v3297_v23  ;;  %v1771_v2 = vld [vmem:[%s4566_s6] sm:$0xf] }
 0x2cd   : > { %3451 = vmatprep.subr.bf16.mxu1 %v4584_v8  ;;  %v2643_v46 = vadd.f32 %v3278_v13, %v2637_v43  ;;  %v1754_v11 = vadd.f32 %v1752_v37, %v4593_v50  ;;  %v1954_v3 = vmul.f32 0.328125, %v3989_v42  ;;  %v3197_v25 = vunpack.c.l.bf16 %v3297_v23  ;;  %v3303_v43 = vld [vmem:[#allocation2 + $0x38] sm:$0xff]  }
 0x2ce   : > { %3502 = vmatmul.mubr.msk.bf16.vlgmr.msra.gmra.mxu0 %vm882_vm3, %v2454_v14  ;;  %v1759_v1 = vadd.f32 %v4129_v33, %v1755_v22  ;;  %v1955_v35 = vmul.f32 0.328125, %v4097_v61  ;;  %v1665_v44 = vadd.f32 %v3198_v49, %v1659_v9  ;;  %v1761_v45 = vmul.f32 0.015625, %v4147_v26  ;;  %v3299_v61 = vld [vmem:[#allocation2 + $0x28] sm:$0xff]  }
 0x2cf   : > { %3512 = vmatpush3.bf16.msra.mxu0 %v2657_v41  ;;  %3513 = vmatprep.mubr.msk.bf16.mxu0 %vm3717_vm5, %v4584_v8  ;;  %v2644_v55 = vpack.c.bf16 %v2643_v46, %v2642_v32  ;;  %v1758_v51 = vadd.f32 %v4594_v12, %v1754_v11  ;;  %v1664_v42 = vadd.f32 %v3197_v25, %v1658_v21  ;;  %v1783_v15 = vsel %vm1117_vm4, %v1771_v2, 0 }
 0x2d0   : > { %v1956_v17 = vadd.f32 %v1954_v3, %v4595_v54  ;;  %v1760_v34 = vmul.f32 0.015625, %v4596_v38  ;;  %v1957_v0 = vadd.f32 %v1955_v35, %v4597_v20  ;;  %v1763_v57 = vadd.f32 %v1761_v45, %v1759_v1  ;;  %v2357_v3 = vld [vmem:[%s4566_s6] sm:$0xf]  ;;  %v3311_v1 = vld [vmem:[#allocation2 + $0x58] sm:$0xff]  }
 0x2d1   : > { %v1666_v40 = vpack.c.bf16 %v1665_v44, %v1664_v42  ;;  %v3206_v41 = vunpack.c.h.bf16 %v3299_v61  ;;  %v3205_v16 = vunpack.c.l.bf16 %v3299_v61  ;;  %v1981_v56 = vsel %vm1117_vm4, %v1969_v48, 0  ;;  %v2741_v54 = vld [vmem:[%s4566_s6] sm:$0xf] }
 0x2d2   : > { %v1762_v7 = vadd.f32 %v1760_v34, %v1758_v51  ;;  %v1958_v26 = vadd.f32 %v1956_v17, %v1654_v31  ;;  %v1959_v28 = vadd.f32 %v4158_v6, %v1957_v0  ;;  %v3221_v31 = vunpack.c.l.bf16 %v3303_v43 }
 0x2d3   : > { %3448 = vmatmul.mubr.msk.bf16.vlgmr.msra.gmra.mxu1 %vm882_vm3, %v1566_v4  ;;  %v1769_v29 = vadd.f32 %v3206_v41, %v1763_v57  ;;  %v3222_v37 = vunpack.c.h.bf16 %v3303_v43  ;;  %v2154_v23 = vmul.f32 0.015625, %v4018_v58  ;;  %v2155_v46 = vmul.f32 0.015625, %v4177_v36  ;;  %v3307_v4 = vld [vmem:[#allocation2 + $0x48] sm:$0xff]  }
 0x2d4   : > { %3452 = vmatpush3.bf16.msra.mxu1 %v1679_v30  ;;  %3453 = vmatprep.mubr.msk.bf16.mxu1 %vm3717_vm5, %v4584_v8  ;;  %v1768_v52 = vadd.f32 %v3205_v16, %v1762_v7  ;;  %v1960_v60 = vadd.f32 %v1958_v26, %v4250_v24  ;;  %v1961_v14 = vadd.f32 %v1959_v28, %v4260_v47  ;;  %v2165_v24 = vld [vmem:[%s4566_s6] sm:$0xf]  ;;  %v3237_v58 = vunpack.c.l.bf16 %v3307_v4 }
 0x2d5   : > { %3457 = vmatprep.subr.bf16.mxu1 %v4584_v8  ;;  %v2153_v30 = vadd.f32 %v4198_v39, %v1755_v22  ;;  %v2152_v47 = vadd.f32 %v4129_v33, %v1754_v11  ;;  %v2177_v21 = vsel %vm1117_vm4, %v2165_v24, 0  ;;  %v3238_v39 = vunpack.c.h.bf16 %v3307_v4  ;;  %v4598_v33 = vld [vmem:[#allocation10_spill] sm:$0xff] }
 0x2d6   : > { %3514 = vmatmul.mubr.msk.bf16.vlgmr.msra.gmra.mxu0 %vm882_vm3, %v2644_v55  ;;  %v1770_v5 = vpack.c.bf16 %v1769_v29, %v1768_v52  ;;  %v1966_v13 = vadd.f32 %v3221_v31, %v1960_v60  ;;  %v1967_v32 = vadd.f32 %v3222_v37, %v1961_v14  ;;  %v2344_v22 = vadd.f32 %v4158_v6, %v1956_v17 }
 0x2d7   : > { %v2157_v50 = vadd.f32 %v2155_v46, %v2153_v30  ;;  %v2156_v49 = vadd.f32 %v2154_v23, %v2152_v47  ;;  %v2345_v11 = vadd.f32 %v4598_v33, %v1957_v0  ;;  %v2369_v55 = vsel %vm1117_vm4, %v2357_v3, 0 }
 0x2d8   : > { %v1968_v9 = vpack.c.bf16 %v1967_v32, %v1966_v13  ;;  %v2348_v35 = vadd.f32 %v4318_v62, %v2344_v22  ;;  %v3253_v6 = vunpack.c.l.bf16 %v3311_v1  ;;  %v3254_v12 = vunpack.c.h.bf16 %v3311_v1  ;;  %v2551_v62 = vld [vmem:[%s4566_s6] sm:$0xf] }
 0x2d9   : > { %v2163_v36 = vadd.f32 %v3238_v39, %v2157_v50  ;;  %v2162_v25 = vadd.f32 %v3237_v58, %v2156_v49  ;;  %v2349_v44 = vadd.f32 %v4321_v27, %v2345_v11  ;;  %v2563_v45 = vsel %vm1117_vm4, %v2551_v62, 0 }
 0x2da   : > { %v2354_v51 = vadd.f32 %v3253_v6, %v2348_v35  ;;  %v2753_v17 = vsel %vm1117_vm4, %v2741_v54, 0 }
 0x2db   : > { %3454 = vmatmul.mubr.msk.bf16.vlgmr.msra.gmra.mxu1 %vm882_vm3, %v1666_v40  ;;  %v2164_v2 = vpack.c.bf16 %v2163_v36, %v2162_v25  ;;  %v2355_v42 = vadd.f32 %v3254_v12, %v2349_v44  ;;  %v3302_v12 = vld [vmem:[%s3798_s18 + $0x30] sm:$0xff]  }
 0x2dc   : > { %3458 = vmatpush3.bf16.msra.mxu1 %v1783_v15  ;;  %3459 = vmatprep.mubr.msk.bf16.mxu1 %vm3717_vm5, %v4584_v8  ;;  %v4428_v15 = vld [vmem:[%s4567_s7] ss:$0 sm:$0xff] }
 0x2dd   : > { %3469 = vmatprep.subr.bf16.mxu1 %v4584_v8  ;;  %v2356_v27 = vpack.c.bf16 %v2355_v42, %v2354_v51 }
 0x2e3   : > { %3460 = vmatmul.mubr.msk.bf16.vlgmr.msra.gmra.mxu1 %vm882_vm3, %v1770_v5 }
 0x2e4   : > { %3470 = vmatpush3.bf16.msra.mxu1 %v1981_v56  ;;  %3471 = vmatprep.mubr.msk.bf16.mxu1 %vm3717_vm5, %v4584_v8 }
 0x2e5   : > { %3481 = vmatprep.subr.bf16.mxu1 %v4584_v8 }
 0x2eb   : > { %3472 = vmatmul.mubr.msk.bf16.vlgmr.msra.gmra.mxu1 %vm882_vm3, %v1968_v9 }
 0x2ec   : > { %3482 = vmatpush3.bf16.msra.mxu1 %v2177_v21  ;;  %3483 = vmatprep.mubr.msk.bf16.mxu1 %vm3717_vm5, %v4584_v8 }
 0x2ed   : > { %3493 = vmatprep.subr.bf16.mxu1 %v4584_v8 }
 0x2f3   : > { %3484 = vmatmul.mubr.msk.bf16.vlgmr.msra.gmra.mxu1 %vm882_vm3, %v2164_v2 }
 0x2f4   : > { %3494 = vmatpush3.bf16.msra.mxu1 %v2369_v55  ;;  %3495 = vmatprep.mubr.msk.bf16.mxu1 %vm3717_vm5, %v4584_v8 }
 0x2f5   : > { %3505 = vmatprep.subr.bf16.mxu1 %v4584_v8 }
 0x2fb   : > { %3496 = vmatmul.mubr.msk.bf16.vlgmr.msra.gmra.mxu1 %vm882_vm3, %v2356_v27 }
 0x2fc   : > { %3506 = vmatpush3.bf16.msra.mxu1 %v2563_v45  ;;  %3507 = vmatprep.mubr.msk.bf16.mxu1 %vm3717_vm5, %v4584_v8 }
 0x2fd   : > { %3517 = vmatprep.subr.bf16.mxu1 %v4584_v8 }
 0x303   : > { %3508 = vmatmul.mubr.msk.bf16.vlgmr.msra.gmra.mxu1 %vm882_vm3, %v2550_v18 }
 0x304   : > { %3518 = vmatpush3.bf16.msra.mxu1 %v2753_v17  ;;  %3519 = vmatprep.mubr.msk.bf16.mxu1 %vm3717_vm5, %v4584_v8 }
 0x30b   : > { %3520 = vmatmul.mubr.msk.bf16.vlgmr.msra.gmra.mxu1 %vm882_vm3, %v2740_v59 }
 0x373   : > { %v1919_v61 = vpop.f32.mrf.mxu0 }
 0x374   : > { %v1920_v38 = vadd.f32 %v4428_v15, %v1919_v61 }
 0x375   : > { %v3467_v63 = vpop.f32.mrf.mxu0 }
 0x376   : > { %v3019_v53 = vmul.f32 -1.442695, %v1920_v38  ;;  %v3217_v63 = vunpack.c.l.bf16 %v3302_v12 }
 0x377   : > { %v1922_v18 = vpop.f32.mrf.mxu0 }
 0x378   : > { %3572 = vpow2.f32 %v3019_v53  ;;  %v1923_v34 = vadd.f32 %v4428_v15, %v1922_v18 }
 0x379   : > { %v1310_v8 = vpop.f32.mrf.mxu1  ;;  %v3468_v20 = vpop.f32.mrf.mxu0 }
 0x37a   : > { %v1311_v10 = vadd.f32 %v4428_v15, %v1310_v8  ;;  %v3020_v19 = vmul.f32 -1.442695, %v1923_v34 }
 0x37b   : > { %v3431_v59 = vpop.f32.mrf.mxu1 }
 0x37c   : > { %v2983_v0 = vmul.f32 -1.442695, %v1311_v10  ;;  %3574 = vpow2.f32 %v3020_v19  ;;  %v4447_v19 = vld [vmem:[%s3798_s18] sm:$0xff]  }
 0x37d   : > { %v1313_v40 = vpop.f32.mrf.mxu1 }
 0x37e   : > { %v2115_v57 = vpop.f32.mrf.mxu0  ;;  %3576 = vpow2.f32 %v2983_v0  ;;  %v1314_v7 = vadd.f32 %v4428_v15, %v1313_v40 }
 0x37f   : > { %v2116_v41 = vadd.f32 %v4428_v15, %v2115_v57  ;;  %v3432_v26 = vpop.f32.mrf.mxu1  ;;  %v3218_v57 = vunpack.c.h.bf16 %v3302_v12 }
 0x380   : > { %v3479_v28 = vpop.f32.mrf.mxu0  ;;  %v2984_v16 = vmul.f32 -1.442695, %v1314_v7 }
 0x381   : > { %v3031_v29 = vmul.f32 -1.442695, %v2116_v41 }
 0x382   : > { %v2118_v52 = vpop.f32.mrf.mxu0  ;;  %3578 = vpow2.f32 %v2984_v16 }
 0x383   : > { %v1415_v48 = vpop.f32.mrf.mxu1  ;;  %v2119_v60 = vadd.f32 %v4428_v15, %v2118_v52  ;;  %3580 = vpow2.f32 %v3031_v29 }
 0x384   : > { %v1416_v43 = vadd.f32 %v4428_v15, %v1415_v48  ;;  %v3480_v5 = vpop.f32.mrf.mxu0 }
 0x385   : > { %v3437_v14 = vpop.f32.mrf.mxu1  ;;  %v3032_v31 = vmul.f32 -1.442695, %v2119_v60  ;;  %v3573_v37 = vpop.eup %3572 }
 0x386   : > { %v2989_v56 = vmul.f32 -1.442695, %v1416_v43  ;;  %v2309_v32 = vpop.f32.mrf.mxu0  ;;  %v1934_v30 = vadd.f32 1.0, %v3573_v37  ;;  %v3169_v43 = vunpack.c.l.bf16 %v4447_v19 }
 0x387   : > { %v1418_v13 = vpop.f32.mrf.mxu1  ;;  %v2310_v47 = vadd.f32 %v4428_v15, %v2309_v32 }
 0x388   : > { %3582 = vpow2.f32 %v2989_v56  ;;  %v1419_v24 = vadd.f32 %v4428_v15, %v1418_v13  ;;  %v3491_v46 = vpop.f32.mrf.mxu0 }
 0x389   : > { %3584 = vpow2.f32 %v3032_v31  ;;  %v3438_v23 = vpop.f32.mrf.mxu1  ;;  %v3043_v9 = vmul.f32 -1.442695, %v2310_v47  ;;  %v3575_v21 = vpop.eup %3574  ;;  %v3306_v46 = vld [vmem:[%s3798_s18 + $0x40] sm:$0xff]  }
 0x38a   : > { %3586 = vrcp.f32 %v1934_v30  ;;  %v2990_v4 = vmul.f32 -1.442695, %v1419_v24  ;;  %v2312_v49 = vpop.f32.mrf.mxu0  ;;  %v1935_v39 = vadd.f32 1.0, %v3575_v21 }
 0x38b   : > { %v1515_v50 = vpop.f32.mrf.mxu1  ;;  %v2313_v33 = vadd.f32 %v4428_v15, %v2312_v49  ;;  %v3577_v11 = vpop.eup %3576 }
 0x38c   : > { %3588 = vpow2.f32 %v2990_v4  ;;  %v1516_v22 = vadd.f32 %v4428_v15, %v1515_v50  ;;  %v3492_v36 = vpop.f32.mrf.mxu0  ;;  %v1325_v3 = vadd.f32 1.0, %v3577_v11  ;;  %v3170_v50 = vunpack.c.h.bf16 %v4447_v19 }
 0x38d   : > { %3590 = vpow2.f32 %v3043_v9  ;;  %v3443_v58 = vpop.f32.mrf.mxu1  ;;  %v3044_v1 = vmul.f32 -1.442695, %v2313_v33 }
 0x38e   : > { %3592 = vrcp.f32 %v1935_v39  ;;  %v2995_v25 = vmul.f32 -1.442695, %v1516_v22  ;;  %v2503_v44 = vpop.f32.mrf.mxu0 }
 0x38f   : > { %v1518_v35 = vpop.f32.mrf.mxu1  ;;  %3594 = vrcp.f32 %v1325_v3  ;;  %v2504_v55 = vadd.f32 %v4428_v15, %v2503_v44  ;;  %v3579_v6 = vpop.eup %3578  ;;  %v3292_v3 = vld [vmem:[%s3798_s18 + $0x8] sm:$0xff]  }
 0x390   : > { %v1519_v2 = vadd.f32 %v4428_v15, %v1518_v35  ;;  %3596 = vpow2.f32 %v2995_v25  ;;  %v3503_v42 = vpop.f32.mrf.mxu0  ;;  %v3581_v62 = vpop.eup %3580  ;;  %v1326_v27 = vadd.f32 1.0, %v3579_v6  ;;  %v3233_v25 = vunpack.c.l.bf16 %v3306_v46 }
 0x391   : > { %v3444_v51 = vpop.f32.mrf.mxu1  ;;  %3598 = vpow2.f32 %v3044_v1  ;;  %v2130_v54 = vadd.f32 1.0, %v3581_v62  ;;  %v3055_v61 = vmul.f32 -1.442695, %v2504_v55 }
 0x392   : > { %v2996_v45 = vmul.f32 -1.442695, %v1519_v2  ;;  %v2506_v38 = vpop.f32.mrf.mxu0  ;;  %3600 = vrcp.f32 %v1326_v27  ;;  %v3177_v27 = vunpack.c.l.bf16 %v3292_v3 }
 0x393   : > { %v1615_v17 = vpop.f32.mrf.mxu1  ;;  %v2507_v18 = vadd.f32 %v4428_v15, %v2506_v38  ;;  %3602 = vrcp.f32 %v2130_v54 }
 0x394   : > { %v1616_v53 = vadd.f32 %v4428_v15, %v1615_v17  ;;  %v3504_v20 = vpop.f32.mrf.mxu0  ;;  %3604 = vpow2.f32 %v2996_v45 }
 0x395   : > { %v3583_v34 = vpop.eup %3582  ;;  %v3449_v8 = vpop.f32.mrf.mxu1  ;;  %3606 = vpow2.f32 %v3055_v61  ;;  %v3056_v26 = vmul.f32 -1.442695, %v2507_v18  ;;  %v3234_v61 = vunpack.c.h.bf16 %v3306_v46  ;;  %v4472_v18 = vld [vmem:[%s3798_s18 + $0x50] sm:$0xff]  }
 0x396   : > { %v3585_v10 = vpop.eup %3584  ;;  %v1430_v59 = vadd.f32 1.0, %v3583_v34  ;;  %v3001_v0 = vmul.f32 -1.442695, %v1616_v53  ;;  %v2693_v28 = vpop.f32.mrf.mxu0 }
 0x397   : > { %v3587_v40 = vpop.eup %3586  ;;  %v2131_v7 = vadd.f32 1.0, %v3585_v10  ;;  %v1618_v41 = vpop.f32.mrf.mxu1  ;;  %v2694_v48 = vadd.f32 %v4428_v15, %v2693_v28  ;;  %v3249_v28 = vunpack.c.l.bf16 %v4472_v18 }
 0x398   : > { %v1942_v16 = vmul.f32 %v3587_v40, %v3217_v63  ;;  %3608 = vrcp.f32 %v1430_v59  ;;  %v1619_v29 = vadd.f32 %v4428_v15, %v1618_v41  ;;  %v3515_v14 = vpop.f32.mrf.mxu0 }
 0x399   : > { %v3589_v52 = vpop.eup %3588  ;;  %3610 = vrcp.f32 %v2131_v7  ;;  %v3450_v60 = vpop.f32.mrf.mxu1  ;;  %v3067_v24 = vmul.f32 -1.442695, %v2694_v48 }
 0x39a   : > { %v3591_v5 = vpop.eup %3590  ;;  %v3143_v56 = vpack.c.bf16 %v1942_v16, %v1942_v16  ;;  %v1431_v31 = vadd.f32 1.0, %v3589_v52  ;;  %3612 = vpow2.f32 %v3001_v0  ;;  %v3002_v37 = vmul.f32 -1.442695, %v1619_v29  ;;  %v2696_v47 = vpop.f32.mrf.mxu0  ;;  %v3294_v52 = vld [vmem:[%s3798_s18 + $0x10] sm:$0xff]  }
 0x39b   : > { %v3593_v13 = vpop.eup %3592  ;;  %v2324_v32 = vadd.f32 1.0, %v3591_v5  ;;  %3614 = vpow2.f32 %v3056_v26  ;;  %v1715_v30 = vpop.f32.mrf.mxu1  ;;  %v2697_v9 = vadd.f32 %v4428_v15, %v2696_v47 }
 0x39c   : > { %1952 = vst.msk [vmem:[%s4456_s23 + $0x30] sm:$0xf] %vm1343_vm0, %v3143_v56  ;;  %v1943_v23 = vmul.f32 %v3593_v13, %v3218_v57  ;;  %3616 = vrcp.f32 %v1431_v31  ;;  %v1716_v4 = vadd.f32 %v4428_v15, %v1715_v30  ;;  %v3595_v21 = vpop.eup %3594  ;;  %v3516_v39 = vpop.f32.mrf.mxu0  ;;  %v3178_v57 = vunpack.c.h.bf16 %v3292_v3 }
 0x39d   : > { %3618 = vrcp.f32 %v2324_v32  ;;  %v3455_v49 = vpop.f32.mrf.mxu1  ;;  %v3597_v22 = vpop.eup %3596  ;;  %v1333_v33 = vmul.f32 %v3595_v21, %v3169_v43  ;;  %v3068_v44 = vmul.f32 -1.442695, %v2697_v9 }
 0x39e   : > { %v3144_v11 = vpack.c.bf16 %v1943_v23, %v1943_v23  ;;  %3620 = vpow2.f32 %v3002_v37  ;;  %v3007_v58 = vmul.f32 -1.442695, %v1716_v4  ;;  %v3599_v36 = vpop.eup %3598  ;;  %v1530_v1 = vadd.f32 1.0, %v3597_v22 }
 0x39f   : > { %3622 = vpow2.f32 %v3067_v24  ;;  %v1718_v35 = vpop.f32.mrf.mxu1  ;;  %v3131_v2 = vpack.c.bf16 %v1333_v33, %v1333_v33  ;;  %v2325_v55 = vadd.f32 1.0, %v3599_v36  ;;  %v3601_v12 = vpop.eup %3600  ;;  %v3185_v24 = vunpack.c.l.bf16 %v3294_v52 }
 0x3a0   : > { %1953 = vst.msk [vmem:[%s4456_s23 + $0x34] sm:$0xf] %vm1343_vm0, %v3144_v11  ;;  %3624 = vpow2.f32 %v3007_v58  ;;  %v1719_v6 = vadd.f32 %v4428_v15, %v1718_v35  ;;  %v3603_v42 = vpop.eup %3602  ;;  %v1334_v62 = vmul.f32 %v3601_v12, %v3170_v50  ;;  %v3250_v23 = vunpack.c.h.bf16 %v4472_v18  ;;  %v3314_v58 = vld [vmem:[%s3798_s18 + $0x60] sm:$0xff]  }
 0x3a1   : > { %3626 = vrcp.f32 %v1530_v1  ;;  %v3456_v51 = vpop.f32.mrf.mxu1  ;;  %1344 = vst.msk [vmem:[%s4456_s23] sm:$0xf] %vm1343_vm0, %v3131_v2  ;;  %v3605_v54 = vpop.eup %3604  ;;  %v2138_v17 = vmul.f32 %v3603_v42, %v3233_v25  ;;  %v3186_v2 = vunpack.c.h.bf16 %v3294_v52  ;;  %v3296_v42 = vld [vmem:[%s3798_s18 + $0x18] sm:$0xff]  }
 0x3a2   : > { %3628 = vrcp.f32 %v2325_v55  ;;  %v3008_v45 = vmul.f32 -1.442695, %v1719_v6  ;;  %v3607_v63 = vpop.eup %3606  ;;  %v3132_v53 = vpack.c.bf16 %v1334_v62, %v1334_v62  ;;  %v1531_v34 = vadd.f32 1.0, %v3605_v54 }
 0x3a3   : > { %3630 = vpow2.f32 %v3068_v44  ;;  %v1819_v38 = vpop.f32.mrf.mxu1  ;;  %v3147_v10 = vpack.c.bf16 %v2138_v17, %v2138_v17  ;;  %v2518_v19 = vadd.f32 1.0, %v3607_v63  ;;  %v3265_v62 = vunpack.c.l.bf16 %v3314_v58 }
 0x3a4   : > { %3632 = vpow2.f32 %v3008_v45  ;;  %v1820_v8 = vadd.f32 %v4428_v15, %v1819_v38  ;;  %1345 = vst.msk [vmem:[%s4456_s23 + $0x4] sm:$0xf] %vm1343_vm0, %v3132_v53  ;;  %v3194_v52 = vunpack.c.h.bf16 %v3296_v42 }
 0x3a5   : > { %v3609_v20 = vpop.eup %3608  ;;  %v3461_v59 = vpop.f32.mrf.mxu1  ;;  %3634 = vrcp.f32 %v1531_v34  ;;  %2148 = vst.msk [vmem:[%s4456_s23 + $0x40] sm:$0xf] %vm1343_vm0, %v3147_v10  ;;  %v3193_v34 = vunpack.c.l.bf16 %v3296_v42 }
 0x3a6   : > { %v3611_v0 = vpop.eup %3610  ;;  %v1438_v40 = vmul.f32 %v3609_v20, %v3177_v27  ;;  %v3013_v7 = vmul.f32 -1.442695, %v1820_v8  ;;  %3636 = vrcp.f32 %v2518_v19  ;;  %v3266_v19 = vunpack.c.h.bf16 %v3314_v58 }
 0x3a7   : > { %v3613_v41 = vpop.eup %3612  ;;  %v2139_v26 = vmul.f32 %v3611_v0, %v3234_v61  ;;  %v1822_v16 = vpop.f32.mrf.mxu1 }
 0x3a8   : > { %v3615_v29 = vpop.eup %3614  ;;  %v3133_v48 = vpack.c.bf16 %v1438_v40, %v1438_v40  ;;  %v1630_v43 = vadd.f32 1.0, %v3613_v41  ;;  %3638 = vpow2.f32 %v3013_v7  ;;  %v1823_v60 = vadd.f32 %v4428_v15, %v1822_v16  ;;  %v3318_v40 = vld [vmem:[%s3798_s18 + $0x70] sm:$0xff]  }
 0x3a9   : > { %v3617_v14 = vpop.eup %3616  ;;  %v3148_v5 = vpack.c.bf16 %v2139_v26, %v2139_v26  ;;  %v2519_v56 = vadd.f32 1.0, %v3615_v29  ;;  %v3462_v31 = vpop.f32.mrf.mxu1 }
 0x3aa   : > { %v3619_v37 = vpop.eup %3618  ;;  %1448 = vst.msk [vmem:[%s4456_s23 + $0x8] sm:$0xf] %vm1343_vm0, %v3133_v48  ;;  %v1439_v13 = vmul.f32 %v3617_v14, %v3178_v57  ;;  %3640 = vrcp.f32 %v1630_v43  ;;  %v3014_v32 = vmul.f32 -1.442695, %v1823_v60 }
 0x3ab   : > { %v3621_v30 = vpop.eup %3620  ;;  %2149 = vst.msk [vmem:[%s4456_s23 + $0x44] sm:$0xf] %vm1343_vm0, %v3148_v5  ;;  %v2332_v47 = vmul.f32 %v3619_v37, %v3249_v28  ;;  %3642 = vrcp.f32 %v2519_v56  ;;  %v2017_v46 = vpop.f32.mrf.mxu1  ;;  %v3298_v28 = vld [vmem:[%s3798_s18 + $0x20] sm:$0xff]   ;;  %v3281_v5 = vunpack.c.l.bf16 %v3318_v40 }
 0x3ac   : > { %v3623_v4 = vpop.eup %3622  ;;  %v3134_v9 = vpack.c.bf16 %v1439_v13, %v1439_v13  ;;  %v1631_v21 = vadd.f32 1.0, %v3621_v30  ;;  %3644 = vpow2.f32 %v3014_v32  ;;  %v2018_v50 = vadd.f32 %v4428_v15, %v2017_v46 }
 0x3ad   : > { %v3625_v49 = vpop.eup %3624  ;;  %v3151_v39 = vpack.c.bf16 %v2332_v47, %v2332_v47  ;;  %v2708_v22 = vadd.f32 1.0, %v3623_v4  ;;  %v3473_v33 = vpop.f32.mrf.mxu1  ;;  %v3201_v37 = vunpack.c.l.bf16 %v3298_v28 }
 0x3ae   : > { %v3627_v11 = vpop.eup %3626  ;;  %1449 = vst.msk [vmem:[%s4456_s23 + $0xc] sm:$0xf] %vm1343_vm0, %v3134_v9  ;;  %3646 = vrcp.f32 %v1631_v21  ;;  %v1730_v36 = vadd.f32 1.0, %v3625_v49  ;;  %v3025_v3 = vmul.f32 -1.442695, %v2018_v50  ;;  %v3282_v50 = vunpack.c.h.bf16 %v3318_v40 }
 0x3af   : > { %v3629_v25 = vpop.eup %3628  ;;  %v1538_v1 = vmul.f32 %v3627_v11, %v3185_v24  ;;  %2342 = vst.msk [vmem:[%s4456_s23 + $0x50] sm:$0xf] %vm1343_vm0, %v3151_v39  ;;  %3648 = vrcp.f32 %v2708_v22  ;;  %v2020_v35 = vpop.f32.mrf.mxu1  ;;  %v3202_v11 = vunpack.c.h.bf16 %v3298_v28 }
 0x3b0   : > { %v3631_v44 = vpop.eup %3630  ;;  %v2333_v55 = vmul.f32 %v3629_v25, %v3250_v23  ;;  %3650 = vrcp.f32 %v1730_v36  ;;  %v2021_v6 = vadd.f32 %v4428_v15, %v2020_v35 }
 0x3b1   : > { %v3633_v12 = vpop.eup %3632  ;;  %v3135_v51 = vpack.c.bf16 %v1538_v1, %v1538_v1  ;;  %v2709_v27 = vadd.f32 1.0, %v3631_v44  ;;  %3652 = vpow2.f32 %v3025_v3  ;;  %v3474_v45 = vpop.f32.mrf.mxu1  ;;  %v3300_v3 = vld [vmem:[%s3798_s18 + $0x28] sm:$0xff]  }
 0x3b2   : > { %v3152_v54 = vpack.c.bf16 %v2333_v55, %v2333_v55  ;;  %v1731_v17 = vadd.f32 1.0, %v3633_v12  ;;  %v3026_v61 = vmul.f32 -1.442695, %v2021_v6  ;;  %v3635_v38 = vpop.eup %3634 }
 0x3b3   : > { %1548 = vst.msk [vmem:[%s4456_s23 + $0x10] sm:$0xf] %vm1343_vm0, %v3135_v51  ;;  %3654 = vrcp.f32 %v2709_v27  ;;  %v2213_v63 = vpop.f32.mrf.mxu1  ;;  %v3637_v53 = vpop.eup %3636  ;;  %v1539_v18 = vmul.f32 %v3635_v38, %v3186_v2 }
 0x3b4   : > { %2343 = vst.msk [vmem:[%s4456_s23 + $0x54] sm:$0xf] %vm1343_vm0, %v3152_v54  ;;  %3656 = vrcp.f32 %v1731_v17  ;;  %v2214_v8 = vadd.f32 %v4428_v15, %v2213_v63  ;;  %v2526_v10 = vmul.f32 %v3637_v53, %v3265_v62  ;;  %v3209_v62 = vunpack.c.l.bf16 %v3300_v3 }
 0x3b5   : > { %v3639_v20 = vpop.eup %3638  ;;  %3658 = vpow2.f32 %v3026_v61  ;;  %v3485_v59 = vpop.f32.mrf.mxu1  ;;  %v3136_v0 = vpack.c.bf16 %v1539_v18, %v1539_v18 }
 0x3b6   : > { %v1834_v57 = vadd.f32 1.0, %v3639_v20  ;;  %v3037_v7 = vmul.f32 -1.442695, %v2214_v8  ;;  %v3155_v26 = vpack.c.bf16 %v2526_v10, %v2526_v10  ;;  %v3210_v8 = vunpack.c.h.bf16 %v3300_v3 }
 0x3b7   : > { %v3641_v41 = vpop.eup %3640  ;;  %v2216_v16 = vpop.f32.mrf.mxu1  ;;  %1549 = vst.msk [vmem:[%s4456_s23 + $0x14] sm:$0xf] %vm1343_vm0, %v3136_v0  ;;  %v3304_v0 = vld [vmem:[%s3798_s18 + $0x38] sm:$0xff]  }
 0x3b8   : > { %v3643_v29 = vpop.eup %3642  ;;  %v1638_v48 = vmul.f32 %v3641_v41, %v3193_v34  ;;  %3660 = vrcp.f32 %v1834_v57  ;;  %v2217_v43 = vadd.f32 %v4428_v15, %v2216_v16  ;;  %2536 = vst.msk [vmem:[%s4456_s23 + $0x60] sm:$0xf] %vm1343_vm0, %v3155_v26  ;;  %v3225_v16 = vunpack.c.l.bf16 %v3304_v0 }
 0x3b9   : > { %v3645_v60 = vpop.eup %3644  ;;  %v2527_v14 = vmul.f32 %v3643_v29, %v3266_v19  ;;  %3662 = vpow2.f32 %v3037_v7  ;;  %v3486_v56 = vpop.f32.mrf.mxu1 }
 0x3ba   : > { %v3137_v31 = vpack.c.bf16 %v1638_v48, %v1638_v48  ;;  %v1835_v13 = vadd.f32 1.0, %v3645_v60  ;;  %v3038_v32 = vmul.f32 -1.442695, %v2217_v43 }
 0x3bb   : > { %v3647_v30 = vpop.eup %3646  ;;  %v3156_v24 = vpack.c.bf16 %v2527_v14, %v2527_v14  ;;  %v2405_v47 = vpop.f32.mrf.mxu1 }
 0x3bc   : > { %v3649_v23 = vpop.eup %3648  ;;  %1648 = vst.msk [vmem:[%s4456_s23 + $0x18] sm:$0xf] %vm1343_vm0, %v3137_v31  ;;  %v1639_v46 = vmul.f32 %v3647_v30, %v3194_v52  ;;  %3664 = vrcp.f32 %v1835_v13  ;;  %v2406_v4 = vadd.f32 %v4428_v15, %v2405_v47  ;;  %v3226_v13 = vunpack.c.h.bf16 %v3304_v0  ;;  %v3308_v30 = vld [vmem:[%s3798_s18 + $0x48] sm:$0xff]  }
 0x3bd   : > { %v3651_v9 = vpop.eup %3650  ;;  %2537 = vst.msk [vmem:[%s4456_s23 + $0x64] sm:$0xf] %vm1343_vm0, %v3156_v24  ;;  %v2716_v21 = vmul.f32 %v3649_v23, %v3281_v5  ;;  %3666 = vpow2.f32 %v3038_v32  ;;  %v3497_v49 = vpop.f32.mrf.mxu1 }
 0x3be   : > { %v3653_v39 = vpop.eup %3652  ;;  %v3138_v22 = vpack.c.bf16 %v1639_v46, %v1639_v46  ;;  %v1738_v33 = vmul.f32 %v3651_v9, %v3201_v37  ;;  %v3049_v58 = vmul.f32 -1.442695, %v2406_v4  ;;  %v3241_v49 = vunpack.c.l.bf16 %v3308_v30 }
 0x3bf   : > { %v3159_v36 = vpack.c.bf16 %v2716_v21, %v2716_v21  ;;  %v2032_v25 = vadd.f32 1.0, %v3653_v39  ;;  %v2408_v1 = vpop.f32.mrf.mxu1 }
 0x3c0   : > { %v3655_v35 = vpop.eup %3654  ;;  %1649 = vst.msk [vmem:[%s4456_s23 + $0x1c] sm:$0xf] %vm1343_vm0, %v3138_v22  ;;  %v3139_v44 = vpack.c.bf16 %v1738_v33, %v1738_v33  ;;  %3668 = vpow2.f32 %v3049_v58  ;;  %v2409_v2 = vadd.f32 %v4428_v15, %v2408_v1  ;;  %v3242_v58 = vunpack.c.h.bf16 %v3308_v30 }
 0x3c1   : > { %v3657_v55 = vpop.eup %3656  ;;  %2726 = vst.msk [vmem:[%s4456_s23 + $0x70] sm:$0xf] %vm1343_vm0, %v3159_v36  ;;  %v2717_v6 = vmul.f32 %v3655_v35, %v3282_v50  ;;  %3670 = vrcp.f32 %v2032_v25  ;;  %v3498_v12 = vpop.f32.mrf.mxu1  ;;  %v3312_v36 = vld [vmem:[%s3798_s18 + $0x58] sm:$0xff]  }
 0x3c2   : > { %v3659_v51 = vpop.eup %3658  ;;  %1748 = vst.msk [vmem:[%s4456_s23 + $0x20] sm:$0xf] %vm1343_vm0, %v3139_v44  ;;  %v1739_v42 = vmul.f32 %v3657_v55, %v3202_v11  ;;  %v3050_v27 = vmul.f32 -1.442695, %v2409_v2  ;;  %v3257_v35 = vunpack.c.l.bf16 %v3312_v36 }
 0x3c3   : > { %v3160_v45 = vpack.c.bf16 %v2717_v6, %v2717_v6  ;;  %v2033_v54 = vadd.f32 1.0, %v3659_v51  ;;  %v2599_v17 = vpop.f32.mrf.mxu1 }
 0x3c4   : > { %v3140_v61 = vpack.c.bf16 %v1739_v42, %v1739_v42  ;;  %3672 = vpow2.f32 %v3050_v27  ;;  %v2600_v38 = vadd.f32 %v4428_v15, %v2599_v17  ;;  %v3258_v42 = vunpack.c.h.bf16 %v3312_v36 }
 0x3c5   : > { %v3661_v63 = vpop.eup %3660  ;;  %2727 = vst.msk [vmem:[%s4456_s23 + $0x74] sm:$0xf] %vm1343_vm0, %v3160_v45  ;;  %3674 = vrcp.f32 %v2033_v54  ;;  %v3509_v53 = vpop.f32.mrf.mxu1 }
 0x3c6   : > { %v3663_v18 = vpop.eup %3662  ;;  %1749 = vst.msk [vmem:[%s4456_s23 + $0x24] sm:$0xf] %vm1343_vm0, %v3140_v61  ;;  %v1842_v34 = vmul.f32 %v3661_v63, %v3209_v62  ;;  %v3061_v20 = vmul.f32 -1.442695, %v2600_v38  ;;  %v3316_v62 = vld [vmem:[%s3798_s18 + $0x68] sm:$0xff]  }
 0x3c7   : > { %v2228_v10 = vadd.f32 1.0, %v3663_v18  ;;  %v2602_v19 = vpop.f32.mrf.mxu1  ;;  %v3273_v38 = vunpack.c.l.bf16 %v3316_v62 }
 0x3c8   : > { %v3141_v59 = vpack.c.bf16 %v1842_v34, %v1842_v34  ;;  %3676 = vpow2.f32 %v3061_v20  ;;  %v2603_v40 = vadd.f32 %v4428_v15, %v2602_v19 }
 0x3c9   : > { %v3665_v57 = vpop.eup %3664  ;;  %3678 = vrcp.f32 %v2228_v10  ;;  %v3510_v7 = vpop.f32.mrf.mxu1  ;;  %v3320_v10 = vld [vmem:[%s3798_s18 + $0x78] sm:$0xff]  }
 0x3ca   : > { %v3667_v41 = vpop.eup %3666  ;;  %1852 = vst.msk [vmem:[%s4456_s23 + $0x28] sm:$0xf] %vm1343_vm0, %v3141_v59  ;;  %v1843_v26 = vmul.f32 %v3665_v57, %v3210_v8  ;;  %v3062_v28 = vmul.f32 -1.442695, %v2603_v40  ;;  %v3274_v8 = vunpack.c.h.bf16 %v3316_v62  ;;  %v3289_v0 = vunpack.c.l.bf16 %v3320_v10 }
 0x3cb   : > { %v2229_v29 = vadd.f32 1.0, %v3667_v41  ;;  %v2789_v48 = vpop.f32.mrf.mxu1  ;;  %v3290_v41 = vunpack.c.h.bf16 %v3320_v10 }
 0x3cc   : > { %v3142_v52 = vpack.c.bf16 %v1843_v26, %v1843_v26  ;;  %3680 = vpow2.f32 %v3062_v28  ;;  %v2790_v43 = vadd.f32 %v4428_v15, %v2789_v48 }
 0x3cd   : > { %v3669_v60 = vpop.eup %3668  ;;  %3682 = vrcp.f32 %v2229_v29  ;;  %v3521_v14 = vpop.f32.mrf.mxu1 }
 0x3ce   : > { %v3671_v5 = vpop.eup %3670  ;;  %1853 = vst.msk [vmem:[%s4456_s23 + $0x2c] sm:$0xf] %vm1343_vm0, %v3142_v52  ;;  %v2420_v56 = vadd.f32 1.0, %v3669_v60  ;;  %v3073_v31 = vmul.f32 -1.442695, %v2790_v43 }
 0x3cf   : > { %v2040_v37 = vmul.f32 %v3671_v5, %v3225_v16  ;;  %v2792_v32 = vpop.f32.mrf.mxu1 }
 0x3d0   : > { %3684 = vrcp.f32 %v2420_v56  ;;  %v2793_v24 = vadd.f32 %v4428_v15, %v2792_v32 }
 0x3d1   : > { %v3673_v47 = vpop.eup %3672  ;;  %v3145_v23 = vpack.c.bf16 %v2040_v37, %v2040_v37  ;;  %3686 = vpow2.f32 %v3073_v31  ;;  %v3522_v46 = vpop.f32.mrf.mxu1 }
 0x3d2   : > { %v3675_v4 = vpop.eup %3674  ;;  %v2421_v9 = vadd.f32 1.0, %v3673_v47  ;;  %v3074_v21 = vmul.f32 -1.442695, %v2793_v24 }
 0x3d3   : > { %2050 = vst.msk [vmem:[%s4456_s23 + $0x38] sm:$0xf] %vm1343_vm0, %v3145_v23  ;;  %v2041_v50 = vmul.f32 %v3675_v4, %v3226_v13 }
 0x3d4   : > { %3688 = vrcp.f32 %v2421_v9 }
 0x3d5   : > { %v3677_v39 = vpop.eup %3676  ;;  %v3146_v22 = vpack.c.bf16 %v2041_v50, %v2041_v50  ;;  %3690 = vpow2.f32 %v3074_v21 }
 0x3d6   : > { %v3679_v33 = vpop.eup %3678  ;;  %v2614_v15 = vadd.f32 1.0, %v3677_v39 }
 0x3d7   : > { %2051 = vst.msk [vmem:[%s4456_s23 + $0x3c] sm:$0xf] %vm1343_vm0, %v3146_v22  ;;  %v2236_v11 = vmul.f32 %v3679_v33, %v3241_v49 }
 0x3d8   : > { %3692 = vrcp.f32 %v2614_v15 }
 0x3d9   : > { %v3681_v3 = vpop.eup %3680  ;;  %v3149_v25 = vpack.c.bf16 %v2236_v11, %v2236_v11 }
 0x3da   : > { %v3683_v1 = vpop.eup %3682  ;;  %v2615_v44 = vadd.f32 1.0, %v3681_v3 }
 0x3db   : > { %2246 = vst.msk [vmem:[%s4456_s23 + $0x48] sm:$0xf] %vm1343_vm0, %v3149_v25  ;;  %v2237_v2 = vmul.f32 %v3683_v1, %v3242_v58 }
 0x3dc   : > { %3694 = vrcp.f32 %v2615_v44 }
 0x3dd   : > { %v3685_v55 = vpop.eup %3684  ;;  %v3150_v6 = vpack.c.bf16 %v2237_v2, %v2237_v2 }
 0x3de   : > { %v3687_v12 = vpop.eup %3686  ;;  %v2428_v51 = vmul.f32 %v3685_v55, %v3257_v35 }
 0x3df   : > { %2247 = vst.msk [vmem:[%s4456_s23 + $0x4c] sm:$0xf] %vm1343_vm0, %v3150_v6  ;;  %v2804_v27 = vadd.f32 1.0, %v3687_v12 }
 0x3e0   : > { %v3153_v45 = vpack.c.bf16 %v2428_v51, %v2428_v51 }
 0x3e1   : > { %v3689_v54 = vpop.eup %3688  ;;  %3696 = vrcp.f32 %v2804_v27 }
 0x3e2   : > { %v3691_v17 = vpop.eup %3690  ;;  %2438 = vst.msk [vmem:[%s4456_s23 + $0x58] sm:$0xf] %vm1343_vm0, %v3153_v45  ;;  %v2429_v61 = vmul.f32 %v3689_v54, %v3258_v42 }
 0x3e3   : > { %v2805_v63 = vadd.f32 1.0, %v3691_v17 }
 0x3e4   : > { %v3154_v53 = vpack.c.bf16 %v2429_v61, %v2429_v61 }
 0x3e5   : > { %v3693_v18 = vpop.eup %3692  ;;  %3698 = vrcp.f32 %v2805_v63 }
 0x3e6   : > { %2439 = vst.msk [vmem:[%s4456_s23 + $0x5c] sm:$0xf] %vm1343_vm0, %v3154_v53  ;;  %v2622_v34 = vmul.f32 %v3693_v18, %v3273_v38 }
 0x3e8   : > { %v3157_v20 = vpack.c.bf16 %v2622_v34, %v2622_v34 }
 0x3e9   : > { %v3695_v19 = vpop.eup %3694 }
 0x3ea   : > { %2632 = vst.msk [vmem:[%s4456_s23 + $0x68] sm:$0xf] %vm1343_vm0, %v3157_v20  ;;  %v2623_v59 = vmul.f32 %v3695_v19, %v3274_v8 }
 0x3ec   : > { %v3158_v40 = vpack.c.bf16 %v2623_v59, %v2623_v59 }
 0x3ee   : > { %v3697_v57 = vpop.eup %3696  ;;  %2633 = vst.msk [vmem:[%s4456_s23 + $0x6c] sm:$0xf] %vm1343_vm0, %v3158_v40 }
 0x3ef   : > { %v2812_v7 = vmul.f32 %v3697_v57, %v3289_v0 }
 0x3f1   : > { %v3161_v26 = vpack.c.bf16 %v2812_v7, %v2812_v7 }
 0x3f2   : > { %v3699_v28 = vpop.eup %3698 }
 0x3f3   : > { %2822 = vst.msk [vmem:[%s4456_s23 + $0x78] sm:$0xf] %vm1343_vm0, %v3161_v26  ;;  %v2813_v16 = vmul.f32 %v3699_v28, %v3290_v41 }
 0x3f5   : > { %v3162_v29 = vpack.c.bf16 %v2813_v16, %v2813_v16 }
 0x3f7   : > { %2823 = vst.msk [vmem:[%s4456_s23 + $0x7c] sm:$0xf] %vm1343_vm0, %v3162_v29 }
 0x3f8 PF: > { %s18_s27 = sadd.s32 1, %s3706_s27  }
 0x3f9   : > { %p15_p4 = scmp.ge.s32.totalorder %s18_s27, 4  }
 0x3fb   :  { %17 = sbr.rel (!%p15_p4) target bundleno = 1 (0x1), region = 82 }

</bundles_post_ra>
